<compile_context>
chip_gen: v7x
topology: tpu7x:2x2x1
jax: 0.10.0
libtpu: 0.0.40
codegen_flags: <defaults>
</compile_context>

<pallas_src>
import jax
import jax.numpy as jnp
from jax.experimental import pallas as pl
from jax.experimental.pallas import tpu as pltpu

B = 128     # batch per kernel call (>=128 so resident weights amortize over MXU rows)
F = 512     # raw feature dim fed to PCA.transform
K = 512     # PCA n_components (stand-in for 3000 -> pad to 3072 at real size)
H = 256     # hidden width     (stand-in for 1000 -> pad to 1024 at real size)
C = 101     # number of real classes
CP = 128    # class dim padded to a lane-dense 128

TF = 256    # tile along F (PCA contraction)

BN_EPS = 1e-5
NEG_INF = -1e30


def _classifier_kernel(x_ref, pmean_ref, comp_t_ref,
                       w1_t_ref, b1_ref, gamma_ref, beta_ref,
                       w2_t_ref, b2_ref, o_ref,
                       z_acc):
    f = pl.program_id(0)          # F-tile index (PCA contraction)
    nf = pl.num_programs(0)

    # ---- accumulator init ---------------------------------------------------
    @pl.when(f == 0)
    def _():
        z_acc[...] = jnp.zeros_like(z_acc)

    # ---- PCA.transform partial: (x - mean)[:, f_tile] @ components.T[f_tile, :] --
    # centering in f32, cast to bf16 only at the MXU input
    xc = (x_ref[...] - pmean_ref[...]).astype(comp_t_ref.dtype)      # (B, TF) bf16
    z_acc[...] += jnp.dot(xc, comp_t_ref[...],
                          preferred_element_type=jnp.float32)        # (B, K) f32

    # ---- finalize: Linear(K,H) + BN (training mode, full batch) + ReLU +
    #      Linear(H, C) + masked softmax --------------------------------------
    @pl.when(f == nf - 1)
    def _():
        zb = z_acc[...].astype(w1_t_ref.dtype)                       # (B, K) bf16
        h = jnp.dot(zb, w1_t_ref[...],
                    preferred_element_type=jnp.float32) + b1_ref[...]   # (B, H) f32

        # BatchNorm1d, training mode: batch mean / biased batch var, eps=1e-5.
        mu = jnp.mean(h, axis=0, keepdims=True)                      # (1, H)
        hc = h - mu                                                  # reused for var & norm
        var = jnp.mean(hc * hc, axis=0, keepdims=True)               # (1, H)
        hn = hc * jax.lax.rsqrt(var + BN_EPS) * gamma_ref[...] + beta_ref[...]

        hr = jnp.maximum(hn, 0.0)                                    # ReLU, f32

        logits = jnp.dot(hr.astype(w2_t_ref.dtype), w2_t_ref[...],
                         preferred_element_type=jnp.float32) + b2_ref[...]   # (B, CP)

        # mask the 27 padded class columns so softmax is over the 101 real classes
        col = jax.lax.broadcasted_iota(jnp.int32, logits.shape, 1)
        logits = jnp.where(col < C, logits, NEG_INF)

        m = jnp.max(logits, axis=1, keepdims=True)
        e = jnp.exp(logits - m)
        s = jnp.sum(e, axis=1, keepdims=True)
        o_ref[...] = (e * pl.reciprocal(s, approx=True)).astype(o_ref.dtype)


def food101k_pca_classifier(x, params, *, tf=TF):
    """x: (B, F) float32. params: pre-transposed / padded kernel params (see init)."""
    bx, fx = x.shape
    kx = params["pca_components_t"].shape[1]
    hx = params["w1_t"].shape[1]
    cp = params["w2_t"].shape[1]
    assert fx % tf == 0, "pad F to a tile multiple in the wrapper"

    grid = (fx // tf,)   # single reduction axis over F tiles

    in_specs = [
        pl.BlockSpec((bx, tf), lambda f: (0, f)),     # x            (streamed over F)
        pl.BlockSpec((1, tf), lambda f: (0, f)),      # pca_mean     (streamed over F)
        pl.BlockSpec((tf, kx), lambda f: (f, 0)),     # components^T bf16 (streamed over F)
        pl.BlockSpec((kx, hx), lambda f: (0, 0)),     # w1^T bf16    (resident)
        pl.BlockSpec((1, hx), lambda f: (0, 0)),      # b1           (resident)
        pl.BlockSpec((1, hx), lambda f: (0, 0)),      # gamma        (resident)
        pl.BlockSpec((1, hx), lambda f: (0, 0)),      # beta         (resident)
        pl.BlockSpec((hx, cp), lambda f: (0, 0)),     # w2^T bf16    (resident, padded)
        pl.BlockSpec((1, cp), lambda f: (0, 0)),      # b2           (resident, padded)
    ]
    out_spec = pl.BlockSpec((bx, cp), lambda f: (0, 0))   # lane-dense 128-wide output

    # Scoped-VMEM budget: 2x double-buffered streamed tiles + resident blocks + scratch,
    # with headroom; clamped so it also fits v7x's 64 MiB physical VMEM.
    f32b, bf16b = 4, 2
    streamed = 2 * (bx * tf * f32b + tf * f32b + tf * kx * bf16b)
    resident = (kx * hx * bf16b                                    # w1^T
                + hx * cp * bf16b + 4 * hx * f32b + cp * f32b      # w2^T, b1/gamma/beta/b2
                + bx * cp * f32b                                   # output block
                + bx * kx * f32b)                                  # z accumulator scratch
    vmem_limit = min(max(int(1.5 * (streamed + resident)) + (2 << 20), 16 << 20), 48 << 20)

    out_padded = pl.pallas_call(
        _classifier_kernel,
        out_shape=jax.ShapeDtypeStruct((bx, cp), jnp.float32),
        grid_spec=pltpu.PrefetchScalarGridSpec(
            num_scalar_prefetch=0,
            grid=grid,
            in_specs=in_specs,
            out_specs=out_spec,
            scratch_shapes=[
                pltpu.VMEM((bx, kx), jnp.float32),   # z accumulator (full PCA output)
            ],
        ),
        compiler_params=pltpu.CompilerParams(
            # the single grid axis is a reduction into a resident accumulator/output
            dimension_semantics=("arbitrary",),
            vmem_limit_bytes=vmem_limit,
        ),
    )(x,
      params["pca_mean"], params["pca_components_t"],
      params["w1_t"], params["b1"], params["gamma"], params["beta"],
      params["w2_t"], params["b2"])

    return out_padded[:, :C]


def init_params(key):
    ks = jax.random.split(key, 6)
    # PCA statistics (as sklearn holds them: mean_ (F,), components_ (K, F)).
    pca_mean = jax.random.normal(ks[0], (1, F), jnp.float32) * 0.1
    pca_components = jax.random.normal(ks[1], (K, F), jnp.float32) / jnp.sqrt(F)
    # Linear(K, H): torch weight (H, K); Linear(H, C): torch weight (C, H).
    w1 = jax.random.normal(ks[2], (H, K), jnp.float32) * 0.02
    b1 = jax.random.normal(ks[3], (1, H), jnp.float32) * 0.01
    gamma = jnp.ones((1, H), jnp.float32)     # BatchNorm1d affine init
    beta = jnp.zeros((1, H), jnp.float32)
    w2 = jax.random.normal(ks[4], (C, H), jnp.float32) * 0.02
    b2 = jax.random.normal(ks[5], (1, C), jnp.float32) * 0.01

    # Kernel params: pre-transposed, MXU operands cast to bf16, class dim padded to 128.
    w2_t = w2.T                                                     # (H, C)
    w2_t_p = jnp.zeros((H, CP), jnp.float32).at[:, :C].set(w2_t)
    b2_p = jnp.zeros((1, CP), jnp.float32).at[:, :C].set(b2)
    kernel_params = {
        "pca_mean": pca_mean,                                       # f32
        "pca_components_t": pca_components.T.astype(jnp.bfloat16),  # (F, K) bf16
        "w1_t": w1.T.astype(jnp.bfloat16),                          # (K, H) bf16
        "b1": b1,
        "gamma": gamma,
        "beta": beta,
        "w2_t": w2_t_p.astype(jnp.bfloat16),                        # (H, CP) bf16, padded
        "b2": b2_p,                                                 # (1, CP) f32, padded
    }
    # Reference params: unpadded, same bf16 precision for the matmul operands.
    ref_params = {
        "pca_mean": pca_mean,
        "pca_components_t": pca_components.T.astype(jnp.bfloat16),
        "w1_t": w1.T.astype(jnp.bfloat16),
        "b1": b1,
        "gamma": gamma,
        "beta": beta,
        "w2_t": w2_t.astype(jnp.bfloat16),                          # (H, C) bf16
        "b2": b2,
    }
    return kernel_params, ref_params


def _reference(x, p):
    """Plain-JAX reference with matching bf16 matmul precision (full-batch BN stats)."""
    xc = (x - p["pca_mean"]).astype(jnp.bfloat16)
    z = jnp.dot(xc, p["pca_components_t"], preferred_element_type=jnp.float32)
    h = jnp.dot(z.astype(jnp.bfloat16), p["w1_t"],
                preferred_element_type=jnp.float32) + p["b1"]
    mu = jnp.mean(h, axis=0, keepdims=True)
    hc = h - mu
    var = jnp.mean(hc * hc, axis=0, keepdims=True)
    hn = hc * jax.lax.rsqrt(var + BN_EPS) * p["gamma"] + p["beta"]
    hr = jnp.maximum(hn, 0.0)
    logits = jnp.dot(hr.astype(jnp.bfloat16), p["w2_t"],
                     preferred_element_type=jnp.float32) + p["b2"]
    return jax.nn.softmax(logits, axis=1)


if __name__ == "__main__":
    key = jax.random.PRNGKey(0)
    kx, kp = jax.random.split(key)
    x = jax.random.normal(kx, (B, F), jnp.float32)
    kernel_params, ref_params = init_params(kp)

    out = food101k_pca_classifier(x, kernel_params)
    out = jax.block_until_ready(out)

    ref = _reference(x, ref_params)
    assert out.shape == (B, C)
    # approx-reciprocal softmax denominator + bf16 matmuls -> modest tolerances
    assert jnp.allclose(jnp.sum(out, axis=1), 1.0, atol=2e-2)
    assert jnp.allclose(out, ref, atol=3e-3, rtol=0)
    print("KERNEL_OK")
</pallas_src>

<mosaic_0001>
module attributes {stable_mosaic.version = 11 : i64} {
  func.func @_classifier_kernel(%arg0: i32, %arg1: memref<128x256xf32, #tpu.memory_space<vmem>>, %arg2: memref<1x256xf32, #tpu.memory_space<vmem>>, %arg3: memref<256x512xbf16, #tpu.memory_space<vmem>>, %arg4: memref<512x256xbf16, #tpu.memory_space<vmem>>, %arg5: memref<1x256xf32, #tpu.memory_space<vmem>>, %arg6: memref<1x256xf32, #tpu.memory_space<vmem>>, %arg7: memref<1x256xf32, #tpu.memory_space<vmem>>, %arg8: memref<256x128xbf16, #tpu.memory_space<vmem>>, %arg9: memref<1x128xf32, #tpu.memory_space<vmem>>, %arg10: memref<128x128xf32, #tpu.memory_space<vmem>>, %arg11: memref<128x512xf32, #tpu.memory_space<vmem>>) attributes {dimension_semantics = [#tpu.dimension_semantics<arbitrary>], iteration_bounds = array<i64: 2>, scalar_prefetch = 0 : i64, scratch_operands = 1 : i64, tpu.core_type = #tpu.core_type<tc>, window_params = [{transform_indices = @transform_0, window_bounds = array<i64: 128, 256>}, {transform_indices = @transform_1, window_bounds = array<i64: 1, 256>}, {transform_indices = @transform_2, window_bounds = array<i64: 256, 512>}, {pipeline_mode = #tpu.pipeline_mode<synchronous>, transform_indices = @transform_3, window_bounds = array<i64: 512, 256>}, {pipeline_mode = #tpu.pipeline_mode<synchronous>, transform_indices = @transform_4, window_bounds = array<i64: 1, 256>}, {pipeline_mode = #tpu.pipeline_mode<synchronous>, transform_indices = @transform_5, window_bounds = array<i64: 1, 256>}, {pipeline_mode = #tpu.pipeline_mode<synchronous>, transform_indices = @transform_6, window_bounds = array<i64: 1, 256>}, {pipeline_mode = #tpu.pipeline_mode<synchronous>, transform_indices = @transform_7, window_bounds = array<i64: 256, 128>}, {pipeline_mode = #tpu.pipeline_mode<synchronous>, transform_indices = @transform_8, window_bounds = array<i64: 1, 128>}, {pipeline_mode = #tpu.pipeline_mode<synchronous>, transform_indices = @transform_9, window_bounds = array<i64: 128, 128>}]} {
    %c0_i32 = arith.constant 0 : i32
    %0 = arith.cmpi eq, %arg0, %c0_i32 : i32
    %1 = arith.extui %0 : i1 to i32
    %c0_i32_0 = arith.constant 0 : i32
    %2 = arith.cmpi ne, %1, %c0_i32_0 : i32
    scf.if %2 {
      %cst_11 = arith.constant 0.000000e+00 : f32
      %16 = vector.broadcast %cst_11 : f32 to vector<128x512xf32>
      %c0_12 = arith.constant 0 : index
      %c0_13 = arith.constant 0 : index
      %17 = vector.load %arg11[%c0_12, %c0_13] : memref<128x512xf32, #tpu.memory_space<vmem>>, vector<128x512xf32>
      tpu.vector_store %arg11[%c0_12, %c0_13], %16 {strides = array<i32>} : memref<128x512xf32, #tpu.memory_space<vmem>>, vector<128x512xf32>,
    } else {
    }
    %c0 = arith.constant 0 : index
    %c0_1 = arith.constant 0 : index
    %3 = vector.load %arg1[%c0, %c0_1] : memref<128x256xf32, #tpu.memory_space<vmem>>, vector<128x256xf32>
    %c0_2 = arith.constant 0 : index
    %c0_3 = arith.constant 0 : index
    %4 = vector.load %arg2[%c0_2, %c0_3] : memref<1x256xf32, #tpu.memory_space<vmem>>, vector<1x256xf32>
    %5 = vector.broadcast %4 : vector<1x256xf32> to vector<128x256xf32>
    %6 = arith.subf %3, %5 : vector<128x256xf32>
    %7 = arith.truncf %6 : vector<128x256xf32> to vector<128x256xbf16>
    %c0_4 = arith.constant 0 : index
    %c0_5 = arith.constant 0 : index
    %8 = vector.load %arg11[%c0_4, %c0_5] : memref<128x512xf32, #tpu.memory_space<vmem>>, vector<128x512xf32>
    %c0_6 = arith.constant 0 : index
    %c0_7 = arith.constant 0 : index
    %9 = vector.load %arg3[%c0_6, %c0_7] : memref<256x512xbf16, #tpu.memory_space<vmem>>, vector<256x512xbf16>
    %cst = arith.constant dense<0.000000e+00> : vector<128x512xf32>
    %10 = tpu.matmul %7, %9, %cst {dimension_numbers = #tpu.dot_dimension_numbers<[1], [0], [0], [1], [0, 0, 1, 1], [], []>} : vector<128x256xbf16>, vector<256x512xbf16>, vector<128x512xf32> -> vector<128x512xf32>
    %11 = arith.addf %8, %10 : vector<128x512xf32>
    %c0_8 = arith.constant 0 : index
    %c0_9 = arith.constant 0 : index
    %12 = vector.load %arg11[%c0_8, %c0_9] : memref<128x512xf32, #tpu.memory_space<vmem>>, vector<128x512xf32>
    tpu.vector_store %arg11[%c0_8, %c0_9], %11 {strides = array<i32>} : memref<128x512xf32, #tpu.memory_space<vmem>>, vector<128x512xf32>,
    %c1_i32 = arith.constant 1 : i32
    %13 = arith.cmpi eq, %arg0, %c1_i32 : i32
    %14 = arith.extui %13 : i1 to i32
    %c0_i32_10 = arith.constant 0 : i32
    %15 = arith.cmpi ne, %14, %c0_i32_10 : i32
    scf.if %15 {
      %c0_11 = arith.constant 0 : index
      %c0_12 = arith.constant 0 : index
      %16 = vector.load %arg11[%c0_11, %c0_12] : memref<128x512xf32, #tpu.memory_space<vmem>>, vector<128x512xf32>
      %17 = arith.truncf %16 : vector<128x512xf32> to vector<128x512xbf16>
      %c0_13 = arith.constant 0 : index
      %c0_14 = arith.constant 0 : index
      %18 = vector.load %arg4[%c0_13, %c0_14] : memref<512x256xbf16, #tpu.memory_space<vmem>>, vector<512x256xbf16>
      %cst_15 = arith.constant dense<0.000000e+00> : vector<128x256xf32>
      %19 = tpu.matmul %17, %18, %cst_15 {dimension_numbers = #tpu.dot_dimension_numbers<[1], [0], [0], [1], [0, 0, 1, 1], [], []>} : vector<128x512xbf16>, vector<512x256xbf16>, vector<128x256xf32> -> vector<128x256xf32>
      %c0_16 = arith.constant 0 : index
      %c0_17 = arith.constant 0 : index
      %20 = vector.load %arg5[%c0_16, %c0_17] : memref<1x256xf32, #tpu.memory_space<vmem>>, vector<1x256xf32>
      %21 = vector.broadcast %20 : vector<1x256xf32> to vector<128x256xf32>
      %22 = arith.addf %19, %21 : vector<128x256xf32>
      %cst_18 = arith.constant dense<0.000000e+00> : vector<256xf32>
      %23 = vector.multi_reduction <add>, %22, %cst_18 [0] : vector<128x256xf32> to vector<256xf32>
      %24 = vector.shape_cast %23 : vector<256xf32> to vector<1x256xf32>
      %cst_19 = arith.constant 1.280000e+02 : f32
      %25 = vector.broadcast %cst_19 : f32 to vector<1x256xf32>
      %26 = arith.divf %24, %25 : vector<1x256xf32>
      %27 = vector.broadcast %26 : vector<1x256xf32> to vector<128x256xf32>
      %28 = arith.subf %22, %27 : vector<128x256xf32>
      %29 = arith.mulf %28, %28 : vector<128x256xf32>
      %cst_20 = arith.constant dense<0.000000e+00> : vector<256xf32>
      %30 = vector.multi_reduction <add>, %29, %cst_20 [0] : vector<128x256xf32> to vector<256xf32>
      %31 = vector.shape_cast %30 : vector<256xf32> to vector<1x256xf32>
      %cst_21 = arith.constant 1.280000e+02 : f32
      %32 = vector.broadcast %cst_21 : f32 to vector<1x256xf32>
      %33 = arith.divf %31, %32 : vector<1x256xf32>
      %cst_22 = arith.constant 9.99999974E-6 : f32
      %34 = vector.broadcast %cst_22 : f32 to vector<1x256xf32>
      %35 = arith.addf %33, %34 : vector<1x256xf32>
      %36 = math.rsqrt %35 : vector<1x256xf32>
      %37 = vector.broadcast %36 : vector<1x256xf32> to vector<128x256xf32>
      %38 = arith.mulf %28, %37 : vector<128x256xf32>
      %c0_23 = arith.constant 0 : index
      %c0_24 = arith.constant 0 : index
      %39 = vector.load %arg6[%c0_23, %c0_24] : memref<1x256xf32, #tpu.memory_space<vmem>>, vector<1x256xf32>
      %40 = vector.broadcast %39 : vector<1x256xf32> to vector<128x256xf32>
      %41 = arith.mulf %38, %40 : vector<128x256xf32>
      %c0_25 = arith.constant 0 : index
      %c0_26 = arith.constant 0 : index
      %42 = vector.load %arg7[%c0_25, %c0_26] : memref<1x256xf32, #tpu.memory_space<vmem>>, vector<1x256xf32>
      %43 = vector.broadcast %42 : vector<1x256xf32> to vector<128x256xf32>
      %44 = arith.addf %41, %43 : vector<128x256xf32>
      %cst_27 = arith.constant 0.000000e+00 : f32
      %45 = vector.broadcast %cst_27 : f32 to vector<128x256xf32>
      %46 = arith.maximumf %44, %45 : vector<128x256xf32>
      %47 = arith.truncf %46 : vector<128x256xf32> to vector<128x256xbf16>
      %c0_28 = arith.constant 0 : index
      %c0_29 = arith.constant 0 : index
      %48 = vector.load %arg8[%c0_28, %c0_29] : memref<256x128xbf16, #tpu.memory_space<vmem>>, vector<256x128xbf16>
      %cst_30 = arith.constant dense<0.000000e+00> : vector<128x128xf32>
      %49 = tpu.matmul %47, %48, %cst_30 {dimension_numbers = #tpu.dot_dimension_numbers<[1], [0], [0], [1], [0, 0, 1, 1], [], []>} : vector<128x256xbf16>, vector<256x128xbf16>, vector<128x128xf32> -> vector<128x128xf32>
      %c0_31 = arith.constant 0 : index
      %c0_32 = arith.constant 0 : index
      %50 = vector.load %arg9[%c0_31, %c0_32] : memref<1x128xf32, #tpu.memory_space<vmem>>, vector<1x128xf32>
      %51 = vector.broadcast %50 : vector<1x128xf32> to vector<128x128xf32>
      %52 = arith.addf %49, %51 : vector<128x128xf32>
      %53 = tpu.iota {dimensions = array<i32: 1>} : vector<128x128xi32>
      %c101_i32 = arith.constant 101 : i32
      %54 = vector.broadcast %c101_i32 : i32 to vector<128x128xi32>
      %55 = arith.cmpi slt, %53, %54 : vector<128x128xi32>
      %cst_33 = arith.constant -1.000000e+30 : f32
      %56 = vector.broadcast %cst_33 : f32 to vector<128x128xf32>
      %57 = arith.select %55, %52, %56 : vector<128x128xi1>, vector<128x128xf32>
      %cst_34 = arith.constant dense<0xFF800000> : vector<128xf32>
      %58 = vector.multi_reduction <maximumf>, %57, %cst_34 [1] : vector<128x128xf32> to vector<128xf32>
      %59 = vector.shape_cast %58 : vector<128xf32> to vector<128x1xf32>
      %60 = vector.broadcast %59 : vector<128x1xf32> to vector<128x128xf32>
      %61 = arith.subf %57, %60 : vector<128x128xf32>
      %62 = math.exp %61 : vector<128x128xf32>
      %cst_35 = arith.constant dense<0.000000e+00> : vector<128xf32>
      %63 = vector.multi_reduction <add>, %62, %cst_35 [1] : vector<128x128xf32> to vector<128xf32>
      %64 = vector.shape_cast %63 : vector<128xf32> to vector<128x1xf32>
      %65 = tpu.reciprocal %64 {approx = true} : vector<128x1xf32> -> vector<128x1xf32>
      %66 = vector.broadcast %65 : vector<128x1xf32> to vector<128x128xf32>
      %67 = arith.mulf %62, %66 : vector<128x128xf32>
      %c0_36 = arith.constant 0 : index
      %c0_37 = arith.constant 0 : index
      %68 = vector.load %arg10[%c0_36, %c0_37] : memref<128x128xf32, #tpu.memory_space<vmem>>, vector<128x128xf32>
      tpu.vector_store %arg10[%c0_36, %c0_37], %67 {strides = array<i32>} : memref<128x128xf32, #tpu.memory_space<vmem>>, vector<128x128xf32>,
    } else {
    }
    return
  }
  func.func @transform_0(%arg0: i32) -> (i32, i32) {
    %c0_i32 = arith.constant 0 : i32
    %c0_i32_0 = arith.constant 0 : i32
    return %c0_i32, %arg0 : i32, i32
  }
  func.func @transform_1(%arg0: i32) -> (i32, i32) {
    %c0_i32 = arith.constant 0 : i32
    %c0_i32_0 = arith.constant 0 : i32
    return %c0_i32, %arg0 : i32, i32
  }
  func.func @transform_2(%arg0: i32) -> (i32, i32) {
    %c0_i32 = arith.constant 0 : i32
    %c0_i32_0 = arith.constant 0 : i32
    return %arg0, %c0_i32 : i32, i32
  }
  func.func @transform_3(%arg0: i32) -> (i32, i32) {
    %c0_i32 = arith.constant 0 : i32
    %c0_i32_0 = arith.constant 0 : i32
    %c0_i32_1 = arith.constant 0 : i32
    return %c0_i32, %c0_i32_0 : i32, i32
  }
  func.func @transform_4(%arg0: i32) -> (i32, i32) {
    %c0_i32 = arith.constant 0 : i32
    %c0_i32_0 = arith.constant 0 : i32
    %c0_i32_1 = arith.constant 0 : i32
    return %c0_i32, %c0_i32_0 : i32, i32
  }
  func.func @transform_5(%arg0: i32) -> (i32, i32) {
    %c0_i32 = arith.constant 0 : i32
    %c0_i32_0 = arith.constant 0 : i32
    %c0_i32_1 = arith.constant 0 : i32
    return %c0_i32, %c0_i32_0 : i32, i32
  }
  func.func @transform_6(%arg0: i32) -> (i32, i32) {
    %c0_i32 = arith.constant 0 : i32
    %c0_i32_0 = arith.constant 0 : i32
    %c0_i32_1 = arith.constant 0 : i32
    return %c0_i32, %c0_i32_0 : i32, i32
  }
  func.func @transform_7(%arg0: i32) -> (i32, i32) {
    %c0_i32 = arith.constant 0 : i32
    %c0_i32_0 = arith.constant 0 : i32
    %c0_i32_1 = arith.constant 0 : i32
    return %c0_i32, %c0_i32_0 : i32, i32
  }
  func.func @transform_8(%arg0: i32) -> (i32, i32) {
    %c0_i32 = arith.constant 0 : i32
    %c0_i32_0 = arith.constant 0 : i32
    %c0_i32_1 = arith.constant 0 : i32
    return %c0_i32, %c0_i32_0 : i32, i32
  }
  func.func @transform_9(%arg0: i32) -> (i32, i32) {
    %c0_i32 = arith.constant 0 : i32
    %c0_i32_0 = arith.constant 0 : i32
    %c0_i32_1 = arith.constant 0 : i32
    return %c0_i32, %c0_i32_0 : i32, i32
  }
}

</mosaic_0001>

<bundles_post_ra>
// kernel: tpu_custom_call.1
= control target key start
LH: loop header
LB: loop body
LE: loop exit
PB: predicated region body
PF: predicated region fallthrough
CT: control target
= control target key end

     0   :  { %s5198_s0 = inlined_call_operand.hbm [shape: f32[128,512], index: 0, kind: input, shape index: {}]   ;;  %s5199_s1 = inlined_call_operand.hbm [shape: f32[1,512], index: 1, kind: input, shape index: {}]   ;;  %s5200_s2 = inlined_call_operand.hbm [shape: bf16[512,512], index: 2, kind: input, shape index: {}]   ;;  %s5201_s3 = inlined_call_operand.hbm [shape: bf16[512,256], index: 3, kind: input, shape index: {}]   ;;  %s5202_s4 = inlined_call_operand.vmem [shape: f32[1,256], index: 4, kind: input, shape index: {}]   ;;  %s5203_s5 = inlined_call_operand.vmem [shape: f32[1,256], index: 5, kind: input, shape index: {}]   ;;  %s5204_s6 = inlined_call_operand.vmem [shape: f32[1,256], index: 6, kind: input, shape index: {}]   ;;  %s5205_s7 = inlined_call_operand.hbm [shape: bf16[256,128], index: 7, kind: input, shape index: {}]   ;;  %s5206_s8 = inlined_call_operand.vmem [shape: f32[1,128], index: 8, kind: input, shape index: {}]   ;;  %s5207_s9 = inlined_call_operand.hbm [shape: f32[128,128], index: 9, kind: output, shape index: {}]  }
   0x1   :  { %5221 = sst [smem:[#allocation20_spill]] %s5199_s1 }
   0x2   :  { %5222 = sst [smem:[#allocation21_spill]] %s5201_s3 }
   0x3   :  { %14 = vsyncpa [#allocation4], 0 }
   0x4   :  { %16 = vsyncpa [#allocation4 + $0x1], 0 }
   0x5   :  { %17 = vsyncpa [#allocation7], 0 }
   0x6   :  { %19 = vsyncpa [#allocation7 + $0x1], 0 }
   0x7   :  { %20 = vsyncpa [#allocation10], 0 }
   0x8   :  { %21 = vsyncpa [#allocation5], 0  ;;  %s3974_s30 = smov 0   ;;  %s3976_s10 = smov 0  }
   0x9   :  { %s3978_s11 = smov 0   ;;  %s3980_s12 = smov 0  }
   0xa LB: > { %5223 = sst [smem:[#allocation17_spill]] %s3902_s11  ;;  %s3993_s13 = sadd.s32 4294967295, %s3906_s12   ;;  %s3906_s12 = sphi %s3980_s12, %s5245_s12   ;;  %s3902_s11 = sphi %s3978_s11, %s5247_s11   ;;  %s3898_s10 = sphi %s3976_s10, %s5249_s10   ;;  %s3894_s30 = sphi %s3974_s30, %s5248_s30  }
   0xb   : > { %p47_p0 = scmp.ne.s32.totalorder %s3898_s10, %s3894_s30  ;;  %p5208_p1 = scmp.eq.s32.totalorder %s3993_s13, 0 }
   0xc   : > { %p2990_p2 = scmp.ge.s32.totalorder %s3906_s12, 1  ;;  %p257_p3 = scmp.lt.s32.totalorder %s3906_s12, 3 }
   0xd   : > { %p4002_p5 = por %p5208_p1, %p47_p0  ;;  %s3908_s16 = smov [#allocation9]  }
   0xe   : > { %p4006_p6 = pnand %p2990_p2, %p257_p3  ;;  %s269_s17 = sshll.u32 %s3908_s16, 4  ;;  %s270_s17 = int_to_ptr.vmem [resolvable:$true] %s269_s17 }
   0xf   : > { %s5224_s14 = scalar_select %p4002_p5, 1, 0 }
  0x10   : > { %s5225_s15 = scalar_select %p4006_p6, 1, 0 }
  0x11   : > { %p3343_p7 = pneg %p4006_p6  ;;  %s4019_s19 = sadd.s32 1, %s3906_s12  }
  0x12   : > { %5227 = sst [smem:[#allocation18_spill]] %s4019_s19  ;;  %s34_s20 = sadd.s32 1, %s3902_s11 }
  0x13   : > { %p4014_p8 = pnand %p3343_p7, %p5208_p1  ;;  %s31_s21 = ssub.s32 %s3906_s12, %s4019_s19 }
  0x14   : > { %s5228_s3 = sld [smem:[#allocation21_spill]] }
  0x15   : > { %s5226_s18 = scalar_select %p4014_p8, 1, 0 }
  0x16   : > { %p5211_p10 = pneg %p4014_p8 }
  0x1a   : > { %s3688_s24 = scalar_lea.hbm %s5228_s3, 8192 }
  0x1b   : > { %p3689_p9 = scmp.ne.s32.totalorder %s5228_s3, %s3688_s24  ;;  %p3695_p13 = scmp.lt.u32.totalorder %s3688_s24, %s5228_s3 }
  0x1d   : > { %p3691_p11 = pnand %p5211_p10, %p3689_p9 }
  0x1f   : > { %p3692_p12 = pneg %p3691_p11 }
  0x21   : > { %p3697_p0 = pnand %p3695_p13, %p3692_p12 }
  0x23   : > { %3700 = shalt.err (!%p3697_p0)
}
  0x24   : > { %s3701_s29 = scalar_lea.vmem %s270_s17, 8192  ;;  %p3709_p4 = scmp.lt.s32.totalorder %s270_s17, %s270_s17 }
  0x25   : > { %p3702_p2 = scmp.ne.s32.totalorder %s270_s17, %s3701_s29  ;;  %p3710_p1 = scmp.lt.s32.totalorder %s3701_s29, %s3701_s29 }
  0x27   : > { %p3704_p3 = pnand %p3702_p2, %p5211_p10  ;;  %p3711_p5 = por %p3710_p1, %p3709_p4 }
  0x29   : > { %p3705_p7 = pneg %p3704_p3 }
  0x2b   : > { %p3712_p6 = pnand %p3711_p5, %p3705_p7 }
  0x2d   : > { %3715 = shalt.err (!%p3712_p6)
}
  0x2e   : > { %s3909_s30 = smov 128   ;;  %s3910_s16 = smov 8  }
  0x2f   : > { %3346 = dma.hbm_to_vmem [thread:$0]  (!%p4014_p8), %s5228_s3, 8192, %s270_s17, [#allocation10], %s3909_s30, %s3909_s30, %s3910_s16  }
  0x30   : > { %p32_p9 = scmp.eq.s32.totalorder %s31_s21, 0  ;;  %p41_p1 = scmp.ne.s32.totalorder %s3902_s11, %s3898_s10 }
  0x31   : > { %p42_p4 = scmp.eq.s32.totalorder %s3906_s12, 0  ;;  %p3362_p5 = scmp.lt.s32.totalorder %s3906_s12, 2 }
  0x32   : > { %s4051_s24 = scalar_select %p32_p9, %s3902_s11, %s34_s20  }
  0x33   : > { %p43_p6 = por %p42_p4, %p41_p1  ;;  %s4054_s25 = sand.u32 1, %s3902_s11  }
  0x34   : > { %5229 = sst [smem:[#allocation19_spill]] %s4051_s24  ;;  %s329_s27 = sand.u32 1, %s3906_s12  }
  0x35   : > { %p4058_p11 = pnand %p3362_p5, %p43_p6  ;;  %s2997_s17 = sshll.u32 %s4054_s25, 1 }
  0x36   : > { %s3162_s21 = sshll.u32 %s3906_s12, 5  ;;  %s5231_s1 = sld [smem:[#allocation20_spill]] }
  0x37   : > { %s5230_s28 = scalar_select %p4058_p11, 1, 0 }
  0x38   : > { %s333_s16 = scalar_lea.vmem [#allocation6], %s2997_s17  ;;  %s4072_s26 = scalar_lea.sflag [#allocation7], %s329_s27 }
  0x39   : > { %s341_s22 = sshll.u32 %s333_s16, 4  ;;  %p4078_p13 = pneg %p4058_p11  ;;  %s4069_s22 = int_to_ptr.vmem [resolvable:$true] %s341_s22 }
  0x3b   : > { %s5232_s24 = scalar_select %p4078_p13, 1, 0 }
  0x3c   : > { %s4067_s20 = scalar_lea.hbm %s5231_s1, %s3162_s21  ;;  %s3721_s17 = scalar_lea.hbm %s5231_s1, 64 }
  0x3d   : > { %s3716_s3 = scalar_lea.hbm %s4067_s20, 32  ;;  %p3722_p3 = scmp.lt.u32.totalorder %s4067_s20, %s5231_s1 }
  0x3e   : > { %p3717_p12 = scmp.ne.s32.totalorder %s4067_s20, %s3716_s3  ;;  %p3723_p7 = scmp.lt.u32.totalorder %s3721_s17, %s3716_s3 }
  0x3f   : > { %p3725_p1 = scmp.lt.u32.totalorder %s3716_s3, %s4067_s20 }
  0x40   : > { %p3719_p0 = pnand %p4078_p13, %p3717_p12  ;;  %p3724_p9 = por %p3723_p7, %p3722_p3 }
  0x42   : > { %p3720_p2 = pneg %p3719_p0  ;;  %p3726_p4 = por %p3725_p1, %p3724_p9 }
  0x44   : > { %p3727_p5 = pnand %p3726_p4, %p3720_p2 }
  0x46   : > { %3730 = shalt.err (!%p3727_p5)
}
  0x47   : > { %s3731_s27 = scalar_lea.vmem %s4069_s22, 32  ;;  %s3911_s21 = smov [#allocation6]  }
  0x48   : > { %p3732_p6 = scmp.ne.s32.totalorder %s4069_s22, %s3731_s27  ;;  %s3736_s29 = sshll.u32 %s3911_s21, 4  ;;  %s3737_s29 = int_to_ptr.vmem [resolvable:$false] %s3736_s29 }
  0x49   : > { %s3738_s30 = scalar_lea.vmem %s3737_s29, 64  ;;  %p3739_p10 = scmp.lt.s32.totalorder %s4069_s22, %s3737_s29 }
  0x4a   : > { %p3734_p12 = pnand %p3732_p6, %p4078_p13  ;;  %p3740_p8 = scmp.lt.s32.totalorder %s3738_s30, %s3731_s27 }
  0x4c   : > { %p3735_p0 = pneg %p3734_p12  ;;  %p3741_p3 = por %p3740_p8, %p3739_p10 }
  0x4e   : > { %p3742_p7 = pnand %p3741_p3, %p3735_p0 }
  0x50   : > { %3745 = shalt.err (!%p3742_p7)
}
  0x51   : > { %3356 = dma.hbm_to_vmem [thread:$0]  (!%p4058_p11), %s4067_s20, 32, %s4069_s22, %s4072_s26  }
  0x52   : > { %s3912_s3 = smov [#allocation11]   ;;  %s3746_s21 = scalar_lea.hbm %s5205_s7, 2048 }
  0x53   : > { %s291_s17 = sshll.u32 %s3912_s3, 4  ;;  %p3747_p8 = scmp.ne.s32.totalorder %s5205_s7, %s3746_s21  ;;  %s292_s17 = int_to_ptr.vmem [resolvable:$true] %s291_s17 }
  0x54   : > { %p5233_p10 = scmp.ne.s32.totalorder %s5226_s18, 0  ;;  %p3753_p4 = scmp.lt.u32.totalorder %s3746_s21, %s5205_s7 }
  0x56   : > { %p5234_p2 = pneg %p5233_p10 }
  0x58   : > { %p3749_p9 = pnand %p3747_p8, %p5234_p2 }
  0x5a   : > { %p3750_p1 = pneg %p3749_p9 }
  0x5c   : > { %p3755_p5 = pnand %p3753_p4, %p3750_p1 }
  0x5e   : > { %3758 = shalt.err (!%p3755_p5)
}
  0x5f   : > { %s3759_s20 = scalar_lea.vmem %s292_s17, 2048  ;;  %p5235_p12 = pmov %p5234_p2 }
  0x60   : > { %p3760_p6 = scmp.ne.s32.totalorder %s292_s17, %s3759_s20  ;;  %p3767_p7 = scmp.lt.s32.totalorder %s292_s17, %s292_s17 }
  0x61   : > { %p3768_p11 = scmp.lt.s32.totalorder %s3759_s20, %s3759_s20 }
  0x62   : > { %p3762_p0 = pnand %p3760_p6, %p5235_p12 }
  0x63   : > { %p3769_p13 = por %p3768_p11, %p3767_p7 }
  0x64   : > { %p3763_p3 = pneg %p3762_p0 }
  0x66   : > { %p3770_p2 = pnand %p3769_p13, %p3763_p3 }
  0x68   : > { %3773 = shalt.err (!%p3770_p2)
}
  0x69   : > { %s3913_s1 = smov 64   ;;  %s3914_s22 = smov 4  }
  0x6a   : > { %3349 = dma.hbm_to_vmem [thread:$0]  (!%p5233_p10), %s5205_s7, 2048, %s292_s17, [#allocation10], %s3913_s1, %s3913_s1, %s3914_s22  }
  0x6b   : > { %s3161_s16 = sshll.u32 %s3906_s12, 8  ;;  %s5236_s30 = sshll.u32 %s4054_s25, 8 }
  0x6c   : > { %s4126_s27 = scalar_lea.hbm %s5198_s0, %s3161_s16  ;;  %s312_s20 = scalar_lea.vmem [#allocation3], %s5236_s30 }
  0x6d   : > { %s319_s11 = sshll.u32 %s312_s20, 4  ;;  %s309_s18 = scalar_lea.sflag [#allocation4], %s4054_s25  ;;  %s4130_s11 = int_to_ptr.vmem [resolvable:$true] %s319_s11 }
  0x6e   : > { %s3774_s19 = scalar_lea.hbm %s4126_s27, 4096  ;;  %p5237_p13 = scmp.ne.s32.totalorder %s5232_s24, 0 }
  0x6f   : > { %p3775_p11 = scmp.ne.s32.totalorder %s4126_s27, %s3774_s19  ;;  %s3779_s22 = scalar_lea.hbm %s5198_s0, 8192 }
  0x70   : > { %p3780_p9 = scmp.lt.u32.totalorder %s4126_s27, %s5198_s0  ;;  %p3781_p1 = scmp.lt.u32.totalorder %s3779_s22, %s3774_s19 }
  0x71   : > { %p3777_p8 = pnand %p3775_p11, %p5237_p13  ;;  %p3783_p5 = scmp.lt.u32.totalorder %s3774_s19, %s4126_s27 }
  0x72   : > { %p3782_p4 = por %p3781_p1, %p3780_p9 }
  0x73   : > { %p3778_p10 = pneg %p3777_p8 }
  0x74   : > { %p3784_p6 = por %p3783_p5, %p3782_p4 }
  0x76   : > { %p3785_p12 = pnand %p3784_p6, %p3778_p10 }
  0x78   : > { %3788 = shalt.err (!%p3785_p12)
}
  0x79   : > { %s3789_s16 = scalar_lea.vmem %s4130_s11, 4096  ;;  %s3915_s21 = smov [#allocation3]  }
  0x7a   : > { %p3790_p0 = scmp.ne.s32.totalorder %s4130_s11, %s3789_s16  ;;  %s3794_s29 = sshll.u32 %s3915_s21, 4  ;;  %s3795_s29 = int_to_ptr.vmem [resolvable:$false] %s3794_s29 }
  0x7b   : > { %s3796_s30 = scalar_lea.vmem %s3795_s29, 8192  ;;  %p3797_p2 = scmp.lt.s32.totalorder %s4130_s11, %s3795_s29 }
  0x7c   : > { %p3792_p3 = pnand %p3790_p0, %p5237_p13  ;;  %p3798_p11 = scmp.lt.s32.totalorder %s3796_s30, %s3789_s16 }
  0x7e   : > { %p3793_p7 = pneg %p3792_p3  ;;  %p3799_p8 = por %p3798_p11, %p3797_p2 }
  0x80   : > { %p3800_p9 = pnand %p3799_p8, %p3793_p7 }
  0x82   : > { %3803 = shalt.err (!%p3800_p9)
}
  0x83   : > { %s3916_s19 = smov 512   ;;  %s3917_s20 = smov 256  }
  0x84   : > { %s3918_s17 = smov 16   ;;  %p5238_p10 = scmp.ne.s32.totalorder %s5230_s28, 0 }
  0x85   : > { %s3164_s1 = sshll.u32 %s3906_s12, 13  ;;  %s5239_s16 = sshll.u32 %s4054_s25, 9 }
  0x86   : > { %3353 = dma.hbm_to_vmem [thread:$0]  (!%p5238_p10), %s4126_s27, 4096, %s4130_s11, %s309_s18, %s3916_s19, %s3917_s20, %s3918_s17  }
  0x87   : > { %s4162_s3 = scalar_lea.hbm %s5200_s2, %s3164_s1  ;;  %s352_s21 = scalar_lea.vmem [#allocation8], %s5239_s16 }
  0x88   : > { %s360_s29 = sshll.u32 %s352_s21, 4  ;;  %s3804_s30 = scalar_lea.hbm %s4162_s3, 8192  ;;  %s4166_s29 = int_to_ptr.vmem [resolvable:$true] %s360_s29 }
  0x89   : > { %p3805_p1 = scmp.ne.s32.totalorder %s4162_s3, %s3804_s30  ;;  %s3809_s27 = scalar_lea.hbm %s5200_s2, 16384 }
  0x8a   : > { %p3810_p6 = scmp.lt.u32.totalorder %s4162_s3, %s5200_s2  ;;  %p3811_p12 = scmp.lt.u32.totalorder %s3809_s27, %s3804_s30 }
  0x8b   : > { %p3807_p4 = pnand %p3805_p1, %p5237_p13  ;;  %p3813_p3 = scmp.lt.u32.totalorder %s3804_s30, %s4162_s3 }
  0x8c   : > { %p3812_p0 = por %p3811_p12, %p3810_p6 }
  0x8d   : > { %p3808_p5 = pneg %p3807_p4 }
  0x8e   : > { %p3814_p7 = por %p3813_p3, %p3812_p0 }
  0x90   : > { %p3815_p2 = pnand %p3814_p7, %p3808_p5 }
  0x92   : > { %3818 = shalt.err (!%p3815_p2)
}
  0x93   : > { %s3819_s25 = scalar_lea.vmem %s4166_s29, 8192  ;;  %s3919_s1 = smov [#allocation8]  }
  0x94   : > { %p3820_p11 = scmp.ne.s32.totalorder %s4166_s29, %s3819_s25  ;;  %s3824_s22 = sshll.u32 %s3919_s1, 4  ;;  %s3825_s22 = int_to_ptr.vmem [resolvable:$false] %s3824_s22 }
  0x95   : > { %s3826_s23 = scalar_lea.vmem %s3825_s22, 16384  ;;  %p3827_p1 = scmp.lt.s32.totalorder %s4166_s29, %s3825_s22 }
  0x96   : > { %p3822_p8 = pnand %p3820_p11, %p5237_p13  ;;  %p3828_p4 = scmp.lt.s32.totalorder %s3826_s23, %s3819_s25 }
  0x98   : > { %p3823_p9 = pneg %p3822_p8  ;;  %p3829_p6 = por %p3828_p4, %p3827_p1 }
  0x9a   : > { %p3830_p12 = pnand %p3829_p6, %p3823_p9 }
  0x9c   : > { %3833 = shalt.err (!%p3830_p12)
}
  0x9d   : > { %3359 = dma.hbm_to_vmem [thread:$0]  (!%p5238_p10), %s4162_s3, 8192, %s4166_s29, %s4072_s26, %s3917_s20, %s3917_s20, %s3918_s17  }
  0x9e   : > { %p5240_p13 = scmp.ne.s32.totalorder %s5225_s15, 0 }
  0x9f   : > { %s374_s24 = sand.u32 (!%p5240_p13), 1, %s3898_s10   ;;  %p5241_p5 = scmp.ne.s32.totalorder (!%p5240_p13), %s5224_s14, 0 }
  0xa0   : > { %372 = sbr.rel (%p5240_p13) target bundleno = 1625 (0x659), region = 56  ;;  %s3005_s16 = sshll.u32 (!%p5240_p13), %s374_s24, 8 }
  0xa1   : > { %s375_s21 = scalar_lea.sflag (!%p5240_p13), [#allocation4], %s374_s24  ;;  %s4196_s30 = scalar_lea.vmem (!%p5240_p13), [#allocation3], %s3005_s16 }
  0xa7   : > { %3877 = dma.done.wait (%p5241_p5), %s375_s21, 4096  }
  0xa8   : > { %3879 = vsyncadd (%p5241_p5), %s375_s21, 4294963200  ;;  %s383_s28 = sand.u32 1, %s3993_s13   ;;  %s3006_s11 = sshll.u32 %s374_s24, 1 }
  0xa9   : > { %s384_s26 = scalar_lea.sflag [#allocation7], %s383_s28  ;;  %s4203_s20 = scalar_lea.vmem [#allocation6], %s3006_s11 }
  0xaa   : > { %3881 = dma.done.wait (%p5241_p5), %s384_s26, 8224  }
  0xab   : > { %3883 = vsyncadd (%p5241_p5), %s384_s26, 4294959072  ;;  %s3007_s15 = sshll.u32 %s374_s24, 9  ;;  %p5242_p10 = scmp.eq.s32.totalorder %s3993_s13, 0 }
  0xac   : > { %s4209_s17 = scalar_lea.vmem [#allocation8], %s3007_s15 }
  0xad   : > { %3885 = dma.done.wait (%p5242_p10), [#allocation10], 10240   ;;  %p5243_p0 = pmov %p5242_p10 }
  0xae   : > { %p5244_p3 = scmp.ne.s32.totalorder %s3993_s13, 0 }
  0xaf   : > { %3887 = vsyncadd (%p5243_p0), [#allocation10], 4294957056  ;;  %v3920_v0 = vmov (!%p5244_p3), 0.0  }
  0xb0   : > { %451 = sbr.rel (%p5244_p3) target bundleno = 208 (0xd0), region = 80  ;;  %452 = vst [vmem:[#allocation2] sm:$0xff] (!%p5244_p3), %v3920_v0  ;;  %453 = vst [vmem:[#allocation2 + $0x8] sm:$0xff] (!%p5244_p3), %v3920_v0 }
  0xb1   : > { %454 = vst [vmem:[#allocation2 + $0x10] sm:$0xff] (!%p5244_p3), %v3920_v0  ;;  %455 = vst [vmem:[#allocation2 + $0x18] sm:$0xff] (!%p5244_p3), %v3920_v0 }
  0xb2   : > { %456 = vst [vmem:[#allocation2 + $0x20] sm:$0xff] (!%p5244_p3), %v3920_v0  ;;  %457 = vst [vmem:[#allocation2 + $0x28] sm:$0xff] (!%p5244_p3), %v3920_v0 }
  0xb3   : > { %458 = vst [vmem:[#allocation2 + $0x30] sm:$0xff] (!%p5244_p3), %v3920_v0  ;;  %459 = vst [vmem:[#allocation2 + $0x38] sm:$0xff] (!%p5244_p3), %v3920_v0 }
  0xb4   : > { %460 = vst [vmem:[#allocation2 + $0x40] sm:$0xff] (!%p5244_p3), %v3920_v0  ;;  %461 = vst [vmem:[#allocation2 + $0x48] sm:$0xff] (!%p5244_p3), %v3920_v0 }
  0xb5   : > { %462 = vst [vmem:[#allocation2 + $0x50] sm:$0xff] (!%p5244_p3), %v3920_v0  ;;  %463 = vst [vmem:[#allocation2 + $0x58] sm:$0xff] (!%p5244_p3), %v3920_v0 }
  0xb6   : > { %464 = vst [vmem:[#allocation2 + $0x60] sm:$0xff] (!%p5244_p3), %v3920_v0  ;;  %465 = vst [vmem:[#allocation2 + $0x68] sm:$0xff] (!%p5244_p3), %v3920_v0 }
  0xb7   : > { %466 = vst [vmem:[#allocation2 + $0x70] sm:$0xff] %v3920_v0  ;;  %467 = vst [vmem:[#allocation2 + $0x78] sm:$0xff] %v3920_v0 }
  0xb8   : > { %468 = vst [vmem:[#allocation2 + $0x80] sm:$0xff] %v3920_v0  ;;  %469 = vst [vmem:[#allocation2 + $0x88] sm:$0xff] %v3920_v0 }
  0xb9   : > { %470 = vst [vmem:[#allocation2 + $0x90] sm:$0xff] %v3920_v0  ;;  %471 = vst [vmem:[#allocation2 + $0x98] sm:$0xff] %v3920_v0 }
  0xba   : > { %472 = vst [vmem:[#allocation2 + $0xa0] sm:$0xff] %v3920_v0  ;;  %473 = vst [vmem:[#allocation2 + $0xa8] sm:$0xff] %v3920_v0 }
  0xbb   : > { %474 = vst [vmem:[#allocation2 + $0xb0] sm:$0xff] %v3920_v0  ;;  %475 = vst [vmem:[#allocation2 + $0xb8] sm:$0xff] %v3920_v0 }
  0xbc   : > { %476 = vst [vmem:[#allocation2 + $0xc0] sm:$0xff] %v3920_v0  ;;  %477 = vst [vmem:[#allocation2 + $0xc8] sm:$0xff] %v3920_v0 }
  0xbd   : > { %478 = vst [vmem:[#allocation2 + $0xd0] sm:$0xff] %v3920_v0  ;;  %479 = vst [vmem:[#allocation2 + $0xd8] sm:$0xff] %v3920_v0 }
  0xbe   : > { %480 = vst [vmem:[#allocation2 + $0xe0] sm:$0xff] %v3920_v0  ;;  %481 = vst [vmem:[#allocation2 + $0xe8] sm:$0xff] %v3920_v0 }
  0xbf   : > { %482 = vst [vmem:[#allocation2 + $0xf0] sm:$0xff] %v3920_v0  ;;  %483 = vst [vmem:[#allocation2 + $0xf8] sm:$0xff] %v3920_v0 }
  0xc0   : > { %484 = vst [vmem:[#allocation2 + $0x100] sm:$0xff] %v3920_v0  ;;  %485 = vst [vmem:[#allocation2 + $0x108] sm:$0xff] %v3920_v0 }
  0xc1   : > { %486 = vst [vmem:[#allocation2 + $0x110] sm:$0xff] %v3920_v0  ;;  %487 = vst [vmem:[#allocation2 + $0x118] sm:$0xff] %v3920_v0 }
  0xc2   : > { %488 = vst [vmem:[#allocation2 + $0x120] sm:$0xff] %v3920_v0  ;;  %489 = vst [vmem:[#allocation2 + $0x128] sm:$0xff] %v3920_v0 }
  0xc3   : > { %490 = vst [vmem:[#allocation2 + $0x130] sm:$0xff] %v3920_v0  ;;  %491 = vst [vmem:[#allocation2 + $0x138] sm:$0xff] %v3920_v0 }
  0xc4   : > { %492 = vst [vmem:[#allocation2 + $0x140] sm:$0xff] %v3920_v0  ;;  %493 = vst [vmem:[#allocation2 + $0x148] sm:$0xff] %v3920_v0 }
  0xc5   : > { %494 = vst [vmem:[#allocation2 + $0x150] sm:$0xff] %v3920_v0  ;;  %495 = vst [vmem:[#allocation2 + $0x158] sm:$0xff] %v3920_v0 }
  0xc6   : > { %496 = vst [vmem:[#allocation2 + $0x160] sm:$0xff] %v3920_v0  ;;  %497 = vst [vmem:[#allocation2 + $0x168] sm:$0xff] %v3920_v0 }
  0xc7   : > { %498 = vst [vmem:[#allocation2 + $0x170] sm:$0xff] %v3920_v0  ;;  %499 = vst [vmem:[#allocation2 + $0x178] sm:$0xff] %v3920_v0 }
  0xc8   : > { %500 = vst [vmem:[#allocation2 + $0x180] sm:$0xff] %v3920_v0  ;;  %501 = vst [vmem:[#allocation2 + $0x188] sm:$0xff] %v3920_v0 }
  0xc9   : > { %502 = vst [vmem:[#allocation2 + $0x190] sm:$0xff] %v3920_v0  ;;  %503 = vst [vmem:[#allocation2 + $0x198] sm:$0xff] %v3920_v0 }
  0xca   : > { %504 = vst [vmem:[#allocation2 + $0x1a0] sm:$0xff] %v3920_v0  ;;  %505 = vst [vmem:[#allocation2 + $0x1a8] sm:$0xff] %v3920_v0 }
  0xcb   : > { %506 = vst [vmem:[#allocation2 + $0x1b0] sm:$0xff] %v3920_v0  ;;  %507 = vst [vmem:[#allocation2 + $0x1b8] sm:$0xff] %v3920_v0 }
  0xcc   : > { %508 = vst [vmem:[#allocation2 + $0x1c0] sm:$0xff] %v3920_v0  ;;  %509 = vst [vmem:[#allocation2 + $0x1c8] sm:$0xff] %v3920_v0 }
  0xcd   : > { %510 = vst [vmem:[#allocation2 + $0x1d0] sm:$0xff] %v3920_v0  ;;  %511 = vst [vmem:[#allocation2 + $0x1d8] sm:$0xff] %v3920_v0 }
  0xce   : > { %512 = vst [vmem:[#allocation2 + $0x1e0] sm:$0xff] %v3920_v0  ;;  %513 = vst [vmem:[#allocation2 + $0x1e8] sm:$0xff] %v3920_v0 }
  0xcf   : > { %514 = vst [vmem:[#allocation2 + $0x1f0] sm:$0xff] %v3920_v0  ;;  %515 = vst [vmem:[#allocation2 + $0x1f8] sm:$0xff] %v3920_v0 }
  0xd0 PF: > { %v3412_v1 = vld [vmem:[%s4209_s17 + $0x4] ss:$16 sps:$4 sm:$0xff]   ;;  %v3414_v2 = vld [vmem:[%s4209_s17 + $0xc] ss:$16 sps:$4 sm:$0xff]   ;;  %v3416_v3 = vld [vmem:[%s4209_s17] ss:$16 sps:$4 sm:$0xff]   ;;  %v550_v38 = vlaneseq }
  0xd1   : > { %1056 = vmatprep.subr.bf16.mxu0 %v3412_v1  ;;  %v3417_v4 = vld [vmem:[%s4209_s17 + $0x8] ss:$16 sps:$4 sm:$0xff]   ;;  %1169 = vmatprep.subr.bf16.mxu1 %v3414_v2  ;;  %v3418_v5 = vld [vmem:[%s4209_s17 + $0x24] ss:$16 sps:$4 sm:$0xff]   ;;  %v3420_v6 = vld [vmem:[%s4209_s17 + $0x2c] ss:$16 sps:$4 sm:$0xff]  }
  0xd2   : > { %1057 = vmatpush1.bf16.msra.mxu0 %v3416_v3  ;;  %1170 = vmatpush1.bf16.msra.mxu1 %v3417_v4  ;;  %v3422_v7 = vld [vmem:[%s4209_s17 + $0x20] ss:$16 sps:$4 sm:$0xff]   ;;  %v3423_v8 = vld [vmem:[%s4209_s17 + $0x28] ss:$16 sps:$4 sm:$0xff]   ;;  %v3424_v9 = vld [vmem:[%s4209_s17 + $0x44] ss:$16 sps:$4 sm:$0xff]  }
  0xd3   : > { %1058 = vmatprep.subr.bf16.mxu0 %v3418_v5  ;;  %1171 = vmatprep.subr.bf16.mxu1 %v3420_v6  ;;  %v3426_v10 = vld [vmem:[%s4209_s17 + $0x4c] ss:$16 sps:$4 sm:$0xff]   ;;  %v3428_v11 = vld [vmem:[%s4209_s17 + $0x40] ss:$16 sps:$4 sm:$0xff]   ;;  %v3429_v12 = vld [vmem:[%s4209_s17 + $0x48] ss:$16 sps:$4 sm:$0xff]  }
  0xd4   : > { %v3430_v13 = vld [vmem:[%s4209_s17 + $0x64] ss:$16 sps:$4 sm:$0xff]   ;;  %v3432_v14 = vld [vmem:[%s4209_s17 + $0x6c] ss:$16 sps:$4 sm:$0xff]   ;;  %v3434_v15 = vld [vmem:[%s4209_s17 + $0x60] ss:$16 sps:$4 sm:$0xff]  }
  0xd5   : > { %v3435_v16 = vld [vmem:[%s4209_s17 + $0x68] ss:$16 sps:$4 sm:$0xff]   ;;  %v3436_v17 = vld [vmem:[%s4209_s17 + $0x84] ss:$16 sps:$4 sm:$0xff]   ;;  %v3438_v18 = vld [vmem:[%s4209_s17 + $0x8c] ss:$16 sps:$4 sm:$0xff]  }
  0xd6   : > { %1059 = vmatpush1.bf16.msra.mxu0 %v3422_v7  ;;  %1172 = vmatpush1.bf16.msra.mxu1 %v3423_v8  ;;  %v3440_v19 = vld [vmem:[%s4209_s17 + $0x80] ss:$16 sps:$4 sm:$0xff]   ;;  %v3441_v20 = vld [vmem:[%s4209_s17 + $0x88] ss:$16 sps:$4 sm:$0xff]   ;;  %v3442_v21 = vld [vmem:[%s4209_s17 + $0xa4] ss:$16 sps:$4 sm:$0xff]  }
  0xd7   : > { %1060 = vmatprep.subr.bf16.mxu0 %v3424_v9  ;;  %1173 = vmatprep.subr.bf16.mxu1 %v3426_v10  ;;  %v3444_v22 = vld [vmem:[%s4209_s17 + $0xac] ss:$16 sps:$4 sm:$0xff]   ;;  %v3446_v23 = vld [vmem:[%s4209_s17 + $0xa0] ss:$16 sps:$4 sm:$0xff]   ;;  %v3447_v24 = vld [vmem:[%s4209_s17 + $0xa8] ss:$16 sps:$4 sm:$0xff]  }
  0xd8   : > { %v3448_v25 = vld [vmem:[%s4209_s17 + $0xc4] ss:$16 sps:$4 sm:$0xff]   ;;  %v3450_v26 = vld [vmem:[%s4209_s17 + $0xcc] ss:$16 sps:$4 sm:$0xff]   ;;  %v3452_v27 = vld [vmem:[%s4209_s17 + $0xc0] ss:$16 sps:$4 sm:$0xff]  }
  0xd9   : > { %v3453_v28 = vld [vmem:[%s4209_s17 + $0xc8] ss:$16 sps:$4 sm:$0xff]   ;;  %v3454_v29 = vld [vmem:[%s4209_s17 + $0xe4] ss:$16 sps:$4 sm:$0xff]   ;;  %v3456_v30 = vld [vmem:[%s4209_s17 + $0xec] ss:$16 sps:$4 sm:$0xff]  }
  0xda   : > { %1061 = vmatpush1.bf16.msra.mxu0 %v3428_v11  ;;  %1174 = vmatpush1.bf16.msra.mxu1 %v3429_v12  ;;  %v3458_v31 = vld [vmem:[%s4209_s17 + $0xe0] ss:$16 sps:$4 sm:$0xff]   ;;  %v3459_v32 = vld [vmem:[%s4209_s17 + $0xe8] ss:$16 sps:$4 sm:$0xff]   ;;  %v3460_v33 = vld [vmem:[%s4209_s17 + $0x104] ss:$16 sps:$4 sm:$0xff]  }
  0xdb   : > { %1062 = vmatprep.subr.bf16.mxu0 %v3430_v13  ;;  %1175 = vmatprep.subr.bf16.mxu1 %v3432_v14  ;;  %v3462_v34 = vld [vmem:[%s4209_s17 + $0x10c] ss:$16 sps:$4 sm:$0xff]   ;;  %v3464_v35 = vld [vmem:[%s4209_s17 + $0x100] ss:$16 sps:$4 sm:$0xff]   ;;  %v3465_v36 = vld [vmem:[%s4209_s17 + $0x108] ss:$16 sps:$4 sm:$0xff]  }
  0xdc   : > { %v3466_v37 = vld [vmem:[%s4209_s17 + $0x124] ss:$16 sps:$4 sm:$0xff]   ;;  %v3468_v39 = vld [vmem:[%s4209_s17 + $0x12c] ss:$16 sps:$4 sm:$0xff]   ;;  %v3470_v40 = vld [vmem:[%s4209_s17 + $0x120] ss:$16 sps:$4 sm:$0xff]  }
  0xdd   : > { %v3471_v41 = vld [vmem:[%s4209_s17 + $0x128] ss:$16 sps:$4 sm:$0xff]   ;;  %v3472_v42 = vld [vmem:[%s4209_s17 + $0x144] ss:$16 sps:$4 sm:$0xff]   ;;  %v551_v43 = vshrl.u32 %v550_v38, 7  ;;  %v516_v10 = vld [vmem:[%s4196_s30] sm:$0xff] }
  0xde   : > { %1063 = vmatpush1.bf16.msra.mxu0 %v3434_v15  ;;  %1176 = vmatpush1.bf16.msra.mxu1 %v3435_v16  ;;  %v3474_v44 = vld [vmem:[%s4209_s17 + $0x14c] ss:$16 sps:$4 sm:$0xff]   ;;  %v3476_v45 = vld [vmem:[%s4209_s17 + $0x140] ss:$16 sps:$4 sm:$0xff]   ;;  %v3477_v46 = vld [vmem:[%s4209_s17 + $0x148] ss:$16 sps:$4 sm:$0xff]  }
  0xdf   : > { %1064 = vmatprep.subr.bf16.mxu0 %v3436_v17  ;;  %1177 = vmatprep.subr.bf16.mxu1 %v3438_v18  ;;  %v3478_v47 = vld [vmem:[%s4209_s17 + $0x164] ss:$16 sps:$4 sm:$0xff]   ;;  %v4327_v48 = vsub.s32 1, %v551_v43  ;;  %v3480_v49 = vld [vmem:[%s4209_s17 + $0x16c] ss:$16 sps:$4 sm:$0xff]   ;;  %v4346_v1 = vsub.s32 0, %v551_v43 }
  0xe0   : > { %v517_v50 = vld [vmem:[%s4196_s30 + $0x8] sm:$0xff]  ;;  %v519_v51 = vld [vmem:[%s4196_s30 + $0x18] sm:$0xff]  ;;  %v548_v52 = vld [vmem:[%s4203_s20] sm:$0x3]  ;;  %p3075_p7 = scmp.ne.s32.totalorder %s3993_s13, 1 }
  0xe1   : > { %v3482_v53 = vld [vmem:[%s4209_s17 + $0x160] ss:$16 sps:$4 sm:$0xff]   ;;  %v3483_v54 = vld [vmem:[%s4209_s17 + $0x168] ss:$16 sps:$4 sm:$0xff]   ;;  %v4336_v55 = vrot.slane %v548_v52, %v4327_v48  ;;  %v3484_v56 = vld [vmem:[%s4209_s17 + $0x184] ss:$16 sps:$4 sm:$0xff]   ;;  %v4355_v8 = vrot.slane %v548_v52, %v4346_v1 }
  0xe2   : > { %1065 = vmatpush1.bf16.msra.mxu0 %v3440_v19  ;;  %1178 = vmatpush1.bf16.msra.mxu1 %v3441_v20  ;;  %v3486_v57 = vld [vmem:[%s4209_s17 + $0x18c] ss:$16 sps:$4 sm:$0xff]   ;;  %v3488_v60 = vld [vmem:[%s4209_s17 + $0x180] ss:$16 sps:$4 sm:$0xff]   ;;  %v3489_v61 = vld [vmem:[%s4209_s17 + $0x188] ss:$16 sps:$4 sm:$0xff]  }
  0xe3   : > { %1066 = vmatprep.subr.bf16.mxu0 %v3442_v21  ;;  %1179 = vmatprep.subr.bf16.mxu1 %v3444_v22  ;;  %v561_v58 = vsub.f32 %v517_v50, %v4336_v55  ;;  %v563_v59 = vsub.f32 %v519_v51, %v4336_v55  ;;  %v3490_v63 = vld [vmem:[%s4209_s17 + $0x1a4] ss:$16 sps:$4 sm:$0xff]   ;;  %v3492_v0 = vld [vmem:[%s4209_s17 + $0x1ac] ss:$16 sps:$4 sm:$0xff]   ;;  %v3494_v2 = vld [vmem:[%s4209_s17 + $0x1a0] ss:$16 sps:$4 sm:$0xff]   ;;  %v560_v15 = vsub.f32 %v516_v10, %v4355_v8 }
  0xe4   : > { %v3495_v3 = vld [vmem:[%s4209_s17 + $0x1a8] ss:$16 sps:$4 sm:$0xff]   ;;  %v3496_v4 = vld [vmem:[%s4209_s17 + $0x1c4] ss:$16 sps:$4 sm:$0xff]   ;;  %v3498_v5 = vld [vmem:[%s4209_s17 + $0x1cc] ss:$16 sps:$4 sm:$0xff]  }
  0xe5   : > { %v593_v62 = vpack.c.bf16 %v563_v59, %v561_v58  ;;  %v3500_v6 = vld [vmem:[%s4209_s17 + $0x1c0] ss:$16 sps:$4 sm:$0xff]   ;;  %v3501_v7 = vld [vmem:[%s4209_s17 + $0x1c8] ss:$16 sps:$4 sm:$0xff]   ;;  %v3502_v9 = vld [vmem:[%s4209_s17 + $0x1e4] ss:$16 sps:$4 sm:$0xff]  }
  0xe6   : > { %1067 = vmatpush1.bf16.msra.mxu0 %v3446_v23  ;;  %1180 = vmatpush1.bf16.msra.mxu1 %v3447_v24  ;;  %v518_v11 = vld [vmem:[%s4196_s30 + $0x10] sm:$0xff]  ;;  %v521_v13 = vld [vmem:[%s4196_s30 + $0x28] sm:$0xff]  ;;  %v523_v14 = vld [vmem:[%s4196_s30 + $0x38] sm:$0xff] }
  0xe7   : > { %1068 = vmatprep.subr.bf16.mxu0 %v3448_v25  ;;  %1181 = vmatprep.subr.bf16.mxu1 %v3450_v26  ;;  %v3504_v12 = vld [vmem:[%s4209_s17 + $0x1ec] ss:$16 sps:$4 sm:$0xff]   ;;  %v562_v16 = vsub.f32 %v518_v11, %v4355_v8  ;;  %v3506_v17 = vld [vmem:[%s4209_s17 + $0x1e0] ss:$16 sps:$4 sm:$0xff]   ;;  %v3507_v18 = vld [vmem:[%s4209_s17 + $0x1e8] ss:$16 sps:$4 sm:$0xff]   ;;  %v565_v19 = vsub.f32 %v521_v13, %v4336_v55  ;;  %v567_v20 = vsub.f32 %v523_v14, %v4336_v55 }
  0xe8   : > { %1088 = vmatprep.mubr.bf16.mxu0 %v593_v62  ;;  %1201 = vmatprep.mubr.bf16.mxu1 %v593_v62  ;;  %v520_v23 = vld [vmem:[%s4196_s30 + $0x20] sm:$0xff]  ;;  %v522_v24 = vld [vmem:[%s4196_s30 + $0x30] sm:$0xff]  ;;  %v525_v25 = vld [vmem:[%s4196_s30 + $0x48] sm:$0xff] }
  0xe9   : > { %v592_v21 = vpack.c.bf16 %v562_v16, %v560_v15  ;;  %v595_v22 = vpack.c.bf16 %v567_v20, %v565_v19  ;;  %v527_v26 = vld [vmem:[%s4196_s30 + $0x58] sm:$0xff]  ;;  %v537_v58 = vld [vmem:[%s4196_s30 + $0xa8] sm:$0xff]  ;;  %v540_v14 = vld [vmem:[%s4196_s30 + $0xc0] sm:$0xff] }
  0xea   : > { %1069 = vmatpush1.bf16.msra.mxu0 %v3452_v27  ;;  %1182 = vmatpush1.bf16.msra.mxu1 %v3453_v28  ;;  %v564_v27 = vsub.f32 %v520_v23, %v4355_v8  ;;  %v566_v28 = vsub.f32 %v522_v24, %v4355_v8  ;;  %v539_v59 = vld [vmem:[%s4196_s30 + $0xb8] sm:$0xff]  ;;  %v581_v62 = vsub.f32 %v537_v58, %v4336_v55  ;;  %v542_v15 = vld [vmem:[%s4196_s30 + $0xd0] sm:$0xff]  ;;  %v545_v16 = vld [vmem:[%s4196_s30 + $0xe8] sm:$0xff] }
  0xeb   : > { %1070 = vmatprep.subr.bf16.mxu0 %v3454_v29  ;;  %1183 = vmatprep.subr.bf16.mxu1 %v3456_v30  ;;  %v569_v29 = vsub.f32 %v525_v25, %v4336_v55  ;;  %v571_v30 = vsub.f32 %v527_v26, %v4336_v55  ;;  %v586_v19 = vsub.f32 %v542_v15, %v4355_v8  ;;  %v544_v24 = vld [vmem:[%s4196_s30 + $0xe0] sm:$0xff]  ;;  %v546_v25 = vld [vmem:[%s4196_s30 + $0xf0] sm:$0xff] }
  0xec   : > { %v589_v20 = vsub.f32 %v545_v16, %v4336_v55  ;;  %v588_v26 = vsub.f32 %v544_v24, %v4355_v8  ;;  %v624_v16 = vld [vmem:[#allocation2 + $0x80] sm:$0xff] }
  0xee   : > { %1071 = vmatpush1.bf16.msra.mxu0 %v3458_v31  ;;  %1184 = vmatpush1.bf16.msra.mxu1 %v3459_v32  ;;  %v594_v31 = vpack.c.bf16 %v566_v28, %v564_v27  ;;  %v597_v32 = vpack.c.bf16 %v571_v30, %v569_v29  ;;  %v590_v27 = vsub.f32 %v546_v25, %v4355_v8  ;;  %v608_v29 = vld [vmem:[#allocation2] sm:$0xff]  ;;  %v610_v30 = vld [vmem:[#allocation2 + $0x10] sm:$0xff] }
  0xef   : > { %1072 = vmatprep.subr.bf16.mxu0 %v3460_v33  ;;  %1185 = vmatprep.subr.bf16.mxu1 %v3462_v34  ;;  %v524_v33 = vld [vmem:[%s4196_s30 + $0x40] sm:$0xff]  ;;  %v526_v34 = vld [vmem:[%s4196_s30 + $0x50] sm:$0xff] }
  0xf0   : > { %v606_v28 = vpack.c.bf16 %v590_v27, %v588_v26 }
  0xf2   : > { %1073 = vmatpush1.bf16.msra.mxu0 %v3464_v35  ;;  %1186 = vmatpush1.bf16.msra.mxu1 %v3465_v36  ;;  %v529_v35 = vld [vmem:[%s4196_s30 + $0x68] sm:$0xff]  ;;  %v531_v36 = vld [vmem:[%s4196_s30 + $0x78] sm:$0xff] }
  0xf3   : > { %1074 = vmatprep.subr.bf16.mxu0 %v3466_v37  ;;  %1187 = vmatprep.subr.bf16.mxu1 %v3468_v39  ;;  %v568_v37 = vsub.f32 %v524_v33, %v4355_v8  ;;  %v570_v39 = vsub.f32 %v526_v34, %v4355_v8  ;;  %v612_v34 = vld [vmem:[#allocation2 + $0x20] sm:$0xff] }
  0xf6   : > { %1075 = vmatpush1.bf16.msra.mxu0 %v3470_v40  ;;  %1188 = vmatpush1.bf16.msra.mxu1 %v3471_v41  ;;  %v573_v40 = vsub.f32 %v529_v35, %v4336_v55  ;;  %v575_v41 = vsub.f32 %v531_v36, %v4336_v55  ;;  %v614_v35 = vld [vmem:[#allocation2 + $0x30] sm:$0xff] }
  0xf7   : > { %1076 = vmatprep.subr.bf16.mxu0 %v3472_v42  ;;  %1189 = vmatprep.subr.bf16.mxu1 %v3474_v44  ;;  %v596_v42 = vpack.c.bf16 %v570_v39, %v568_v37  ;;  %v528_v44 = vld [vmem:[%s4196_s30 + $0x60] sm:$0xff] }
  0xf8   : > { %v599_v43 = vpack.c.bf16 %v575_v41, %v573_v40  ;;  %v613_v41 = vld [vmem:[#allocation2 + $0x28] sm:$0xff] }
  0xfa   : > { %1077 = vmatpush1.bf16.msra.mxu0 %v3476_v45  ;;  %1190 = vmatpush1.bf16.msra.mxu1 %v3477_v46  ;;  %v530_v45 = vld [vmem:[%s4196_s30 + $0x70] sm:$0xff]  ;;  %v533_v46 = vld [vmem:[%s4196_s30 + $0x88] sm:$0xff] }
  0xfb   : > { %1078 = vmatprep.subr.bf16.mxu0 %v3478_v47  ;;  %1191 = vmatprep.subr.bf16.mxu1 %v3480_v49  ;;  %v535_v47 = vld [vmem:[%s4196_s30 + $0x98] sm:$0xff]  ;;  %v572_v49 = vsub.f32 %v528_v44, %v4355_v8  ;;  %v574_v50 = vsub.f32 %v530_v45, %v4355_v8  ;;  %v577_v51 = vsub.f32 %v533_v46, %v4336_v55 }
  0xfc   : > { %v579_v52 = vsub.f32 %v535_v47, %v4336_v55 }
  0xfe   : > { %1079 = vmatpush1.bf16.msra.mxu0 %v3482_v53  ;;  %1192 = vmatpush1.bf16.msra.mxu1 %v3483_v54  ;;  %v598_v53 = vpack.c.bf16 %v574_v50, %v572_v49  ;;  %v601_v54 = vpack.c.bf16 %v579_v52, %v577_v51 }
  0xff   : > { %1080 = vmatprep.subr.bf16.mxu0 %v3484_v56  ;;  %1193 = vmatprep.subr.bf16.mxu1 %v3486_v57  ;;  %v532_v56 = vld [vmem:[%s4196_s30 + $0x80] sm:$0xff]  ;;  %v534_v57 = vld [vmem:[%s4196_s30 + $0x90] sm:$0xff] }
 0x102   : > { %1081 = vmatpush1.bf16.msra.mxu0 %v3488_v60  ;;  %1194 = vmatpush1.bf16.msra.mxu1 %v3489_v61  ;;  %v576_v60 = vsub.f32 %v532_v56, %v4355_v8  ;;  %v578_v61 = vsub.f32 %v534_v57, %v4355_v8  ;;  %v617_v56 = vld [vmem:[#allocation2 + $0x48] sm:$0xff]  ;;  %v619_v57 = vld [vmem:[#allocation2 + $0x58] sm:$0xff] }
 0x103   : > { %1082 = vmatprep.subr.bf16.mxu0 %v3490_v63  ;;  %1195 = vmatprep.subr.bf16.mxu1 %v3492_v0  ;;  %v583_v63 = vsub.f32 %v539_v59, %v4336_v55 }
 0x104   : > { %v600_v0 = vpack.c.bf16 %v578_v61, %v576_v60  ;;  %v620_v60 = vld [vmem:[#allocation2 + $0x60] sm:$0xff]  ;;  %v622_v61 = vld [vmem:[#allocation2 + $0x70] sm:$0xff] }
 0x106   : > { %1083 = vmatpush1.bf16.msra.mxu0 %v3494_v2  ;;  %1196 = vmatpush1.bf16.msra.mxu1 %v3495_v3  ;;  %v603_v2 = vpack.c.bf16 %v583_v63, %v581_v62  ;;  %v536_v3 = vld [vmem:[%s4196_s30 + $0xa0] sm:$0xff] }
 0x107   : > { %1084 = vmatprep.subr.bf16.mxu0 %v3496_v4  ;;  %1197 = vmatprep.subr.bf16.mxu1 %v3498_v5  ;;  %v538_v4 = vld [vmem:[%s4196_s30 + $0xb0] sm:$0xff]  ;;  %v541_v5 = vld [vmem:[%s4196_s30 + $0xc8] sm:$0xff] }
 0x108   : > { %v585_v10 = vsub.f32 %v541_v5, %v4336_v55 }
 0x10a   : > { %1085 = vmatpush1.bf16.msra.mxu0 %v3500_v6  ;;  %1198 = vmatpush1.bf16.msra.mxu1 %v3501_v7  ;;  %v543_v6 = vld [vmem:[%s4196_s30 + $0xd8] sm:$0xff]  ;;  %v580_v7 = vsub.f32 %v536_v3, %v4355_v8  ;;  %v621_v3 = vld [vmem:[#allocation2 + $0x68] sm:$0xff] }
 0x10b   : > { %1086 = vmatprep.subr.bf16.mxu0 %v3502_v9  ;;  %1199 = vmatprep.subr.bf16.mxu1 %v3504_v12  ;;  %v582_v9 = vsub.f32 %v538_v4, %v4355_v8  ;;  %v587_v11 = vsub.f32 %v543_v6, %v4336_v55  ;;  %v623_v4 = vld [vmem:[#allocation2 + $0x78] sm:$0xff] }
 0x10d   : > { %v602_v12 = vpack.c.bf16 %v582_v9, %v580_v7  ;;  %v605_v13 = vpack.c.bf16 %v587_v11, %v585_v10 }
 0x10e   : > { %1087 = vmatpush1.bf16.msra.mxu0 %v3506_v17  ;;  %1200 = vmatpush1.bf16.msra.mxu1 %v3507_v18  ;;  %v547_v17 = vld [vmem:[%s4196_s30 + $0xf8] sm:$0xff]  ;;  %v584_v18 = vsub.f32 %v540_v14, %v4355_v8 }
 0x111   : > { %1089 = vmatmul.mubr.bf16.vlgmr.msra.gmra.mrb[0].mxu0 %v592_v21  ;;  %1202 = vmatmul.mubr.bf16.vlgmr.msra.gmra.mrb[0].mxu1 %v592_v21  ;;  %v591_v21 = vsub.f32 %v547_v17, %v4336_v55  ;;  %v626_v17 = vld [vmem:[#allocation2 + $0x90] sm:$0xff] }
 0x112   : > { %1098 = vmatprep.mubr.bf16.mxu0 %v595_v22  ;;  %1211 = vmatprep.mubr.bf16.mxu1 %v595_v22  ;;  %v604_v22 = vpack.c.bf16 %v586_v19, %v584_v18  ;;  %v625_v18 = vld [vmem:[#allocation2 + $0x88] sm:$0xff]  ;;  %v627_v19 = vld [vmem:[#allocation2 + $0x98] sm:$0xff] }
 0x113   : > { %v607_v23 = vpack.c.bf16 %v591_v21, %v589_v20 }
 0x119   : > { %1099 = vmatmul.mubr.bf16.gmra.mrb[4].mxu0 %v594_v31  ;;  %1212 = vmatmul.mubr.bf16.gmra.mrb[4].mxu1 %v594_v31  ;;  %v609_v31 = vld [vmem:[#allocation2 + $0x8] sm:$0xff] }
 0x11a   : > { %1108 = vmatprep.mubr.bf16.mxu0 %v597_v32  ;;  %1221 = vmatprep.mubr.bf16.mxu1 %v597_v32  ;;  %v611_v32 = vld [vmem:[#allocation2 + $0x18] sm:$0xff] }
 0x121   : > { %1109 = vmatmul.mubr.bf16.gmra.mrb[8].mxu0 %v596_v42  ;;  %1222 = vmatmul.mubr.bf16.gmra.mrb[8].mxu1 %v596_v42  ;;  %v615_v42 = vld [vmem:[#allocation2 + $0x38] sm:$0xff] }
 0x122   : > { %1118 = vmatprep.mubr.bf16.mxu0 %v599_v43  ;;  %1231 = vmatprep.mubr.bf16.mxu1 %v599_v43 }
 0x129   : > { %1119 = vmatmul.mubr.bf16.gmra.mrb[12].mxu0 %v598_v53  ;;  %1232 = vmatmul.mubr.bf16.gmra.mrb[12].mxu1 %v598_v53  ;;  %v616_v53 = vld [vmem:[#allocation2 + $0x40] sm:$0xff] }
 0x12a   : > { %1128 = vmatprep.mubr.bf16.mxu0 %v601_v54  ;;  %1241 = vmatprep.mubr.bf16.mxu1 %v601_v54  ;;  %v618_v54 = vld [vmem:[#allocation2 + $0x50] sm:$0xff] }
 0x131   : > { %1129 = vmatmul.mubr.bf16.gmra.mrb[16].mxu0 %v600_v0  ;;  %1242 = vmatmul.mubr.bf16.gmra.mrb[16].mxu1 %v600_v0 }
 0x132   : > { %1138 = vmatprep.mubr.bf16.mxu0 %v603_v2  ;;  %1251 = vmatprep.mubr.bf16.mxu1 %v603_v2 }
 0x139   : > { %1139 = vmatmul.mubr.bf16.gmra.mrb[20].mxu0 %v602_v12  ;;  %1252 = vmatmul.mubr.bf16.gmra.mrb[20].mxu1 %v602_v12 }
 0x13a   : > { %1148 = vmatprep.mubr.bf16.mxu0 %v605_v13  ;;  %1261 = vmatprep.mubr.bf16.mxu1 %v605_v13 }
 0x141   : > { %1149 = vmatmul.mubr.bf16.gmra.mrb[24].mxu0 %v604_v22  ;;  %1262 = vmatmul.mubr.bf16.gmra.mrb[24].mxu1 %v604_v22  ;;  %v628_v22 = vld [vmem:[#allocation2 + $0xa0] sm:$0xff] }
 0x142   : > { %1158 = vmatprep.mubr.bf16.mxu0 %v607_v23  ;;  %1271 = vmatprep.mubr.bf16.mxu1 %v607_v23  ;;  %v630_v23 = vld [vmem:[#allocation2 + $0xb0] sm:$0xff] }
 0x149   : > { %1159 = vmatmul.mubr.bf16.gmra.mrb[28].mxu0 %v606_v28  ;;  %1272 = vmatmul.mubr.bf16.gmra.mrb[28].mxu1 %v606_v28  ;;  %v629_v28 = vld [vmem:[#allocation2 + $0xa8] sm:$0xff] }
 0x1e4   : > { %v1090_v55 = vpop.f32.mrb[0].mxu0  ;;  %v1203_v33 = vpop.f32.mrb[0].mxu1 }
 0x1e5   : > { %v1282_v36 = vadd.f32 %v1090_v55, %v608_v29  ;;  %v1284_v37 = vadd.f32 %v1203_v33, %v610_v30  ;;  %v1092_v39 = vpop.f32.mrb[1].mxu0  ;;  %v1205_v40 = vpop.f32.mrb[1].mxu1  ;;  %v631_v29 = vld [vmem:[#allocation2 + $0xb8] sm:$0xff] }
 0x1e6   : > { %v1283_v8 = vadd.f32 %v1092_v39, %v609_v31  ;;  %v1285_v43 = vadd.f32 %v1205_v40, %v611_v32  ;;  %v1094_v44 = vpop.f32.mrb[2].mxu0  ;;  %v1207_v45 = vpop.f32.mrb[2].mxu1  ;;  %v632_v40 = vld [vmem:[#allocation2 + $0xc0] sm:$0xff] }
 0x1e7   : > { %1346 = vst [vmem:[#allocation2] sm:$0xff] %v1282_v36  ;;  %1348 = vst [vmem:[#allocation2 + $0x10] sm:$0xff] %v1284_v37  ;;  %v1286_v46 = vadd.f32 %v1094_v44, %v612_v34  ;;  %v1288_v47 = vadd.f32 %v1207_v45, %v614_v35  ;;  %v1096_v49 = vpop.f32.mrb[3].mxu0  ;;  %v1209_v50 = vpop.f32.mrb[3].mxu1  ;;  %v636_v45 = vld [vmem:[#allocation2 + $0xe0] sm:$0xff] }
 0x1e8   : > { %1347 = vst [vmem:[#allocation2 + $0x8] sm:$0xff] %v1283_v8  ;;  %1349 = vst [vmem:[#allocation2 + $0x18] sm:$0xff] %v1285_v43  ;;  %v1287_v51 = vadd.f32 %v1096_v49, %v613_v41  ;;  %v1289_v52 = vadd.f32 %v1209_v50, %v615_v42  ;;  %v634_v41 = vld [vmem:[#allocation2 + $0xd0] sm:$0xff]  ;;  %v633_v42 = vld [vmem:[#allocation2 + $0xc8] sm:$0xff] }
 0x1e9   : > { %1350 = vst [vmem:[#allocation2 + $0x20] sm:$0xff] %v1286_v46  ;;  %1352 = vst [vmem:[#allocation2 + $0x30] sm:$0xff] %v1288_v47  ;;  %v635_v8 = vld [vmem:[#allocation2 + $0xd8] sm:$0xff]  ;;  %v638_v46 = vld [vmem:[#allocation2 + $0xf0] sm:$0xff] }
 0x1ea   : > { %1351 = vst [vmem:[#allocation2 + $0x28] sm:$0xff] %v1287_v51  ;;  %1353 = vst [vmem:[#allocation2 + $0x38] sm:$0xff] %v1289_v52  ;;  %v637_v52 = vld [vmem:[#allocation2 + $0xe8] sm:$0xff] }
 0x1ec   : > { %v1100_v58 = vpop.f32.mrb[4].mxu0  ;;  %v1213_v59 = vpop.f32.mrb[4].mxu1 }
 0x1ed   : > { %v1290_v62 = vadd.f32 %v1100_v58, %v616_v53  ;;  %v1292_v63 = vadd.f32 %v1213_v59, %v618_v54  ;;  %v1102_v0 = vpop.f32.mrb[5].mxu0  ;;  %v1215_v2 = vpop.f32.mrb[5].mxu1  ;;  %v639_v53 = vld [vmem:[#allocation2 + $0xf8] sm:$0xff] }
 0x1ee   : > { %v1291_v5 = vadd.f32 %v1102_v0, %v617_v56  ;;  %v1293_v6 = vadd.f32 %v1215_v2, %v619_v57  ;;  %v1104_v7 = vpop.f32.mrb[6].mxu0  ;;  %v1217_v9 = vpop.f32.mrb[6].mxu1  ;;  %v640_v2 = vld [vmem:[#allocation2 + $0x100] sm:$0xff] }
 0x1ef   : > { %1354 = vst [vmem:[#allocation2 + $0x40] sm:$0xff] %v1290_v62  ;;  %1356 = vst [vmem:[#allocation2 + $0x50] sm:$0xff] %v1292_v63  ;;  %v1294_v10 = vadd.f32 %v1104_v7, %v620_v60  ;;  %v1296_v11 = vadd.f32 %v1217_v9, %v622_v61  ;;  %v1106_v12 = vpop.f32.mrb[7].mxu0  ;;  %v1219_v13 = vpop.f32.mrb[7].mxu1  ;;  %v644_v9 = vld [vmem:[#allocation2 + $0x120] sm:$0xff] }
 0x1f0   : > { %1355 = vst [vmem:[#allocation2 + $0x48] sm:$0xff] %v1291_v5  ;;  %1357 = vst [vmem:[#allocation2 + $0x58] sm:$0xff] %v1293_v6  ;;  %v1295_v14 = vadd.f32 %v1106_v12, %v621_v3  ;;  %v1297_v15 = vadd.f32 %v1219_v13, %v623_v4  ;;  %v642_v3 = vld [vmem:[#allocation2 + $0x110] sm:$0xff]  ;;  %v641_v4 = vld [vmem:[#allocation2 + $0x108] sm:$0xff] }
 0x1f1   : > { %1358 = vst [vmem:[#allocation2 + $0x60] sm:$0xff] %v1294_v10  ;;  %1360 = vst [vmem:[#allocation2 + $0x70] sm:$0xff] %v1296_v11  ;;  %v643_v5 = vld [vmem:[#allocation2 + $0x118] sm:$0xff]  ;;  %v646_v10 = vld [vmem:[#allocation2 + $0x130] sm:$0xff] }
 0x1f2   : > { %1359 = vst [vmem:[#allocation2 + $0x68] sm:$0xff] %v1295_v14  ;;  %1361 = vst [vmem:[#allocation2 + $0x78] sm:$0xff] %v1297_v15  ;;  %v645_v15 = vld [vmem:[#allocation2 + $0x128] sm:$0xff] }
 0x1f4   : > { %v1110_v20 = vpop.f32.mrb[8].mxu0  ;;  %v1223_v21 = vpop.f32.mrb[8].mxu1 }
 0x1f5   : > { %v1298_v24 = vadd.f32 %v1110_v20, %v624_v16  ;;  %v1300_v25 = vadd.f32 %v1223_v21, %v626_v17  ;;  %v1112_v26 = vpop.f32.mrb[9].mxu0  ;;  %v1225_v27 = vpop.f32.mrb[9].mxu1  ;;  %v647_v16 = vld [vmem:[#allocation2 + $0x138] sm:$0xff] }
 0x1f6   : > { %v1299_v30 = vadd.f32 %v1112_v26, %v625_v18  ;;  %v1301_v31 = vadd.f32 %v1225_v27, %v627_v19  ;;  %v1114_v32 = vpop.f32.mrb[10].mxu0  ;;  %v1227_v55 = vpop.f32.mrb[10].mxu1  ;;  %v648_v27 = vld [vmem:[#allocation2 + $0x140] sm:$0xff] }
 0x1f7   : > { %1362 = vst [vmem:[#allocation2 + $0x80] sm:$0xff] %v1298_v24  ;;  %1364 = vst [vmem:[#allocation2 + $0x90] sm:$0xff] %v1300_v25  ;;  %v1302_v33 = vadd.f32 %v1114_v32, %v628_v22  ;;  %v1304_v34 = vadd.f32 %v1227_v55, %v630_v23  ;;  %v1116_v35 = vpop.f32.mrb[11].mxu0  ;;  %v1229_v36 = vpop.f32.mrb[11].mxu1  ;;  %v652_v55 = vld [vmem:[#allocation2 + $0x160] sm:$0xff] }
 0x1f8   : > { %1363 = vst [vmem:[#allocation2 + $0x88] sm:$0xff] %v1299_v30  ;;  %1365 = vst [vmem:[#allocation2 + $0x98] sm:$0xff] %v1301_v31  ;;  %v1303_v37 = vadd.f32 %v1116_v35, %v629_v28  ;;  %v1305_v39 = vadd.f32 %v1229_v36, %v631_v29  ;;  %v650_v28 = vld [vmem:[#allocation2 + $0x150] sm:$0xff]  ;;  %v649_v29 = vld [vmem:[#allocation2 + $0x148] sm:$0xff] }
 0x1f9   : > { %1366 = vst [vmem:[#allocation2 + $0xa0] sm:$0xff] %v1302_v33  ;;  %1368 = vst [vmem:[#allocation2 + $0xb0] sm:$0xff] %v1304_v34  ;;  %v651_v30 = vld [vmem:[#allocation2 + $0x158] sm:$0xff]  ;;  %v654_v33 = vld [vmem:[#allocation2 + $0x170] sm:$0xff] }
 0x1fa   : > { %1367 = vst [vmem:[#allocation2 + $0xa8] sm:$0xff] %v1303_v37  ;;  %1369 = vst [vmem:[#allocation2 + $0xb8] sm:$0xff] %v1305_v39  ;;  %v653_v39 = vld [vmem:[#allocation2 + $0x168] sm:$0xff] }
 0x1fc   : > { %v1120_v43 = vpop.f32.mrb[12].mxu0  ;;  %v1233_v44 = vpop.f32.mrb[12].mxu1 }
 0x1fd   : > { %v1306_v47 = vadd.f32 %v1120_v43, %v632_v40  ;;  %v1308_v49 = vadd.f32 %v1233_v44, %v634_v41  ;;  %v1122_v50 = vpop.f32.mrb[13].mxu0  ;;  %v1235_v51 = vpop.f32.mrb[13].mxu1  ;;  %v655_v40 = vld [vmem:[#allocation2 + $0x178] sm:$0xff] }
 0x1fe   : > { %v1307_v54 = vadd.f32 %v1122_v50, %v633_v42  ;;  %v1309_v56 = vadd.f32 %v1235_v51, %v635_v8  ;;  %v1124_v57 = vpop.f32.mrb[14].mxu0  ;;  %v1237_v58 = vpop.f32.mrb[14].mxu1  ;;  %v656_v51 = vld [vmem:[#allocation2 + $0x180] sm:$0xff] }
 0x1ff   : > { %1370 = vst [vmem:[#allocation2 + $0xc0] sm:$0xff] %v1306_v47  ;;  %1372 = vst [vmem:[#allocation2 + $0xd0] sm:$0xff] %v1308_v49  ;;  %v1310_v59 = vadd.f32 %v1124_v57, %v636_v45  ;;  %v1312_v60 = vadd.f32 %v1237_v58, %v638_v46  ;;  %v1126_v61 = vpop.f32.mrb[15].mxu0  ;;  %v1239_v62 = vpop.f32.mrb[15].mxu1  ;;  %v660_v58 = vld [vmem:[#allocation2 + $0x1a0] sm:$0xff] }
 0x200   : > { %1371 = vst [vmem:[#allocation2 + $0xc8] sm:$0xff] %v1307_v54  ;;  %1373 = vst [vmem:[#allocation2 + $0xd8] sm:$0xff] %v1309_v56  ;;  %v1311_v63 = vadd.f32 %v1126_v61, %v637_v52  ;;  %v1313_v0 = vadd.f32 %v1239_v62, %v639_v53  ;;  %v658_v52 = vld [vmem:[#allocation2 + $0x190] sm:$0xff]  ;;  %v657_v53 = vld [vmem:[#allocation2 + $0x188] sm:$0xff] }
 0x201   : > { %1374 = vst [vmem:[#allocation2 + $0xe0] sm:$0xff] %v1310_v59  ;;  %1376 = vst [vmem:[#allocation2 + $0xf0] sm:$0xff] %v1312_v60  ;;  %v659_v54 = vld [vmem:[#allocation2 + $0x198] sm:$0xff]  ;;  %v662_v59 = vld [vmem:[#allocation2 + $0x1b0] sm:$0xff] }
 0x202   : > { %1375 = vst [vmem:[#allocation2 + $0xe8] sm:$0xff] %v1311_v63  ;;  %1377 = vst [vmem:[#allocation2 + $0xf8] sm:$0xff] %v1313_v0  ;;  %v661_v0 = vld [vmem:[#allocation2 + $0x1a8] sm:$0xff] }
 0x204   : > { %v1130_v6 = vpop.f32.mrb[16].mxu0  ;;  %v1243_v7 = vpop.f32.mrb[16].mxu1 }
 0x205   : > { %v1314_v11 = vadd.f32 %v1130_v6, %v640_v2  ;;  %v1316_v12 = vadd.f32 %v1243_v7, %v642_v3  ;;  %v1132_v13 = vpop.f32.mrb[17].mxu0  ;;  %v1245_v14 = vpop.f32.mrb[17].mxu1  ;;  %v663_v2 = vld [vmem:[#allocation2 + $0x1b8] sm:$0xff] }
 0x206   : > { %v1315_v17 = vadd.f32 %v1132_v13, %v641_v4  ;;  %v1317_v18 = vadd.f32 %v1245_v14, %v643_v5  ;;  %v1134_v19 = vpop.f32.mrb[18].mxu0  ;;  %v1247_v20 = vpop.f32.mrb[18].mxu1  ;;  %v664_v14 = vld [vmem:[#allocation2 + $0x1c0] sm:$0xff] }
 0x207   : > { %1378 = vst [vmem:[#allocation2 + $0x100] sm:$0xff] %v1314_v11  ;;  %1380 = vst [vmem:[#allocation2 + $0x110] sm:$0xff] %v1316_v12  ;;  %v1318_v21 = vadd.f32 %v1134_v19, %v644_v9  ;;  %v1320_v22 = vadd.f32 %v1247_v20, %v646_v10  ;;  %v1136_v23 = vpop.f32.mrb[19].mxu0  ;;  %v1249_v24 = vpop.f32.mrb[19].mxu1  ;;  %v668_v20 = vld [vmem:[#allocation2 + $0x1e0] sm:$0xff] }
 0x208   : > { %1379 = vst [vmem:[#allocation2 + $0x108] sm:$0xff] %v1315_v17  ;;  %1381 = vst [vmem:[#allocation2 + $0x118] sm:$0xff] %v1317_v18  ;;  %v1319_v25 = vadd.f32 %v1136_v23, %v645_v15  ;;  %v1321_v26 = vadd.f32 %v1249_v24, %v647_v16  ;;  %v666_v15 = vld [vmem:[#allocation2 + $0x1d0] sm:$0xff]  ;;  %v665_v16 = vld [vmem:[#allocation2 + $0x1c8] sm:$0xff] }
 0x209   : > { %1382 = vst [vmem:[#allocation2 + $0x120] sm:$0xff] %v1318_v21  ;;  %1384 = vst [vmem:[#allocation2 + $0x130] sm:$0xff] %v1320_v22  ;;  %v667_v17 = vld [vmem:[#allocation2 + $0x1d8] sm:$0xff]  ;;  %v670_v21 = vld [vmem:[#allocation2 + $0x1f0] sm:$0xff] }
 0x20a   : > { %1383 = vst [vmem:[#allocation2 + $0x128] sm:$0xff] %v1319_v25  ;;  %1385 = vst [vmem:[#allocation2 + $0x138] sm:$0xff] %v1321_v26  ;;  %v669_v26 = vld [vmem:[#allocation2 + $0x1e8] sm:$0xff] }
 0x20c   : > { %v1140_v31 = vpop.f32.mrb[20].mxu0  ;;  %v1253_v32 = vpop.f32.mrb[20].mxu1 }
 0x20d   : > { %v1322_v34 = vadd.f32 %v1140_v31, %v648_v27  ;;  %v1324_v35 = vadd.f32 %v1253_v32, %v650_v28  ;;  %v1142_v36 = vpop.f32.mrb[21].mxu0  ;;  %v1255_v37 = vpop.f32.mrb[21].mxu1  ;;  %v671_v27 = vld [vmem:[#allocation2 + $0x1f8] sm:$0xff] }
 0x20e   : > { %v1323_v41 = vadd.f32 %v1142_v36, %v649_v29  ;;  %v1325_v42 = vadd.f32 %v1255_v37, %v651_v30  ;;  %v1144_v8 = vpop.f32.mrb[22].mxu0  ;;  %v1257_v43 = vpop.f32.mrb[22].mxu1  ;;  %v3508_v37 = vld [vmem:[#allocation9 + $0x4] ss:$8 sps:$4 sm:$0xff] (!%p3075_p7)  }
 0x20f   : > { %1386 = vst [vmem:[#allocation2 + $0x140] sm:$0xff] %v1322_v34  ;;  %1388 = vst [vmem:[#allocation2 + $0x150] sm:$0xff] %v1324_v35  ;;  %v1326_v44 = vadd.f32 %v1144_v8, %v652_v55  ;;  %v1328_v45 = vadd.f32 %v1257_v43, %v654_v33  ;;  %v1146_v46 = vpop.f32.mrb[23].mxu0  ;;  %v1259_v47 = vpop.f32.mrb[23].mxu1  ;;  %1906 = vmatprep.subr.bf16.mxu0 (!%p3075_p7), %v3508_v37  ;;  %v3516_v8 = vld [vmem:[#allocation9 + $0x20] ss:$8 sps:$4 sm:$0xff] (!%p3075_p7)  }
 0x210   : > { %1387 = vst [vmem:[#allocation2 + $0x148] sm:$0xff] %v1323_v41  ;;  %1389 = vst [vmem:[#allocation2 + $0x158] sm:$0xff] %v1325_v42  ;;  %v1327_v49 = vadd.f32 %v1146_v46, %v653_v39  ;;  %v1329_v50 = vadd.f32 %v1259_v47, %v655_v40  ;;  %v3510_v39 = vld [vmem:[#allocation9] ss:$8 sps:$4 sm:$0xff] (!%p3075_p7)   ;;  %v3511_v40 = vld [vmem:[#allocation9 + $0x14] ss:$8 sps:$4 sm:$0xff] (!%p3075_p7)  }
 0x211   : > { %1390 = vst [vmem:[#allocation2 + $0x160] sm:$0xff] %v1326_v44  ;;  %1392 = vst [vmem:[#allocation2 + $0x170] sm:$0xff] %v1328_v45  ;;  %1907 = vmatpush1.bf16.msra.mxu0 (!%p3075_p7), %v3510_v39  ;;  %v3513_v41 = vld [vmem:[#allocation9 + $0x10] ss:$8 sps:$4 sm:$0xff] (!%p3075_p7)   ;;  %v3514_v42 = vld [vmem:[#allocation9 + $0x24] ss:$8 sps:$4 sm:$0xff] (!%p3075_p7)  }
 0x212   : > { %1391 = vst [vmem:[#allocation2 + $0x168] sm:$0xff] %v1327_v49  ;;  %1393 = vst [vmem:[#allocation2 + $0x178] sm:$0xff] %v1329_v50  ;;  %1908 = vmatprep.subr.bf16.mxu0 (!%p3075_p7), %v3511_v40  ;;  %v3517_v43 = vld [vmem:[#allocation9 + $0x34] ss:$8 sps:$4 sm:$0xff] (!%p3075_p7)   ;;  %v3519_v44 = vld [vmem:[#allocation9 + $0x30] ss:$8 sps:$4 sm:$0xff] (!%p3075_p7)  }
 0x213   : > { %v3520_v45 = vld [vmem:[#allocation9 + $0x44] ss:$8 sps:$4 sm:$0xff] (!%p3075_p7)   ;;  %v4424_v47 = vld [vmem:[#allocation9 + $0x100] ss:$8 sps:$4 sm:$0xff] (!%p3075_p7)   ;;  %v4428_v50 = vld [vmem:[#allocation9 + $0x114] ss:$8 sps:$4 sm:$0xff] (!%p3075_p7)  }
 0x214   : > { %v1150_v56 = vpop.f32.mrb[24].mxu0  ;;  %v1263_v57 = vpop.f32.mrb[24].mxu1  ;;  %v4422_v46 = vld [vmem:[#allocation9 + $0x104] ss:$8 sps:$4 sm:$0xff] (!%p3075_p7)   ;;  %v3522_v49 = vld [vmem:[#allocation9 + $0x40] ss:$8 sps:$4 sm:$0xff] (!%p3075_p7)  }
 0x215   : > { %v1330_v60 = vadd.f32 %v1150_v56, %v656_v51  ;;  %v1332_v61 = vadd.f32 %v1263_v57, %v658_v52  ;;  %v1152_v62 = vpop.f32.mrb[25].mxu0  ;;  %v1265_v63 = vpop.f32.mrb[25].mxu1  ;;  %1909 = vmatpush1.bf16.msra.mxu0 (!%p3075_p7), %v3513_v41  ;;  %3229 = vmatprep.subr.bf16.mxu1 (!%p3075_p7), %v4422_v46  ;;  %v4430_v51 = vld [vmem:[#allocation9 + $0x110] ss:$8 sps:$4 sm:$0xff] (!%p3075_p7)   ;;  %v3523_v52 = vld [vmem:[#allocation9 + $0x54] ss:$8 sps:$4 sm:$0xff] (!%p3075_p7)  }
 0x216   : > { %v1331_v3 = vadd.f32 %v1152_v62, %v657_v53  ;;  %v1333_v4 = vadd.f32 %v1265_v63, %v659_v54  ;;  %v1154_v5 = vpop.f32.mrb[26].mxu0  ;;  %v1267_v6 = vpop.f32.mrb[26].mxu1  ;;  %1910 = vmatprep.subr.bf16.mxu0 (!%p3075_p7), %v3514_v42  ;;  %3245 = vmatpush1.bf16.msra.mxu1 (!%p3075_p7), %v4424_v47  ;;  %v3525_v53 = vld [vmem:[#allocation9 + $0x50] ss:$8 sps:$4 sm:$0xff] (!%p3075_p7)   ;;  %v4433_v54 = vld [vmem:[#allocation9 + $0x124] ss:$8 sps:$4 sm:$0xff] (!%p3075_p7)  }
 0x217   : > { %1394 = vst [vmem:[#allocation2 + $0x180] sm:$0xff] %v1330_v60  ;;  %1396 = vst [vmem:[#allocation2 + $0x190] sm:$0xff] %v1332_v61  ;;  %v1334_v7 = vadd.f32 %v1154_v5, %v660_v58  ;;  %v1336_v9 = vadd.f32 %v1267_v6, %v662_v59  ;;  %v1156_v10 = vpop.f32.mrb[27].mxu0  ;;  %v1269_v11 = vpop.f32.mrb[27].mxu1  ;;  %3230 = vmatprep.subr.bf16.mxu1 (!%p3075_p7), %v4428_v50  ;;  %v3526_v56 = vld [vmem:[#allocation9 + $0x64] ss:$8 sps:$4 sm:$0xff] (!%p3075_p7)  }
 0x218   : > { %1395 = vst [vmem:[#allocation2 + $0x188] sm:$0xff] %v1331_v3  ;;  %1397 = vst [vmem:[#allocation2 + $0x198] sm:$0xff] %v1333_v4  ;;  %v1335_v12 = vadd.f32 %v1156_v10, %v661_v0  ;;  %v1337_v13 = vadd.f32 %v1269_v11, %v663_v2  ;;  %v4436_v57 = vld [vmem:[#allocation9 + $0x120] ss:$8 sps:$4 sm:$0xff] (!%p3075_p7)   ;;  %v4439_v58 = vld [vmem:[#allocation9 + $0x134] ss:$8 sps:$4 sm:$0xff] (!%p3075_p7)  }
 0x219   : > { %1398 = vst [vmem:[#allocation2 + $0x1a0] sm:$0xff] %v1334_v7  ;;  %1400 = vst [vmem:[#allocation2 + $0x1b0] sm:$0xff] %v1336_v9  ;;  %1911 = vmatpush1.bf16.msra.mxu0 (!%p3075_p7), %v3516_v8  ;;  %v3528_v59 = vld [vmem:[#allocation9 + $0x60] ss:$8 sps:$4 sm:$0xff] (!%p3075_p7)   ;;  %v3529_v60 = vld [vmem:[#allocation9 + $0x74] ss:$8 sps:$4 sm:$0xff] (!%p3075_p7)  }
 0x21a   : > { %1399 = vst [vmem:[#allocation2 + $0x1a8] sm:$0xff] %v1335_v12  ;;  %1401 = vst [vmem:[#allocation2 + $0x1b8] sm:$0xff] %v1337_v13  ;;  %1912 = vmatprep.subr.bf16.mxu0 (!%p3075_p7), %v3517_v43  ;;  %3246 = vmatpush1.bf16.msra.mxu1 (!%p3075_p7), %v4430_v51  ;;  %v4442_v61 = vld [vmem:[#allocation9 + $0x130] ss:$8 sps:$4 sm:$0xff] (!%p3075_p7)   ;;  %v4445_v62 = vld [vmem:[#allocation9 + $0x144] ss:$8 sps:$4 sm:$0xff] (!%p3075_p7)  }
 0x21b   : > { %3231 = vmatprep.subr.bf16.mxu1 (!%p3075_p7), %v4433_v54  ;;  %v3531_v63 = vld [vmem:[#allocation9 + $0x70] ss:$8 sps:$4 sm:$0xff] (!%p3075_p7)   ;;  %v3532_v0 = vld [vmem:[#allocation9 + $0x84] ss:$8 sps:$4 sm:$0xff] (!%p3075_p7)   ;;  %v4448_v2 = vld [vmem:[#allocation9 + $0x140] ss:$8 sps:$4 sm:$0xff] (!%p3075_p7)  }
 0x21c   : > { %v1160_v18 = vpop.f32.mrb[28].mxu0  ;;  %v1273_v19 = vpop.f32.mrb[28].mxu1  ;;  %1413 = sbr.rel (%p3075_p7) target bundleno = 1599 (0x63f), region = 84  ;;  %v4451_v3 = vld [vmem:[#allocation9 + $0x154] ss:$8 sps:$4 sm:$0xff] (!%p3075_p7)   ;;  %v1415_v6 = vld [vmem:[#allocation2 + $0x8] sm:$0xff] (!%p3075_p7) }
 0x21d   : > { %v1338_v22 = vadd.f32 %v1160_v18, %v664_v14  ;;  %v1340_v23 = vadd.f32 %v1273_v19, %v666_v15  ;;  %v1162_v24 = vpop.f32.mrb[29].mxu0  ;;  %v1275_v25 = vpop.f32.mrb[29].mxu1  ;;  %1913 = vmatpush1.bf16.msra.mxu0 (!%p3075_p7), %v3519_v44  ;;  %v3534_v4 = vld [vmem:[#allocation9 + $0x80] ss:$8 sps:$4 sm:$0xff] (!%p3075_p7)   ;;  %v4454_v5 = vld [vmem:[#allocation9 + $0x150] ss:$8 sps:$4 sm:$0xff] (!%p3075_p7)  }
 0x21e   : > { %v1339_v28 = vadd.f32 %v1162_v24, %v665_v16  ;;  %v1341_v29 = vadd.f32 %v1275_v25, %v667_v17  ;;  %v1164_v30 = vpop.f32.mrb[30].mxu0  ;;  %v1277_v31 = vpop.f32.mrb[30].mxu1  ;;  %1914 = vmatprep.subr.bf16.mxu0 (!%p3075_p7), %v3520_v45  ;;  %3247 = vmatpush1.bf16.msra.mxu1 (!%p3075_p7), %v4436_v57  ;;  %v3538_v7 = vld [vmem:[#allocation9 + $0x94] ss:$8 sps:$4 sm:$0xff] (!%p3075_p7)   ;;  %v4457_v9 = vld [vmem:[#allocation9 + $0x164] ss:$8 sps:$4 sm:$0xff] (!%p3075_p7)  }
 0x21f   : > { %1402 = vst [vmem:[#allocation2 + $0x1c0] sm:$0xff] %v1338_v22  ;;  %1404 = vst [vmem:[#allocation2 + $0x1d0] sm:$0xff] %v1340_v23  ;;  %v1342_v32 = vadd.f32 %v1164_v30, %v668_v20  ;;  %v1344_v55 = vadd.f32 %v1277_v31, %v670_v21  ;;  %v1166_v33 = vpop.f32.mrb[31].mxu0  ;;  %v1279_v34 = vpop.f32.mrb[31].mxu1  ;;  %3232 = vmatprep.subr.bf16.mxu1 (!%p3075_p7), %v4439_v58  ;;  %v1419_v10 = vld [vmem:[#allocation2 + $0x28] sm:$0xff] (!%p3075_p7)  ;;  %v1414_v40 = vld [vmem:[#allocation2] sm:$0xff] (!%p3075_p7) }
 0x220   : > { %1403 = vst [vmem:[#allocation2 + $0x1c8] sm:$0xff] %v1339_v28  ;;  %1405 = vst [vmem:[#allocation2 + $0x1d8] sm:$0xff] %v1341_v29  ;;  %v1343_v35 = vadd.f32 %v1166_v33, %v669_v26  ;;  %v1345_v36 = vadd.f32 %v1279_v34, %v671_v27  ;;  %v1479_v11 = vpack.c.bf16 (!%p3075_p7), %v1419_v10, %v1415_v6  ;;  %v3540_v12 = vld [vmem:[#allocation9 + $0x90] ss:$8 sps:$4 sm:$0xff] (!%p3075_p7)   ;;  %v4460_v13 = vld [vmem:[#allocation9 + $0x160] ss:$8 sps:$4 sm:$0xff] (!%p3075_p7)  }
 0x221   : > { %1406 = vst [vmem:[#allocation2 + $0x1e0] sm:$0xff] %v1342_v32  ;;  %1408 = vst [vmem:[#allocation2 + $0x1f0] sm:$0xff] %v1344_v55  ;;  %1915 = vmatpush1.bf16.msra.mxu0 (!%p3075_p7), %v3522_v49  ;;  %v3544_v14 = vld [vmem:[#allocation9 + $0xa4] ss:$8 sps:$4 sm:$0xff] (!%p3075_p7)   ;;  %v4463_v15 = vld [vmem:[#allocation9 + $0x174] ss:$8 sps:$4 sm:$0xff] (!%p3075_p7)  }
 0x222   : > { %1407 = vst [vmem:[#allocation2 + $0x1e8] sm:$0xff] %v1343_v35  ;;  %1409 = vst [vmem:[#allocation2 + $0x1f8] sm:$0xff] %v1345_v36  ;;  %1916 = vmatprep.subr.bf16.mxu0 (!%p3075_p7), %v3523_v52  ;;  %3248 = vmatpush1.bf16.msra.mxu1 (!%p3075_p7), %v4442_v61  ;;  %v3546_v16 = vld [vmem:[#allocation9 + $0xa0] ss:$8 sps:$4 sm:$0xff] (!%p3075_p7)   ;;  %v4466_v17 = vld [vmem:[#allocation9 + $0x170] ss:$8 sps:$4 sm:$0xff] (!%p3075_p7)  }
 0x223   : > { %3233 = vmatprep.subr.bf16.mxu1 %v4445_v62  ;;  %1938 = vmatprep.mubr.bf16.mxu0 %v1479_v11  ;;  %v3550_v18 = vld [vmem:[#allocation9 + $0xb4] ss:$8 sps:$4 sm:$0xff]   ;;  %v4469_v19 = vld [vmem:[#allocation9 + $0x184] ss:$8 sps:$4 sm:$0xff]   ;;  %v3552_v20 = vld [vmem:[#allocation9 + $0xb0] ss:$8 sps:$4 sm:$0xff]  }
 0x224   : > { %v4472_v21 = vld [vmem:[#allocation9 + $0x180] ss:$8 sps:$4 sm:$0xff]   ;;  %v3556_v22 = vld [vmem:[#allocation9 + $0xc4] ss:$8 sps:$4 sm:$0xff]   ;;  %v4475_v23 = vld [vmem:[#allocation9 + $0x194] ss:$8 sps:$4 sm:$0xff]  }
 0x225   : > { %1917 = vmatpush1.bf16.msra.mxu0 %v3525_v53  ;;  %v3558_v24 = vld [vmem:[#allocation9 + $0xc0] ss:$8 sps:$4 sm:$0xff]   ;;  %v4478_v25 = vld [vmem:[#allocation9 + $0x190] ss:$8 sps:$4 sm:$0xff]   ;;  %v3562_v26 = vld [vmem:[#allocation9 + $0xd4] ss:$8 sps:$4 sm:$0xff]  }
 0x226   : > { %1918 = vmatprep.subr.bf16.mxu0 %v3526_v56  ;;  %3249 = vmatpush1.bf16.msra.mxu1 %v4448_v2  ;;  %v4481_v27 = vld [vmem:[#allocation9 + $0x1a4] ss:$8 sps:$4 sm:$0xff]   ;;  %v1449_v28 = vld [vmem:[#allocation2 + $0x118] sm:$0xff]  ;;  %v4484_v32 = vld [vmem:[#allocation9 + $0x1a0] ss:$8 sps:$4 sm:$0xff]  }
 0x227   : > { %3234 = vmatprep.subr.bf16.mxu1 %v4451_v3  ;;  %v1453_v29 = vld [vmem:[#allocation2 + $0x138] sm:$0xff]  ;;  %v3568_v55 = vld [vmem:[#allocation9 + $0xe4] ss:$8 sps:$4 sm:$0xff]   ;;  %v3570_v34 = vld [vmem:[#allocation9 + $0xe0] ss:$8 sps:$4 sm:$0xff]  }
 0x228   : > { %v1497_v30 = vpack.c.bf16 %v1453_v29, %v1449_v28  ;;  %v3564_v31 = vld [vmem:[#allocation9 + $0xd0] ss:$8 sps:$4 sm:$0xff]   ;;  %v4487_v33 = vld [vmem:[#allocation9 + $0x1b4] ss:$8 sps:$4 sm:$0xff]   ;;  %v4493_v37 = vld [vmem:[#allocation9 + $0x1c4] ss:$8 sps:$4 sm:$0xff]  }
 0x229   : > { %1919 = vmatpush1.bf16.msra.mxu0 %v3528_v59  ;;  %v4490_v35 = vld [vmem:[#allocation9 + $0x1b0] ss:$8 sps:$4 sm:$0xff]   ;;  %v3574_v36 = vld [vmem:[#allocation9 + $0xf4] ss:$8 sps:$4 sm:$0xff]   ;;  %v4496_v42 = vld [vmem:[#allocation9 + $0x1c0] ss:$8 sps:$4 sm:$0xff]  }
 0x22a   : > { %1920 = vmatprep.subr.bf16.mxu0 %v3529_v60  ;;  %3250 = vmatpush1.bf16.msra.mxu1 %v4454_v5  ;;  %v3576_v39 = vld [vmem:[#allocation9 + $0xf0] ss:$8 sps:$4 sm:$0xff]   ;;  %v1418_v41 = vld [vmem:[#allocation2 + $0x20] sm:$0xff]  ;;  %v1423_v8 = vld [vmem:[#allocation2 + $0x48] sm:$0xff] }
 0x22b   : > { %3235 = vmatprep.subr.bf16.mxu1 %v4457_v9  ;;  %2091 = vmatprep.mubr.bf16.mxu1 %v1497_v30  ;;  %v1427_v43 = vld [vmem:[#allocation2 + $0x68] sm:$0xff]  ;;  %v4499_v44 = vld [vmem:[#allocation9 + $0x1d4] ss:$8 sps:$4 sm:$0xff]   ;;  %v1478_v45 = vpack.c.bf16 %v1418_v41, %v1414_v40  ;;  %v4502_v52 = vld [vmem:[#allocation9 + $0x1d0] ss:$8 sps:$4 sm:$0xff]  }
 0x22c   : > { %v1483_v49 = vpack.c.bf16 %v1427_v43, %v1423_v8  ;;  %v4506_v53 = vld [vmem:[#allocation9 + $0x1e4] ss:$8 sps:$4 sm:$0xff]   ;;  %v1422_v56 = vld [vmem:[#allocation2 + $0x40] sm:$0xff]  ;;  %v4516_v6 = vld [vmem:[#allocation9 + $0x1f0] ss:$8 sps:$4 sm:$0xff]  }
 0x22d   : > { %1921 = vmatpush1.bf16.msra.mxu0 %v3531_v63  ;;  %v1426_v59 = vld [vmem:[#allocation2 + $0x60] sm:$0xff]  ;;  %v1431_v60 = vld [vmem:[#allocation2 + $0x88] sm:$0xff]  ;;  %v1452_v10 = vld [vmem:[#allocation2 + $0x130] sm:$0xff] }
 0x22e   : > { %1922 = vmatprep.subr.bf16.mxu0 %v3532_v0  ;;  %3251 = vmatpush1.bf16.msra.mxu1 %v4460_v13  ;;  %v1435_v63 = vld [vmem:[#allocation2 + $0xa8] sm:$0xff]  ;;  %v1469_v28 = vld [vmem:[#allocation2 + $0x1b8] sm:$0xff]  ;;  %v1442_v29 = vld [vmem:[#allocation2 + $0xe0] sm:$0xff] }
 0x22f   : > { %3236 = vmatprep.subr.bf16.mxu1 %v4463_v15  ;;  %v4508_v0 = vld [vmem:[#allocation9 + $0x1e0] ss:$8 sps:$4 sm:$0xff]   ;;  %v1487_v11 = vpack.c.bf16 %v1435_v63, %v1431_v60  ;;  %v1477_v40 = vld [vmem:[#allocation2 + $0x1f8] sm:$0xff] }
 0x230   : > { %v1450_v41 = vld [vmem:[#allocation2 + $0x120] sm:$0xff]  ;;  %v1455_v43 = vld [vmem:[#allocation2 + $0x148] sm:$0xff] }
 0x231   : > { %1923 = vmatpush1.bf16.msra.mxu0 %v3534_v4  ;;  %v4511_v4 = vld [vmem:[#allocation9 + $0x1f4] ss:$8 sps:$4 sm:$0xff]   ;;  %v1463_v63 = vld [vmem:[#allocation2 + $0x188] sm:$0xff] }
 0x232   : > { %1924 = vmatprep.subr.bf16.mxu0 %v3538_v7  ;;  %3252 = vmatpush1.bf16.msra.mxu1 %v4466_v17  ;;  %v1448_v7 = vld [vmem:[#allocation2 + $0x110] sm:$0xff]  ;;  %v1458_v60 = vld [vmem:[#allocation2 + $0x160] sm:$0xff] }
 0x233   : > { %3237 = vmatprep.subr.bf16.mxu1 %v4469_v19 }
 0x235   : > { %1925 = vmatpush1.bf16.msra.mxu0 %v3540_v12  ;;  %v1457_v12 = vld [vmem:[#allocation2 + $0x158] sm:$0xff] }
 0x236   : > { %1926 = vmatprep.subr.bf16.mxu0 %v3544_v14  ;;  %3253 = vmatpush1.bf16.msra.mxu1 %v4472_v21  ;;  %v1461_v14 = vld [vmem:[#allocation2 + $0x178] sm:$0xff] }
 0x237   : > { %3238 = vmatprep.subr.bf16.mxu1 %v4475_v23 }
 0x239   : > { %1927 = vmatpush1.bf16.msra.mxu0 %v3546_v16  ;;  %v1496_v16 = vpack.c.bf16 %v1452_v10, %v1448_v7  ;;  %v1471_v10 = vld [vmem:[#allocation2 + $0x1c8] sm:$0xff] }
 0x23a   : > { %1928 = vmatprep.subr.bf16.mxu0 %v3550_v18  ;;  %3254 = vmatpush1.bf16.msra.mxu1 %v4478_v25  ;;  %v1439_v18 = vld [vmem:[#allocation2 + $0xc8] sm:$0xff] }
 0x23b   : > { %3239 = vmatprep.subr.bf16.mxu1 %v4481_v27 }
 0x23d   : > { %1929 = vmatpush1.bf16.msra.mxu0 %v3552_v20  ;;  %v1501_v20 = vpack.c.bf16 %v1461_v14, %v1457_v12  ;;  %v1421_v14 = vld [vmem:[#allocation2 + $0x38] sm:$0xff] }
 0x23e   : > { %1930 = vmatprep.subr.bf16.mxu0 %v3556_v22  ;;  %3255 = vmatpush1.bf16.msra.mxu1 %v4484_v32 }
 0x23f   : > { %3240 = vmatprep.subr.bf16.mxu1 %v4487_v33 }
 0x241   : > { %1931 = vmatpush1.bf16.msra.mxu0 %v3558_v24  ;;  %v1460_v24 = vld [vmem:[#allocation2 + $0x170] sm:$0xff] }
 0x242   : > { %1932 = vmatprep.subr.bf16.mxu0 %v3562_v26  ;;  %3256 = vmatpush1.bf16.msra.mxu1 %v4490_v35  ;;  %v1465_v26 = vld [vmem:[#allocation2 + $0x198] sm:$0xff] }
 0x243   : > { %3241 = vmatprep.subr.bf16.mxu1 %v4493_v37 }
 0x245   : > { %1933 = vmatpush1.bf16.msra.mxu0 %v3564_v31  ;;  %v1447_v31 = vld [vmem:[#allocation2 + $0x108] sm:$0xff] }
 0x246   : > { %1934 = vmatprep.subr.bf16.mxu0 %v3568_v55  ;;  %3257 = vmatpush1.bf16.msra.mxu1 %v4496_v42  ;;  %v1505_v55 = vpack.c.bf16 %v1469_v28, %v1465_v26  ;;  %v1444_v28 = vld [vmem:[#allocation2 + $0xf0] sm:$0xff] }
 0x247   : > { %3242 = vmatprep.subr.bf16.mxu1 %v4499_v44 }
 0x249   : > { %1935 = vmatpush1.bf16.msra.mxu0 %v3570_v34 }
 0x24a   : > { %1936 = vmatprep.subr.bf16.mxu0 %v3574_v36  ;;  %3258 = vmatpush1.bf16.msra.mxu1 %v4502_v52  ;;  %v1464_v36 = vld [vmem:[#allocation2 + $0x190] sm:$0xff] }
 0x24b   : > { %3243 = vmatprep.subr.bf16.mxu1 %v4506_v53 }
 0x24d   : > { %1937 = vmatpush1.bf16.msra.mxu0 %v3576_v39  ;;  %v1468_v39 = vld [vmem:[#allocation2 + $0x1b0] sm:$0xff] }
 0x24e   : > { %2019 = vmatprep.subr.bf16.mxu0 %v4422_v46  ;;  %v1482_v46 = vpack.c.bf16 %v1426_v59, %v1422_v56  ;;  %3259 = vmatpush1.bf16.msra.mxu1 %v4508_v0  ;;  %v1504_v8 = vpack.c.bf16 %v1468_v39, %v1464_v36  ;;  %v1472_v56 = vld [vmem:[#allocation2 + $0x1d0] sm:$0xff]  ;;  %v1574_v39 = vld [vmem:[%s5202_s4] sm:$0x3] }
 0x24f   : > { %3244 = vmatprep.subr.bf16.mxu1 %v4511_v4  ;;  %v1476_v59 = vld [vmem:[#allocation2 + $0x1f0] sm:$0xff] }
 0x250   : > { %1939 = vmatmul.mubr.bf16.vlgmr.msra.gmra.mrb[0].mxu0 %v1478_v45 }
 0x251   : > { %2020 = vmatpush1.bf16.msra.mxu0 %v4424_v47  ;;  %1948 = vmatprep.mubr.bf16.mxu0 %v1483_v49  ;;  %v1430_v47 = vld [vmem:[#allocation2 + $0x80] sm:$0xff] }
 0x252   : > { %2021 = vmatprep.subr.bf16.mxu0 %v4428_v50  ;;  %v1434_v50 = vld [vmem:[#allocation2 + $0xa0] sm:$0xff]  ;;  %3260 = vmatpush1.bf16.msra.mxu1 %v4516_v6 }
 0x253   : > { %v1486_v22 = vpack.c.bf16 %v1434_v50, %v1430_v47  ;;  %v1429_v50 = vld [vmem:[#allocation2 + $0x78] sm:$0xff] }
 0x255   : > { %2022 = vmatpush1.bf16.msra.mxu0 %v4430_v51  ;;  %v1443_v51 = vld [vmem:[#allocation2 + $0xe8] sm:$0xff]  ;;  %2092 = vmatmul.mubr.bf16.vlgmr.msra.gmra.mrb[0].mxu1 %v1496_v16 }
 0x256   : > { %2023 = vmatprep.subr.bf16.mxu0 %v4433_v54  ;;  %v1491_v54 = vpack.c.bf16 %v1443_v51, %v1439_v18  ;;  %2101 = vmatprep.mubr.bf16.mxu1 %v1501_v20  ;;  %v1428_v18 = vld [vmem:[#allocation2 + $0x70] sm:$0xff]  ;;  %v1433_v51 = vld [vmem:[#allocation2 + $0x98] sm:$0xff] }
 0x258   : > { %1949 = vmatmul.mubr.bf16.gmra.mrb[4].mxu0 %v1482_v46  ;;  %v1467_v46 = vld [vmem:[#allocation2 + $0x1a8] sm:$0xff] }
 0x259   : > { %2024 = vmatpush1.bf16.msra.mxu0 %v4436_v57  ;;  %1958 = vmatprep.mubr.bf16.mxu0 %v1487_v11  ;;  %v1456_v57 = vld [vmem:[#allocation2 + $0x150] sm:$0xff]  ;;  %v1475_v11 = vld [vmem:[#allocation2 + $0x1e8] sm:$0xff] }
 0x25a   : > { %2025 = vmatprep.subr.bf16.mxu0 %v4439_v58  ;;  %v1438_v58 = vld [vmem:[#allocation2 + $0xc0] sm:$0xff]  ;;  %v1500_v30 = vpack.c.bf16 %v1460_v24, %v1456_v57  ;;  %v1507_v12 = vpack.c.bf16 %v1475_v11, %v1471_v10  ;;  %v1441_v57 = vld [vmem:[#allocation2 + $0xd8] sm:$0xff] }
 0x25b   : > { %v1490_v34 = vpack.c.bf16 %v1442_v29, %v1438_v58 }
 0x25d   : > { %2026 = vmatpush1.bf16.msra.mxu0 %v4442_v61  ;;  %v1451_v61 = vld [vmem:[#allocation2 + $0x128] sm:$0xff]  ;;  %2102 = vmatmul.mubr.bf16.gmra.mrb[4].mxu1 %v1500_v30 }
 0x25e   : > { %2027 = vmatprep.subr.bf16.mxu0 %v4445_v62  ;;  %v1495_v62 = vpack.c.bf16 %v1451_v61, %v1447_v31  ;;  %2111 = vmatprep.mubr.bf16.mxu1 %v1505_v55 }
 0x260   : > { %1959 = vmatmul.mubr.bf16.gmra.mrb[8].mxu0 %v1486_v22 }
 0x261   : > { %2028 = vmatpush1.bf16.msra.mxu0 %v4448_v2  ;;  %1968 = vmatprep.mubr.bf16.mxu0 %v1491_v54  ;;  %v1473_v2 = vld [vmem:[#allocation2 + $0x1d8] sm:$0xff]  ;;  %v1436_v54 = vld [vmem:[#allocation2 + $0xb0] sm:$0xff] }
 0x262   : > { %2029 = vmatprep.subr.bf16.mxu0 %v4451_v3  ;;  %v1446_v3 = vld [vmem:[#allocation2 + $0x100] sm:$0xff]  ;;  %v1509_v45 = vpack.c.bf16 %v1477_v40, %v1473_v2  ;;  %v4554_v2 = vrot.slane %v1574_v39, %v4346_v1 }
 0x263   : > { %v1494_v49 = vpack.c.bf16 %v1450_v41, %v1446_v3  ;;  %v4557_v3 = vrot.slane %v1574_v39, %v4327_v48 }
 0x265   : > { %2030 = vmatpush1.bf16.msra.mxu0 %v4454_v5  ;;  %v1459_v5 = vld [vmem:[#allocation2 + $0x168] sm:$0xff]  ;;  %2112 = vmatmul.mubr.bf16.gmra.mrb[8].mxu1 %v1504_v8 }
 0x266   : > { %2031 = vmatprep.subr.bf16.mxu0 %v4457_v9  ;;  %v1499_v9 = vpack.c.bf16 %v1459_v5, %v1455_v43  ;;  %2121 = vmatprep.mubr.bf16.mxu1 %v1509_v45 }
 0x268   : > { %1969 = vmatmul.mubr.bf16.gmra.mrb[12].mxu0 %v1490_v34 }
 0x269   : > { %2032 = vmatpush1.bf16.msra.mxu0 %v4460_v13  ;;  %1978 = vmatprep.mubr.bf16.mxu0 %v1495_v62  ;;  %v1454_v13 = vld [vmem:[#allocation2 + $0x140] sm:$0xff] }
 0x26a   : > { %2033 = vmatprep.subr.bf16.mxu0 %v4463_v15  ;;  %v1508_v15 = vpack.c.bf16 %v1476_v59, %v1472_v56  ;;  %v1498_v7 = vpack.c.bf16 %v1458_v60, %v1454_v13 }
 0x26d   : > { %2034 = vmatpush1.bf16.msra.mxu0 %v4466_v17  ;;  %v1503_v17 = vpack.c.bf16 %v1467_v46, %v1463_v63  ;;  %2122 = vmatmul.mubr.bf16.gmra.mrb[12].mxu1 %v1508_v15 }
 0x26e   : > { %2035 = vmatprep.subr.bf16.mxu0 %v4469_v19  ;;  %v1462_v19 = vld [vmem:[#allocation2 + $0x180] sm:$0xff] }
 0x270   : > { %1979 = vmatmul.mubr.bf16.gmra.mrb[16].mxu0 %v1494_v49 }
 0x271   : > { %2036 = vmatpush1.bf16.msra.mxu0 %v4472_v21  ;;  %1988 = vmatprep.mubr.bf16.mxu0 %v1499_v9  ;;  %v1466_v21 = vld [vmem:[#allocation2 + $0x1a0] sm:$0xff] }
 0x272   : > { %2037 = vmatprep.subr.bf16.mxu0 %v4475_v23  ;;  %v1502_v23 = vpack.c.bf16 %v1466_v21, %v1462_v19 }
 0x275   : > { %2038 = vmatpush1.bf16.msra.mxu0 %v4478_v25  ;;  %v1470_v25 = vld [vmem:[#allocation2 + $0x1c0] sm:$0xff] }
 0x276   : > { %2039 = vmatprep.subr.bf16.mxu0 %v4481_v27  ;;  %v1474_v27 = vld [vmem:[#allocation2 + $0x1e0] sm:$0xff] }
 0x277   : > { %v1506_v47 = vpack.c.bf16 %v1474_v27, %v1470_v25 }
 0x278   : > { %1989 = vmatmul.mubr.bf16.gmra.mrb[20].mxu0 %v1498_v7 }
 0x279   : > { %2040 = vmatpush1.bf16.msra.mxu0 %v4484_v32  ;;  %1998 = vmatprep.mubr.bf16.mxu0 %v1503_v17  ;;  %v1417_v32 = vld [vmem:[#allocation2 + $0x18] sm:$0xff] }
 0x27a   : > { %2041 = vmatprep.subr.bf16.mxu0 %v4487_v33  ;;  %v1481_v33 = vpack.c.bf16 %v1421_v14, %v1417_v32 }
 0x27d   : > { %2042 = vmatpush1.bf16.msra.mxu0 %v4490_v35  ;;  %v1416_v35 = vld [vmem:[#allocation2 + $0x10] sm:$0xff] }
 0x27e   : > { %2043 = vmatprep.subr.bf16.mxu0 %v4493_v37  ;;  %v1420_v37 = vld [vmem:[#allocation2 + $0x30] sm:$0xff] }
 0x27f   : > { %v1480_v16 = vpack.c.bf16 %v1420_v37, %v1416_v35 }
 0x280   : > { %1999 = vmatmul.mubr.bf16.gmra.mrb[24].mxu0 %v1502_v23 }
 0x281   : > { %2044 = vmatpush1.bf16.msra.mxu0 %v4496_v42  ;;  %2008 = vmatprep.mubr.bf16.mxu0 %v1507_v12  ;;  %v1425_v42 = vld [vmem:[#allocation2 + $0x58] sm:$0xff] }
 0x282   : > { %2045 = vmatprep.subr.bf16.mxu0 %v4499_v44  ;;  %v1485_v44 = vpack.c.bf16 %v1429_v50, %v1425_v42 }
 0x285   : > { %2046 = vmatpush1.bf16.msra.mxu0 %v4502_v52  ;;  %v1424_v52 = vld [vmem:[#allocation2 + $0x50] sm:$0xff] }
 0x286   : > { %2047 = vmatprep.subr.bf16.mxu0 %v4506_v53  ;;  %v1437_v53 = vld [vmem:[#allocation2 + $0xb8] sm:$0xff]  ;;  %v1484_v20 = vpack.c.bf16 %v1428_v18, %v1424_v52 }
 0x287   : > { %v1489_v22 = vpack.c.bf16 %v1437_v53, %v1433_v51  ;;  %v3604_v51 = vld [vmem:[#allocation11 + $0x40] sm:$0xff]  }
 0x288   : > { %2009 = vmatmul.mubr.bf16.gmra.mrb[28].mxu0 %v1506_v47  ;;  %3165 = vmatprep.subr.bf16.mxu1 %v3604_v51 }
 0x289   : > { %2048 = vmatpush1.bf16.msra.mxu0 %v4508_v0  ;;  %2051 = vmatprep.mubr.bf16.mxu0 %v1481_v33  ;;  %v1432_v0 = vld [vmem:[#allocation2 + $0x90] sm:$0xff] }
 0x28a   : > { %2049 = vmatprep.subr.bf16.mxu0 %v4511_v4  ;;  %v1445_v4 = vld [vmem:[#allocation2 + $0xf8] sm:$0xff]  ;;  %v1488_v24 = vpack.c.bf16 %v1436_v54, %v1432_v0  ;;  %v3605_v0 = vld [vmem:[#allocation11] sm:$0xff]  }
 0x28b   : > { %v1493_v26 = vpack.c.bf16 %v1445_v4, %v1441_v57  ;;  %3166 = vmatpush3.bf16.msra.mxu1 %v3605_v0 }
 0x28d   : > { %2050 = vmatpush1.bf16.msra.mxu0 %v4516_v6  ;;  %v1440_v6 = vld [vmem:[#allocation2 + $0xd0] sm:$0xff] }
 0x28e   : > { %v1492_v58 = vpack.c.bf16 %v1444_v28, %v1440_v6  ;;  %v3607_v6 = vld [vmem:[#allocation11 + $0x8] sm:$0xff]  }
 0x290   : > { %2052 = vmatmul.mubr.bf16.vlgmr.msra.gmra.mrb[0].mxu0 %v1480_v16 }
 0x291   : > { %2061 = vmatprep.mubr.bf16.mxu0 %v1485_v44 }
 0x298   : > { %2062 = vmatmul.mubr.bf16.gmra.mrb[4].mxu0 %v1484_v20 }
 0x299   : > { %2071 = vmatprep.mubr.bf16.mxu0 %v1489_v22 }
 0x2a0   : > { %2072 = vmatmul.mubr.bf16.gmra.mrb[8].mxu0 %v1488_v24 }
 0x2a1   : > { %2081 = vmatprep.mubr.bf16.mxu0 %v1493_v26  ;;  %v3606_v26 = vld [vmem:[#allocation11 + $0x48] sm:$0xff]  }
 0x2a2   : > { %3167 = vmatprep.subr.bf16.mxu1 %v3606_v26 }
 0x2a3   : > { %3168 = vmatpush3.bf16.msra.mxu1 %v3607_v6 }
 0x2a8   : > { %2082 = vmatmul.mubr.bf16.gmra.mrb[12].mxu0 %v1492_v58 }
 0x328   : > { %v2093_v29 = vpop.f32.mrb[0].mxu1 }
 0x329   : > { %v2095_v30 = vpop.f32.mrb[1].mxu1 }
 0x32a   : > { %v2097_v31 = vpop.f32.mrb[2].mxu1 }
 0x32b   : > { %v2099_v61 = vpop.f32.mrb[3].mxu1 }
 0x330   : > { %v2103_v55 = vpop.f32.mrb[4].mxu1 }
 0x331   : > { %v2105_v34 = vpop.f32.mrb[5].mxu1 }
 0x332   : > { %v2107_v62 = vpop.f32.mrb[6].mxu1 }
 0x333   : > { %v2109_v36 = vpop.f32.mrb[7].mxu1 }
 0x338   : > { %v2113_v40 = vpop.f32.mrb[8].mxu1 }
 0x339   : > { %v2115_v41 = vpop.f32.mrb[9].mxu1 }
 0x33a   : > { %v2117_v8 = vpop.f32.mrb[10].mxu1 }
 0x33b   : > { %v2119_v5 = vpop.f32.mrb[11].mxu1 }
 0x340   : > { %v2123_v7 = vpop.f32.mrb[12].mxu1 }
 0x341   : > { %v2125_v19 = vpop.f32.mrb[13].mxu1 }
 0x342   : > { %v2127_v21 = vpop.f32.mrb[14].mxu1 }
 0x343   : > { %v1980_v43 = vpop.f32.mrb[16].mxu0  ;;  %v2129_v11 = vpop.f32.mrb[15].mxu1 }
 0x344   : > { %v1981_v45 = vadd.f32 %v1980_v43, %v4554_v2  ;;  %v1982_v49 = vpop.f32.mrb[17].mxu0  ;;  %v3610_v43 = vld [vmem:[#allocation11 + $0x58] sm:$0xff]  }
 0x345   : > { %v1983_v9 = vadd.f32 %v1982_v49, %v4557_v3  ;;  %v1984_v56 = vpop.f32.mrb[18].mxu0 }
 0x346   : > { %v1985_v59 = vadd.f32 %v1984_v56, %v4554_v2  ;;  %v4562_v13 = vadd.f32 %v2093_v29, %v1981_v45  ;;  %v1986_v60 = vpop.f32.mrb[19].mxu0  ;;  %v3612_v56 = vld [vmem:[#allocation11 + $0x60] sm:$0xff]  }
 0x347   : > { %v1987_v15 = vadd.f32 %v1986_v60, %v4557_v3  ;;  %v4565_v63 = vadd.f32 %v2095_v30, %v1983_v9 }
 0x348   : > { %v4567_v46 = vadd.f32 %v2097_v31, %v1985_v59 }
 0x349   : > { %v4569_v17 = vadd.f32 %v2099_v61, %v1987_v15  ;;  %v3608_v61 = vld [vmem:[#allocation11 + $0x50] sm:$0xff]  }
 0x34a   : > { %3169 = vmatprep.subr.bf16.mxu1 %v3608_v61 }
 0x34b   : > { %v1990_v10 = vpop.f32.mrb[20].mxu0 }
 0x34c   : > { %v1991_v23 = vadd.f32 %v1990_v10, %v4554_v2  ;;  %v1992_v12 = vpop.f32.mrb[21].mxu0 }
 0x34d   : > { %v1993_v25 = vadd.f32 %v1992_v12, %v4557_v3  ;;  %v1994_v27 = vpop.f32.mrb[22].mxu0  ;;  %v3615_v12 = vld [vmem:[#allocation11 + $0x28] sm:$0xff]  }
 0x34e   : > { %v1995_v32 = vadd.f32 %v1994_v27, %v4554_v2  ;;  %v4574_v14 = vadd.f32 %v2103_v55, %v1991_v23  ;;  %v1996_v47 = vpop.f32.mrb[23].mxu0  ;;  %v3614_v23 = vld [vmem:[#allocation11 + $0x68] sm:$0xff]  }
 0x34f   : > { %v1997_v33 = vadd.f32 %v1996_v47, %v4557_v3  ;;  %v4577_v35 = vadd.f32 %v2105_v34, %v1993_v25  ;;  %v3616_v47 = vld [vmem:[#allocation11 + $0x70] sm:$0xff]  }
 0x350   : > { %v4579_v37 = vadd.f32 %v2107_v62, %v1995_v32 }
 0x351   : > { %v4581_v42 = vadd.f32 %v2109_v36, %v1997_v33  ;;  %v3609_v36 = vld [vmem:[#allocation11 + $0x10] sm:$0xff]  }
 0x352   : > { %3170 = vmatpush3.bf16.msra.mxu1 %v3609_v36  ;;  %v3617_v33 = vld [vmem:[#allocation11 + $0x30] sm:$0xff]  }
 0x353   : > { %v2000_v50 = vpop.f32.mrb[24].mxu0  ;;  %3171 = vmatprep.subr.bf16.mxu1 %v3610_v43 }
 0x354   : > { %v2001_v16 = vadd.f32 %v2000_v50, %v4554_v2  ;;  %v2002_v44 = vpop.f32.mrb[25].mxu0 }
 0x355   : > { %v2003_v52 = vadd.f32 %v2002_v44, %v4557_v3  ;;  %v2004_v18 = vpop.f32.mrb[26].mxu0  ;;  %v3618_v44 = vld [vmem:[#allocation11 + $0x78] sm:$0xff]  }
 0x356   : > { %v2005_v53 = vadd.f32 %v2004_v18, %v4554_v2  ;;  %v4586_v20 = vadd.f32 %v2113_v40, %v2001_v16  ;;  %v2006_v22 = vpop.f32.mrb[27].mxu0 }
 0x357   : > { %v2007_v54 = vadd.f32 %v2006_v22, %v4557_v3  ;;  %v4589_v57 = vadd.f32 %v2115_v41, %v2003_v52 }
 0x358   : > { %v4591_v4 = vadd.f32 %v2117_v8, %v2005_v53 }
 0x359   : > { %v4593_v24 = vadd.f32 %v2119_v5, %v2007_v54  ;;  %v3611_v5 = vld [vmem:[#allocation11 + $0x18] sm:$0xff]  }
 0x35a   : > { %3172 = vmatpush3.bf16.msra.mxu1 %v3611_v5  ;;  %v3619_v54 = vld [vmem:[#allocation11 + $0x38] sm:$0xff]  }
 0x35b   : > { %v2010_v28 = vpop.f32.mrb[28].mxu0  ;;  %3173 = vmatprep.subr.bf16.mxu1 %v3612_v56 }
 0x35c   : > { %v2011_v58 = vadd.f32 %v2010_v28, %v4554_v2  ;;  %v2012_v29 = vpop.f32.mrb[29].mxu0 }
 0x35d   : > { %v2013_v30 = vadd.f32 %v2012_v29, %v4557_v3  ;;  %v2014_v31 = vpop.f32.mrb[30].mxu0 }
 0x35e   : > { %v2015_v55 = vadd.f32 %v2014_v31, %v4554_v2  ;;  %v4598_v34 = vadd.f32 %v2123_v7, %v2011_v58  ;;  %v2016_v62 = vpop.f32.mrb[31].mxu0  ;;  %v3613_v7 = vld [vmem:[#allocation11 + $0x20] sm:$0xff]  }
 0x35f   : > { %v2017_v39 = vadd.f32 %v2016_v62, %v4557_v3  ;;  %v4601_v40 = vadd.f32 %v2125_v19, %v2013_v30  ;;  %3174 = vmatpush3.bf16.msra.mxu1 %v3613_v7 }
 0x360   : > { %v4603_v41 = vadd.f32 %v2127_v21, %v2015_v55  ;;  %3175 = vmatprep.subr.bf16.mxu1 %v3614_v23 }
 0x361   : > { %v4605_v8 = vadd.f32 %v2129_v11, %v2017_v39 }
 0x363   : > { %v2053_v45 = vpop.f32.mrb[0].mxu0  ;;  %3176 = vmatpush3.bf16.msra.mxu1 %v3615_v12 }
 0x364   : > { %v2055_v49 = vpop.f32.mrb[1].mxu0  ;;  %v4608_v59 = vadd.f32 %v2053_v45, %v4554_v2  ;;  %3177 = vmatprep.subr.bf16.mxu1 %v3616_v47 }
 0x365   : > { %v2057_v9 = vpop.f32.mrb[2].mxu0  ;;  %v4614_v19 = vadd.f32 %v2055_v49, %v4557_v3 }
 0x366   : > { %v4611_v60 = vadd.f32 %v2057_v9, %v4554_v2  ;;  %v2059_v15 = vpop.f32.mrb[3].mxu0 }
 0x367   : > { %v4617_v21 = vadd.f32 %v2059_v15, %v4557_v3  ;;  %3178 = vmatpush3.bf16.msra.mxu1 %v3617_v33 }
 0x368   : > { %v2132_v10 = vadd.f32 %v4611_v60, %v4608_v59  ;;  %3179 = vmatprep.subr.bf16.mxu1 %v3618_v44 }
 0x369   : > { %v2153_v11 = vadd.f32 %v4617_v21, %v4614_v19 }
 0x36b   : > { %v2063_v25 = vpop.f32.mrb[4].mxu0  ;;  %3180 = vmatpush3.bf16.msra.mxu1 %v3619_v54 }
 0x36c   : > { %v4624_v27 = vadd.f32 %v2063_v25, %v4554_v2  ;;  %v2065_v32 = vpop.f32.mrb[5].mxu0 }
 0x36d   : > { %v4627_v50 = vadd.f32 %v2065_v32, %v4557_v3  ;;  %v2067_v16 = vpop.f32.mrb[6].mxu0 }
 0x36e   : > { %v2133_v52 = vadd.f32 %v4624_v27, %v2132_v10  ;;  %v4631_v18 = vadd.f32 %v2067_v16, %v4554_v2  ;;  %v2069_v51 = vpop.f32.mrb[7].mxu0 }
 0x36f   : > { %v2154_v53 = vadd.f32 %v4627_v50, %v2153_v11  ;;  %v4635_v22 = vadd.f32 %v2069_v51, %v4557_v3 }
 0x370   : > { %v2134_v0 = vadd.f32 %v4631_v18, %v2133_v52 }
 0x371   : > { %v2155_v26 = vadd.f32 %v4635_v22, %v2154_v53 }
 0x373   : > { %v2073_v6 = vpop.f32.mrb[8].mxu0 }
 0x374   : > { %v3269_v28 = vadd.f32 %v2073_v6, %v4554_v2  ;;  %v2075_v58 = vpop.f32.mrb[9].mxu0 }
 0x375   : > { %v4641_v29 = vadd.f32 %v2075_v58, %v4557_v3  ;;  %v2077_v30 = vpop.f32.mrb[10].mxu0 }
 0x376   : > { %v2135_v31 = vadd.f32 %v3269_v28, %v2134_v0  ;;  %v3271_v61 = vadd.f32 %v2077_v30, %v4554_v2  ;;  %v2079_v55 = vpop.f32.mrb[11].mxu0 }
 0x377   : > { %v2156_v62 = vadd.f32 %v4641_v29, %v2155_v26  ;;  %v4646_v36 = vadd.f32 %v2079_v55, %v4557_v3 }
 0x378   : > { %v2136_v39 = vadd.f32 %v3271_v61, %v2135_v31 }
 0x379   : > { %v2157_v43 = vadd.f32 %v4646_v36, %v2156_v62 }
 0x37b   : > { %v2083_v5 = vpop.f32.mrb[12].mxu0 }
 0x37c   : > { %v3273_v45 = vadd.f32 %v2083_v5, %v4554_v2  ;;  %v2085_v49 = vpop.f32.mrb[13].mxu0 }
 0x37d   : > { %v4651_v9 = vadd.f32 %v2085_v49, %v4557_v3  ;;  %v2087_v56 = vpop.f32.mrb[14].mxu0 }
 0x37e   : > { %v2137_v15 = vadd.f32 %v3273_v45, %v2136_v39  ;;  %v3275_v7 = vadd.f32 %v2087_v56, %v4554_v2  ;;  %v2089_v10 = vpop.f32.mrb[15].mxu0 }
 0x37f   : > { %v2158_v11 = vadd.f32 %v4651_v9, %v2157_v43  ;;  %v3276_v23 = vadd.f32 %v2089_v10, %v4557_v3 }
 0x380   : > { %v2138_v12 = vadd.f32 %v3275_v7, %v2137_v15 }
 0x381   : > { %v2159_v25 = vadd.f32 %v3276_v23, %v2158_v11 }
 0x382   : > { %v2139_v32 = vadd.f32 %v2138_v12, %v4562_v13 }
 0x383   : > { %v2160_v47 = vadd.f32 %v2159_v25, %v4565_v63 }
 0x384   : > { %v2140_v33 = vadd.f32 %v2139_v32, %v4567_v46 }
 0x385   : > { %v2161_v16 = vadd.f32 %v2160_v47, %v4569_v17 }
 0x386   : > { %v2141_v44 = vadd.f32 %v2140_v33, %v4574_v14 }
 0x387   : > { %v2162_v52 = vadd.f32 %v2161_v16, %v4577_v35 }
 0x388   : > { %v2142_v2 = vadd.f32 %v2141_v44, %v4579_v37 }
 0x389   : > { %v2163_v51 = vadd.f32 %v2162_v52, %v4581_v42 }
 0x38a   : > { %v2143_v3 = vadd.f32 %v2142_v2, %v4586_v20 }
 0x38b   : > { %v2164_v53 = vadd.f32 %v2163_v51, %v4589_v57 }
 0x38c   : > { %v2144_v0 = vadd.f32 %v2143_v3, %v4591_v4 }
 0x38d   : > { %v2165_v54 = vadd.f32 %v2164_v53, %v4593_v24 }
 0x38e   : > { %v2145_v26 = vadd.f32 %v2144_v0, %v4598_v34 }
 0x38f   : > { %v2166_v6 = vadd.f32 %v2165_v54, %v4601_v40 }
 0x390   : > { %v2146_v58 = vadd.f32 %v2145_v26, %v4603_v41 }
 0x391   : > { %v2167_v30 = vadd.f32 %v2166_v6, %v4605_v8 }
 0x392   : > { %v2147_v31 = vrot.slane %v2146_v58, 4 }
 0x393   : > { %v2168_v55 = vrot.slane %v2167_v30, 4 }
 0x394   : > { %v2148_v62 = vadd.f32 %v2147_v31, %v2146_v58 }
 0x395   : > { %v2169_v39 = vadd.f32 %v2168_v55, %v2167_v30 }
 0x396   : > { %v2149_v43 = vrot.slane %v2148_v62, 2 }
 0x397   : > { %v2170_v5 = vrot.slane %v2169_v39, 2 }
 0x398   : > { %v2150_v49 = vadd.f32 %v2149_v43, %v2148_v62 }
 0x399   : > { %v2171_v56 = vadd.f32 %v2170_v5, %v2169_v39 }
 0x39a   : > { %v2151_v15 = vrot.slane %v2150_v49, 1 }
 0x39b   : > { %v2172_v10 = vrot.slane %v2171_v56, 1 }
 0x39c   : > { %v2152_v11 = vadd.f32 %v2151_v15, %v2150_v49 }
 0x39d   : > { %v2173_v25 = vadd.f32 %v2172_v10, %v2171_v56 }
 0x39e   : > { %v2175_v12 = vmul.f32 0.0078125, %v2152_v11 }
 0x3a0   : > { %v4673_v32 = vsub.f32 %v4608_v59, %v2175_v12  ;;  %v4676_v47 = vsub.f32 %v4611_v60, %v2175_v12  ;;  %v4679_v33 = vsub.f32 %v4624_v27, %v2175_v12  ;;  %v4682_v16 = vsub.f32 %v4631_v18, %v2175_v12 }
 0x3a1   : > { %v4684_v44 = vsub.f32 %v3269_v28, %v2175_v12  ;;  %v4686_v52 = vsub.f32 %v3271_v61, %v2175_v12  ;;  %v4688_v2 = vsub.f32 %v3273_v45, %v2175_v12  ;;  %v4690_v51 = vsub.f32 %v3275_v7, %v2175_v12 }
 0x3a2   : > { %v4693_v59 = vsub.f32 %v4562_v13, %v2175_v12  ;;  %v4696_v60 = vsub.f32 %v4567_v46, %v2175_v12  ;;  %v4699_v27 = vsub.f32 %v4574_v14, %v2175_v12  ;;  %v4702_v18 = vsub.f32 %v4579_v37, %v2175_v12 }
 0x3a3   : > { %v4705_v28 = vsub.f32 %v4586_v20, %v2175_v12  ;;  %v4708_v61 = vsub.f32 %v4591_v4, %v2175_v12  ;;  %v4711_v45 = vsub.f32 %v4598_v34, %v2175_v12  ;;  %v4714_v13 = vsub.f32 %v4603_v41, %v2175_v12 }
 0x3a4   : > { %v2209_v46 = vmul.f32 %v4673_v32, %v4673_v32  ;;  %v2211_v14 = vmul.f32 %v4676_v47, %v4676_v47  ;;  %v2176_v37 = vmul.f32 0.0078125, %v2173_v25  ;;  %v2213_v20 = vmul.f32 %v4679_v33, %v4679_v33 }
 0x3a5   : > { %v2215_v4 = vmul.f32 %v4682_v16, %v4682_v16  ;;  %v2221_v30 = vmul.f32 %v4688_v2, %v4688_v2  ;;  %v2225_v5 = vmul.f32 %v4693_v59, %v4693_v59  ;;  %v2227_v10 = vmul.f32 %v4696_v60, %v4696_v60 }
 0x3a6   : > { %v2241_v7 = vadd.f32 %v2211_v14, %v2209_v46  ;;  %v4725_v34 = vsub.f32 %v4614_v19, %v2176_v37  ;;  %v4728_v41 = vsub.f32 %v4617_v21, %v2176_v37  ;;  %v4731_v3 = vsub.f32 %v4627_v50, %v2176_v37 }
 0x3a7   : > { %v4734_v53 = vsub.f32 %v4635_v22, %v2176_v37  ;;  %v4737_v0 = vsub.f32 %v4641_v29, %v2176_v37  ;;  %v4740_v54 = vsub.f32 %v4646_v36, %v2176_v37  ;;  %v4743_v26 = vsub.f32 %v4651_v9, %v2176_v37 }
 0x3a8   : > { %v2242_v19 = vadd.f32 %v2241_v7, %v2213_v20  ;;  %v4745_v6 = vsub.f32 %v3276_v23, %v2176_v37  ;;  %v4748_v21 = vsub.f32 %v4565_v63, %v2176_v37  ;;  %v4751_v50 = vsub.f32 %v4569_v17, %v2176_v37 }
 0x3a9   : > { %v4754_v22 = vsub.f32 %v4577_v35, %v2176_v37  ;;  %v4757_v29 = vsub.f32 %v4581_v42, %v2176_v37  ;;  %v4760_v36 = vsub.f32 %v4589_v57, %v2176_v37  ;;  %v4763_v9 = vsub.f32 %v4593_v24, %v2176_v37 }
 0x3aa   : > { %v2217_v23 = vmul.f32 %v4684_v44, %v4684_v44  ;;  %v2243_v63 = vadd.f32 %v2242_v19, %v2215_v4  ;;  %v4768_v58 = vsub.f32 %v4601_v40, %v2176_v37  ;;  %v4771_v17 = vsub.f32 %v4605_v8, %v2176_v37 }
 0x3ab   : > { %v2210_v35 = vmul.f32 %v4725_v34, %v4725_v34  ;;  %v2212_v42 = vmul.f32 %v4728_v41, %v4728_v41  ;;  %v2219_v57 = vmul.f32 %v4686_v52, %v4686_v52  ;;  %v2214_v40 = vmul.f32 %v4731_v3, %v4731_v3 }
 0x3ac   : > { %v2244_v24 = vadd.f32 %v2243_v63, %v2217_v23  ;;  %v2223_v8 = vmul.f32 %v4690_v51, %v4690_v51  ;;  %v2216_v39 = vmul.f32 %v4734_v53, %v4734_v53  ;;  %v2218_v56 = vmul.f32 %v4737_v0, %v4737_v0 }
 0x3ad   : > { %v2262_v55 = vadd.f32 %v2212_v42, %v2210_v35  ;;  %v2220_v12 = vmul.f32 %v4740_v54, %v4740_v54  ;;  %v2229_v46 = vmul.f32 %v4699_v27, %v4699_v27  ;;  %v2222_v37 = vmul.f32 %v4743_v26, %v4743_v26 }
 0x3ae   : > { %v2245_v31 = vadd.f32 %v2244_v24, %v2219_v57  ;;  %v2231_v4 = vmul.f32 %v4702_v18, %v4702_v18  ;;  %v2224_v19 = vmul.f32 %v4745_v6, %v4745_v6  ;;  %v2233_v63 = vmul.f32 %v4705_v28, %v4705_v28 }
 0x3af   : > { %v2263_v43 = vadd.f32 %v2262_v55, %v2214_v40  ;;  %v2226_v42 = vmul.f32 %v4748_v21, %v4748_v21  ;;  %v2235_v24 = vmul.f32 %v4708_v61, %v4708_v61  ;;  %v2237_v55 = vmul.f32 %v4711_v45, %v4711_v45 }
 0x3b0   : > { %v2246_v62 = vadd.f32 %v2245_v31, %v2221_v30  ;;  %v2228_v31 = vmul.f32 %v4751_v50, %v4751_v50 }
 0x3b1   : > { %v2264_v15 = vadd.f32 %v2263_v43, %v2216_v39  ;;  %v2239_v43 = vmul.f32 %v4714_v13, %v4714_v13 }
 0x3b2   : > { %v2247_v49 = vadd.f32 %v2246_v62, %v2223_v8  ;;  %v2230_v62 = vmul.f32 %v4754_v22, %v4754_v22 }
 0x3b3   : > { %v2265_v25 = vadd.f32 %v2264_v15, %v2218_v56 }
 0x3b4   : > { %v2248_v11 = vadd.f32 %v2247_v49, %v2225_v5  ;;  %v2232_v49 = vmul.f32 %v4757_v29, %v4757_v29 }
 0x3b5   : > { %v2266_v20 = vadd.f32 %v2265_v25, %v2220_v12  ;;  %v2236_v25 = vmul.f32 %v4763_v9, %v4763_v9 }
 0x3b6   : > { %v2249_v14 = vadd.f32 %v2248_v11, %v2227_v10  ;;  %v2234_v10 = vmul.f32 %v4760_v36, %v4760_v36 }
 0x3b7   : > { %v2267_v23 = vadd.f32 %v2266_v20, %v2222_v37  ;;  %v2238_v37 = vmul.f32 %v4768_v58, %v4768_v58 }
 0x3b8   : > { %v2250_v7 = vadd.f32 %v2249_v14, %v2229_v46 }
 0x3b9   : > { %v2268_v57 = vadd.f32 %v2267_v23, %v2224_v19 }
 0x3ba   : > { %v2251_v35 = vadd.f32 %v2250_v7, %v2231_v4  ;;  %v2240_v7 = vmul.f32 %v4771_v17, %v4771_v17 }
 0x3bb   : > { %v2269_v40 = vadd.f32 %v2268_v57, %v2226_v42 }
 0x3bc   : > { %v2252_v30 = vadd.f32 %v2251_v35, %v2233_v63 }
 0x3bd   : > { %v2270_v39 = vadd.f32 %v2269_v40, %v2228_v31 }
 0x3be   : > { %v2253_v8 = vadd.f32 %v2252_v30, %v2235_v24 }
 0x3bf   : > { %v2271_v56 = vadd.f32 %v2270_v39, %v2230_v62 }
 0x3c0   : > { %v2254_v5 = vadd.f32 %v2253_v8, %v2237_v55 }
 0x3c1   : > { %v2272_v11 = vadd.f32 %v2271_v56, %v2232_v49  ;;  %v2365_v49 = vld [vmem:[%s5204_s6] sm:$0x3] }
 0x3c2   : > { %v2255_v15 = vadd.f32 %v2254_v5, %v2239_v43  ;;  %v2321_v43 = vld [vmem:[%s5203_s5] sm:$0x3] }
 0x3c3   : > { %v2273_v46 = vadd.f32 %v2272_v11, %v2234_v10  ;;  %v4834_v56 = vrot.slane %v2321_v43, %v4346_v1  ;;  %v4839_v10 = vrot.slane %v2365_v49, %v4346_v1 }
 0x3c4   : > { %v2256_v12 = vrot.slane %v2255_v15, 4 }
 0x3c5   : > { %v2274_v20 = vadd.f32 %v2273_v46, %v2236_v25 }
 0x3c6   : > { %v2257_v14 = vadd.f32 %v2256_v12, %v2255_v15 }
 0x3c7   : > { %v2275_v19 = vadd.f32 %v2274_v20, %v2238_v37 }
 0x3c8   : > { %v2258_v4 = vrot.slane %v2257_v14, 2 }
 0x3c9   : > { %v2276_v63 = vadd.f32 %v2275_v19, %v2240_v7 }
 0x3ca   : > { %v2259_v23 = vadd.f32 %v2258_v4, %v2257_v14 }
 0x3cb   : > { %v2277_v42 = vrot.slane %v2276_v63, 4 }
 0x3cc   : > { %v2260_v35 = vrot.slane %v2259_v23, 1 }
 0x3cd   : > { %v2278_v24 = vadd.f32 %v2277_v42, %v2276_v63 }
 0x3ce   : > { %v2261_v57 = vadd.f32 %v2260_v35, %v2259_v23 }
 0x3cf   : > { %v2279_v31 = vrot.slane %v2278_v24, 2 }
 0x3d0   : > { %v2283_v30 = vmul.f32 0.0078125, %v2261_v57 }
 0x3d1   : > { %v2280_v55 = vadd.f32 %v2279_v31, %v2278_v24 }
 0x3d2   : > { %v2285_v40 = vadd.f32 1e-05, %v2283_v30 }
 0x3d3   : > { %v2281_v8 = vrot.slane %v2280_v55, 1 }
 0x3d4   : > { %3620 = vrsqrt.f32 %v2285_v40  ;;  %v4874_v40 = vrot.slane %v2321_v43, %v4327_v48 }
 0x3d5   : > { %v2282_v62 = vadd.f32 %v2281_v8, %v2280_v55  ;;  %v4877_v55 = vrot.slane %v2365_v49, %v4327_v48 }
 0x3d7   : > { %v2284_v39 = vmul.f32 0.0078125, %v2282_v62 }
 0x3d9   : > { %v2286_v5 = vadd.f32 1e-05, %v2284_v39 }
 0x3db   : > { %3622 = vrsqrt.f32 %v2286_v5 }
 0x3de   : > { %v4836_v15 = vpop.eup %3620 }
 0x3df   : > { %v2303_v11 = vmul.f32 %v4836_v15, %v4690_v51  ;;  %v2289_v12 = vmul.f32 %v4836_v15, %v4673_v32  ;;  %v2291_v25 = vmul.f32 %v4836_v15, %v4676_v47  ;;  %v2293_v46 = vmul.f32 %v4836_v15, %v4679_v33 }
 0x3e0   : > { %v2295_v14 = vmul.f32 %v4836_v15, %v4682_v16  ;;  %v2297_v37 = vmul.f32 %v4836_v15, %v4684_v44  ;;  %v2299_v1 = vmul.f32 %v4836_v15, %v4686_v52  ;;  %v2301_v51 = vmul.f32 %v4836_v15, %v4688_v2 }
 0x3e1   : > { %v2347_v32 = vmul.f32 %v4834_v56, %v2303_v11  ;;  %v2333_v20 = vmul.f32 %v4834_v56, %v2289_v12  ;;  %v2335_v47 = vmul.f32 %v4834_v56, %v2291_v25  ;;  %v2337_v33 = vmul.f32 %v4834_v56, %v2293_v46 }
 0x3e2   : > { %v2339_v4 = vmul.f32 %v4834_v56, %v2295_v14  ;;  %v2341_v16 = vmul.f32 %v4834_v56, %v2297_v37  ;;  %v2343_v44 = vmul.f32 %v4834_v56, %v2299_v1  ;;  %v2345_v7 = vmul.f32 %v4834_v56, %v2301_v51 }
 0x3e3   : > { %v2377_v52 = vadd.f32 %v4839_v10, %v2333_v20  ;;  %v2379_v2 = vadd.f32 %v4839_v10, %v2335_v47  ;;  %v2381_v19 = vadd.f32 %v4839_v10, %v2337_v33  ;;  %v2391_v23 = vadd.f32 %v4839_v10, %v2347_v32 }
 0x3e4   : > { %v2383_v63 = vadd.f32 %v4839_v10, %v2339_v4  ;;  %v2385_v35 = vadd.f32 %v4839_v10, %v2341_v16  ;;  %v2387_v42 = vadd.f32 %v4839_v10, %v2343_v44  ;;  %v2389_v57 = vadd.f32 %v4839_v10, %v2345_v7 }
 0x3e5   : > { %v2409_v24 = vmax.f32 %v2377_v52, 0.0  ;;  %v2411_v30 = vmax.f32 %v2379_v2, 0.0  ;;  %v2413_v31 = vmax.f32 %v2381_v19, 0.0  ;;  %v2423_v62 = vmax.f32 %v2391_v23, 0.0  ;;  %v4879_v39 = vpop.eup %3622 }
 0x3e6   : > { %v2415_v8 = vmax.f32 %v2383_v63, 0.0  ;;  %v2417_v11 = vmax.f32 %v2385_v35, 0.0  ;;  %v2419_v12 = vmax.f32 %v2387_v42, 0.0  ;;  %v2421_v25 = vmax.f32 %v2389_v57, 0.0 }
 0x3e7   : > { %v2441_v5 = vpack.c.bf16 %v2411_v30, %v2409_v24  ;;  %v2304_v46 = vmul.f32 %v4879_v39, %v4745_v6  ;;  %v2290_v14 = vmul.f32 %v4879_v39, %v4725_v34  ;;  %v2292_v43 = vmul.f32 %v4879_v39, %v4728_v41 }
 0x3e8   : > { %v2294_v48 = vmul.f32 %v4879_v39, %v4731_v3  ;;  %v2296_v49 = vmul.f32 %v4879_v39, %v4734_v53  ;;  %v2443_v37 = vpack.c.bf16 %v2415_v8, %v2413_v31  ;;  %v2298_v1 = vmul.f32 %v4879_v39, %v4737_v0 }
 0x3e9   : > { %v2300_v51 = vmul.f32 %v4879_v39, %v4740_v54  ;;  %v2348_v6 = vmul.f32 %v4874_v40, %v2304_v46  ;;  %v2334_v34 = vmul.f32 %v4874_v40, %v2290_v14  ;;  %v2336_v32 = vmul.f32 %v4874_v40, %v2292_v43 }
 0x3ea   : > { %v2338_v41 = vmul.f32 %v4874_v40, %v2294_v48  ;;  %v2340_v3 = vmul.f32 %v4874_v40, %v2296_v49  ;;  %v2342_v20 = vmul.f32 %v4874_v40, %v2298_v1  ;;  %v2445_v47 = vpack.c.bf16 %v2419_v12, %v2417_v11 }
 0x3eb   : > { %v2344_v53 = vmul.f32 %v4874_v40, %v2300_v51  ;;  %v2378_v0 = vadd.f32 %v4877_v55, %v2334_v34  ;;  %v2380_v33 = vadd.f32 %v4877_v55, %v2336_v32  ;;  %v2302_v4 = vmul.f32 %v4879_v39, %v4743_v26 }
 0x3ec   : > { %v2382_v54 = vadd.f32 %v4877_v55, %v2338_v41  ;;  %v2384_v16 = vadd.f32 %v4877_v55, %v2340_v3  ;;  %v2386_v44 = vadd.f32 %v4877_v55, %v2342_v20  ;;  %v2392_v52 = vadd.f32 %v4877_v55, %v2348_v6 }
 0x3ed   : > { %v2388_v7 = vadd.f32 %v4877_v55, %v2344_v53  ;;  %v2410_v2 = vmax.f32 %v2378_v0, 0.0  ;;  %v2412_v19 = vmax.f32 %v2380_v33, 0.0  ;;  %v2346_v63 = vmul.f32 %v4874_v40, %v2302_v4 }
 0x3ee   : > { %v2414_v23 = vmax.f32 %v2382_v54, 0.0  ;;  %v2416_v35 = vmax.f32 %v2384_v16, 0.0  ;;  %v2418_v42 = vmax.f32 %v2386_v44, 0.0  ;;  %v2424_v26 = vmax.f32 %v2392_v52, 0.0 }
 0x3ef   : > { %v2420_v57 = vmax.f32 %v2388_v7, 0.0  ;;  %v2442_v24 = vpack.c.bf16 %v2412_v19, %v2410_v2  ;;  %v2390_v30 = vadd.f32 %v4877_v55, %v2346_v63  ;;  %v2447_v31 = vpack.c.bf16 %v2423_v62, %v2421_v25 }
 0x3f0   : > { %v2444_v8 = vpack.c.bf16 %v2416_v35, %v2414_v23  ;;  %v2306_v14 = vmul.f32 %v4879_v39, %v4748_v21  ;;  %v2308_v43 = vmul.f32 %v4879_v39, %v4751_v50  ;;  %v2305_v62 = vmul.f32 %v4836_v15, %v4693_v59 }
 0x3f1   : > { %v2446_v11 = vpack.c.bf16 %v2420_v57, %v2418_v42  ;;  %2624 = vmatprep.mubr.bf16.mxu1 %v2442_v24  ;;  %v2422_v12 = vmax.f32 %v2390_v30, 0.0  ;;  %v2310_v25 = vmul.f32 %v4879_v39, %v4754_v22  ;;  %v2312_v21 = vmul.f32 %v4879_v39, %v4757_v29 }
 0x3f2   : > { %2625 = vmatmul.mubr.bf16.vlgmr.msra.gmra.mrb[16].mxu1 %v2441_v5  ;;  %v2350_v48 = vmul.f32 %v4874_v40, %v2306_v14  ;;  %v2352_v49 = vmul.f32 %v4874_v40, %v2308_v43  ;;  %v2307_v5 = vmul.f32 %v4836_v15, %v4696_v60  ;;  %v2349_v1 = vmul.f32 %v4834_v56, %v2305_v62 }
 0x3f3   : > { %2632 = vmatprep.mubr.bf16.mxu1 %v2444_v8  ;;  %v2448_v46 = vpack.c.bf16 %v2424_v26, %v2422_v12  ;;  %v2354_v59 = vmul.f32 %v4874_v40, %v2310_v25  ;;  %v2356_v60 = vmul.f32 %v4874_v40, %v2312_v21  ;;  %v2309_v22 = vmul.f32 %v4836_v15, %v4699_v27 }
 0x3f4   : > { %v2394_v50 = vadd.f32 %v4877_v55, %v2350_v48  ;;  %v2351_v51 = vmul.f32 %v4834_v56, %v2307_v5  ;;  %v2311_v29 = vmul.f32 %v4836_v15, %v4702_v18  ;;  %v2393_v32 = vadd.f32 %v4839_v10, %v2349_v1 }
 0x3f5   : > { %v2398_v3 = vadd.f32 %v4877_v55, %v2354_v59  ;;  %v2400_v20 = vadd.f32 %v4877_v55, %v2356_v60  ;;  %v2316_v0 = vmul.f32 %v4879_v39, %v4763_v9  ;;  %v2353_v27 = vmul.f32 %v4834_v56, %v2309_v22 }
 0x3f6   : > { %v2426_v6 = vmax.f32 %v2394_v50, 0.0  ;;  %v2395_v41 = vadd.f32 %v4839_v10, %v2351_v51  ;;  %v2355_v18 = vmul.f32 %v4834_v56, %v2311_v29  ;;  %v2425_v33 = vmax.f32 %v2393_v32, 0.0 }
 0x3f7   : > { %v2430_v4 = vmax.f32 %v2398_v3, 0.0  ;;  %v2432_v16 = vmax.f32 %v2400_v20, 0.0  ;;  %v2360_v7 = vmul.f32 %v4874_v40, %v2316_v0  ;;  %v2397_v52 = vadd.f32 %v4839_v10, %v2353_v27 }
 0x3f8   : > { %v2427_v54 = vmax.f32 %v2395_v41, 0.0  ;;  %v2313_v19 = vmul.f32 %v4836_v15, %v4705_v28  ;;  %v2315_v23 = vmul.f32 %v4836_v15, %v4708_v61  ;;  %v2318_v42 = vmul.f32 %v4879_v39, %v4768_v58 }
 0x3f9   : > { %v2452_v9 = vpack.c.bf16 %v2432_v16, %v2430_v4  ;;  %v2404_v35 = vadd.f32 %v4877_v55, %v2360_v7  ;;  %v2320_v57 = vmul.f32 %v4879_v39, %v4771_v17  ;;  %v2429_v24 = vmax.f32 %v2397_v52, 0.0 }
 0x3fa   : > { %2633 = vmatmul.mubr.bf16.gmra.mrb[20].mxu1 %v2443_v37  ;;  %v2396_v37 = vadd.f32 %v4877_v55, %v2352_v49  ;;  %v2449_v2 = vpack.c.bf16 %v2427_v54, %v2425_v33  ;;  %v2357_v26 = vmul.f32 %v4834_v56, %v2313_v19  ;;  %v2359_v28 = vmul.f32 %v4834_v56, %v2315_v23 }
 0x3fb   : > { %2640 = vmatprep.mubr.bf16.mxu1 %v2446_v11  ;;  %v2436_v61 = vmax.f32 %v2404_v35, 0.0  ;;  %v2362_v8 = vmul.f32 %v4874_v40, %v2318_v42  ;;  %v2364_v11 = vmul.f32 %v4874_v40, %v2320_v57  ;;  %v2317_v17 = vmul.f32 %v4836_v15, %v4711_v45 }
 0x3fc   : > { %v2428_v34 = vmax.f32 %v2396_v37, 0.0  ;;  %v2401_v58 = vadd.f32 %v4839_v10, %v2357_v26  ;;  %v4978_v51 = vand.u32 127, %v550_v38 }
 0x3fd   : > { %v2406_v43 = vadd.f32 %v4877_v55, %v2362_v8  ;;  %v2408_v48 = vadd.f32 %v4877_v55, %v2364_v11  ;;  %v2361_v62 = vmul.f32 %v4834_v56, %v2317_v17 }
 0x3fe   : > { %v2450_v53 = vpack.c.bf16 %v2428_v34, %v2426_v6  ;;  %v2433_v49 = vmax.f32 %v2401_v58, 0.0  ;;  %vm2691_vm0 = vcmp.lt.s32.totalorder %v4978_v51, 101 }
 0x3ff   : > { %v2438_v25 = vmax.f32 %v2406_v43, 0.0  ;;  %v2440_v21 = vmax.f32 %v2408_v48, 0.0  ;;  %v2405_v45 = vadd.f32 %v4839_v10, %v2361_v62 }
 0x401   : > { %v2437_v37 = vmax.f32 %v2405_v45, 0.0 }
 0x402   : > { %2641 = vmatmul.mubr.bf16.gmra.mrb[24].mxu1 %v2445_v47  ;;  %v2314_v47 = vmul.f32 %v4879_v39, %v4760_v36  ;;  %v2399_v36 = vadd.f32 %v4839_v10, %v2355_v18  ;;  %v2319_v39 = vmul.f32 %v4836_v15, %v4714_v13  ;;  %v2456_v15 = vpack.c.bf16 %v2440_v21, %v2438_v25 }
 0x403   : > { %2648 = vmatprep.mubr.bf16.mxu1 %v2448_v46  ;;  %v2403_v46 = vadd.f32 %v4839_v10, %v2359_v28 }
 0x404   : > { %v2358_v44 = vmul.f32 %v4874_v40, %v2314_v47  ;;  %v2431_v30 = vmax.f32 %v2399_v36, 0.0  ;;  %v2363_v5 = vmul.f32 %v4834_v56, %v2319_v39  ;;  %v4983_v56 = vld [vmem:[%s5206_s8] ss:$0 sm:$0xff] }
 0x405   : > { %v2435_v40 = vmax.f32 %v2403_v46, 0.0 }
 0x406   : > { %v2402_v63 = vadd.f32 %v4877_v55, %v2358_v44  ;;  %v2451_v12 = vpack.c.bf16 %v2431_v30, %v2429_v24  ;;  %v2407_v13 = vadd.f32 %v4839_v10, %v2363_v5 }
 0x407   : > { %v2453_v50 = vpack.c.bf16 %v2435_v40, %v2433_v49 }
 0x408   : > { %v2439_v55 = vmax.f32 %v2407_v13, 0.0 }
 0x40a   : > { %2649 = vmatmul.mubr.bf16.gmra.mrb[28].mxu1 %v2447_v31  ;;  %v2434_v31 = vmax.f32 %v2402_v63, 0.0  ;;  %v2455_v1 = vpack.c.bf16 %v2439_v55, %v2437_v37 }
 0x40b   : > { %2656 = vmatprep.mubr.bf16.mxu1 %v2450_v53 }
 0x40c   : > { %v2454_v14 = vpack.c.bf16 %v2436_v61, %v2434_v31 }
 0x412   : > { %2657 = vmatmul.mubr.bf16.gmra.mrb[32].mxu1 %v2449_v2 }
 0x413   : > { %2664 = vmatprep.mubr.bf16.mxu1 %v2452_v9 }
 0x41a   : > { %2665 = vmatmul.mubr.bf16.gmra.mrb[36].mxu1 %v2451_v12 }
 0x41b   : > { %2672 = vmatprep.mubr.bf16.mxu1 %v2454_v14 }
 0x422   : > { %2673 = vmatmul.mubr.bf16.gmra.mrb[40].mxu1 %v2453_v50 }
 0x423   : > { %2680 = vmatprep.mubr.bf16.mxu1 %v2456_v15 }
 0x42a   : > { %2681 = vmatmul.mubr.bf16.gmra.mrb[44].mxu1 %v2455_v1 }
 0x4c5   : > { %v3181_v59 = vpop.f32.mrb[16].mxu1 }
 0x4c6   : > { %v3182_v60 = vpop.f32.mrb[17].mxu1 }
 0x4c7   : > { %v3183_v6 = vadd.f32 %v3182_v60, %v3181_v59  ;;  %v3184_v34 = vpop.f32.mrb[18].mxu1 }
 0x4c8   : > { %v3185_v10 = vpop.f32.mrb[19].mxu1 }
 0x4c9   : > { %v3186_v22 = vadd.f32 %v3185_v10, %v3184_v34  ;;  %v2627_v29 = vadd.f32 %v3183_v6, %v4983_v56 }
 0x4cb   : > { %v4989_v32 = vsel %vm2691_vm0, %v2627_v29, -1e+30  ;;  %v2630_v38 = vadd.f32 %v3186_v22, %v4983_v56 }
 0x4cc   : > { %2708 = vmax.xlane.f32.xlu0 %v4989_v32 }
 0x4cd   : > { %v3187_v41 = vpop.f32.mrb[20].mxu1  ;;  %v4995_v47 = vsel %vm2691_vm0, %v2630_v38, -1e+30 }
 0x4ce   : > { %v3188_v3 = vpop.f32.mrb[21].mxu1 }
 0x4cf   : > { %v3189_v20 = vadd.f32 %v3188_v3, %v3187_v41  ;;  %v3190_v53 = vpop.f32.mrb[22].mxu1 }
 0x4d0   : > { %v3191_v0 = vpop.f32.mrb[23].mxu1  ;;  %2710 = vmax.xlane.f32.xlu0 %v4995_v47 }
 0x4d1   : > { %v3192_v27 = vadd.f32 %v3191_v0, %v3190_v53  ;;  %v2635_v18 = vadd.f32 %v3189_v20, %v4983_v56 }
 0x4d3   : > { %v5001_v33 = vsel %vm2691_vm0, %v2635_v18, -1e+30  ;;  %v2638_v54 = vadd.f32 %v3192_v27, %v4983_v56 }
 0x4d4   : > { %2712 = vmax.xlane.f32.xlu1 %v5001_v33 }
 0x4d5   : > { %v3193_v4 = vpop.f32.mrb[24].mxu1  ;;  %v5007_v52 = vsel %vm2691_vm0, %v2638_v54, -1e+30 }
 0x4d6   : > { %v3194_v16 = vpop.f32.mrb[25].mxu1 }
 0x4d7   : > { %v3195_v44 = vadd.f32 %v3194_v16, %v3193_v4  ;;  %v3196_v7 = vpop.f32.mrb[26].mxu1 }
 0x4d8   : > { %v3197_v36 = vpop.f32.mrb[27].mxu1  ;;  %2714 = vmax.xlane.f32.xlu1 %v5007_v52 }
 0x4d9   : > { %v3198_v2 = vadd.f32 %v3197_v36, %v3196_v7  ;;  %v2643_v9 = vadd.f32 %v3195_v44, %v4983_v56 }
 0x4db   : > { %v5013_v19 = vsel %vm2691_vm0, %v2643_v9, -1e+30  ;;  %v2646_v23 = vadd.f32 %v3198_v2, %v4983_v56 }
 0x4dc   : > { %2716 = vmax.xlane.f32.xlu0 %v5013_v19 }
 0x4dd   : > { %v3199_v63 = vpop.f32.mrb[28].mxu1  ;;  %v5019_v35 = vsel %vm2691_vm0, %v2646_v23, -1e+30 }
 0x4de   : > { %v3200_v42 = vpop.f32.mrb[29].mxu1  ;;  %2718 = vmax.xlane.f32.xlu1 %v5019_v35 }
 0x4df   : > { %v3201_v57 = vadd.f32 %v3200_v42, %v3199_v63  ;;  %v3202_v24 = vpop.f32.mrb[30].mxu1 }
 0x4e0   : > { %v3203_v30 = vpop.f32.mrb[31].mxu1 }
 0x4e1   : > { %v3204_v26 = vadd.f32 %v3203_v30, %v3202_v24  ;;  %v2651_v28 = vadd.f32 %v3201_v57, %v4983_v56 }
 0x4e3   : > { %v5025_v31 = vsel %vm2691_vm0, %v2651_v28, -1e+30  ;;  %v2654_v61 = vadd.f32 %v3204_v26, %v4983_v56 }
 0x4e4   : > { %2720 = vmax.xlane.f32.xlu0 %v5025_v31 }
 0x4e5   : > { %v3205_v8 = vpop.f32.mrb[32].mxu1  ;;  %v5031_v11 = vsel %vm2691_vm0, %v2654_v61, -1e+30 }
 0x4e6   : > { %v3206_v12 = vpop.f32.mrb[33].mxu1  ;;  %2722 = vmax.xlane.f32.xlu1 %v5031_v11 }
 0x4e7   : > { %v3207_v58 = vadd.f32 %v3206_v12, %v3205_v8  ;;  %v3208_v46 = vpop.f32.mrb[34].mxu1 }
 0x4e8   : > { %v3209_v17 = vpop.f32.mrb[35].mxu1 }
 0x4e9   : > { %v3210_v39 = vadd.f32 %v3209_v17, %v3208_v46  ;;  %v2659_v14 = vadd.f32 %v3207_v58, %v4983_v56 }
 0x4eb   : > { %v5037_v43 = vsel %vm2691_vm0, %v2659_v14, -1e+30  ;;  %v2662_v48 = vadd.f32 %v3210_v39, %v4983_v56 }
 0x4ec   : > { %2724 = vmax.xlane.f32.xlu0 %v5037_v43 }
 0x4ed   : > { %v3211_v49 = vpop.f32.mrb[36].mxu1  ;;  %v5043_v40 = vsel %vm2691_vm0, %v2662_v48, -1e+30 }
 0x4ee   : > { %v3212_v62 = vpop.f32.mrb[37].mxu1  ;;  %2726 = vmax.xlane.f32.xlu1 %v5043_v40 }
 0x4ef   : > { %v3213_v5 = vadd.f32 %v3212_v62, %v3211_v49  ;;  %v3214_v25 = vpop.f32.mrb[38].mxu1 }
 0x4f0   : > { %v3215_v21 = vpop.f32.mrb[39].mxu1 }
 0x4f1   : > { %v3216_v50 = vadd.f32 %v3215_v21, %v3214_v25  ;;  %v2667_v45 = vadd.f32 %v3213_v5, %v4983_v56 }
 0x4f3   : > { %v5049_v13 = vsel %vm2691_vm0, %v2667_v45, -1e+30  ;;  %v2670_v15 = vadd.f32 %v3216_v50, %v4983_v56 }
 0x4f4   : > { %2728 = vmax.xlane.f32.xlu0 %v5049_v13 }
 0x4f5   : > { %v3217_v37 = vpop.f32.mrb[40].mxu1  ;;  %v5055_v55 = vsel %vm2691_vm0, %v2670_v15, -1e+30 }
 0x4f6   : > { %v3218_v1 = vpop.f32.mrb[41].mxu1  ;;  %2730 = vmax.xlane.f32.xlu1 %v5055_v55 }
 0x4f7   : > { %v3219_v59 = vadd.f32 %v3218_v1, %v3217_v37  ;;  %v3220_v60 = vpop.f32.mrb[42].mxu1 }
 0x4f8   : > { %v3221_v6 = vpop.f32.mrb[43].mxu1 }
 0x4f9   : > { %v3222_v34 = vadd.f32 %v3221_v6, %v3220_v60  ;;  %v2675_v10 = vadd.f32 %v3219_v59, %v4983_v56 }
 0x4fb   : > { %v5061_v22 = vsel %vm2691_vm0, %v2675_v10, -1e+30  ;;  %v2678_v29 = vadd.f32 %v3222_v34, %v4983_v56 }
 0x4fc   : > { %2732 = vmax.xlane.f32.xlu0 %v5061_v22 }
 0x4fd   : > { %v3223_v38 = vpop.f32.mrb[44].mxu1  ;;  %v5067_v41 = vsel %vm2691_vm0, %v2678_v29, -1e+30 }
 0x4fe   : > { %v3224_v3 = vpop.f32.mrb[45].mxu1  ;;  %2734 = vmax.xlane.f32.xlu1 %v5067_v41 }
 0x4ff   : > { %v3225_v20 = vadd.f32 %v3224_v3, %v3223_v38  ;;  %v3226_v53 = vpop.f32.mrb[46].mxu1 }
 0x500   : > { %v3227_v0 = vpop.f32.mrb[47].mxu1 }
 0x501   : > { %v3228_v27 = vadd.f32 %v3227_v0, %v3226_v53  ;;  %v2683_v18 = vadd.f32 %v3225_v20, %v4983_v56 }
 0x503   : > { %v5073_v54 = vsel %vm2691_vm0, %v2683_v18, -1e+30  ;;  %v2686_v4 = vadd.f32 %v3228_v27, %v4983_v56 }
 0x504   : > { %2736 = vmax.xlane.f32.xlu0 %v5073_v54 }
 0x505   : > { %v5079_v16 = vsel %vm2691_vm0, %v2686_v4, -1e+30 }
 0x506   : > { %2738 = vmax.xlane.f32.xlu1 %v5079_v16 }
 0x559   : > { %v2709_v44 = vpop.xlane.xlu0 %2708 }
 0x55a   : > { %v2740_v7 = vsub.f32 %v4989_v32, %v2709_v44 }
 0x55c   : > { %v2756_v36 = vmul.f32 1.442695, %v2740_v7 }
 0x55d   : > { %v2711_v2 = vpop.xlane.xlu0 %2710 }
 0x55e   : > { %3624 = vpow2.f32 %v2756_v36  ;;  %v2741_v9 = vsub.f32 %v4995_v47, %v2711_v2 }
 0x560   : > { %v2758_v23 = vmul.f32 1.442695, %v2741_v9 }
 0x561   : > { %v2713_v63 = vpop.xlane.xlu1 %2712 }
 0x562   : > { %3626 = vpow2.f32 %v2758_v23  ;;  %v2742_v56 = vsub.f32 %v5001_v33, %v2713_v63 }
 0x564   : > { %v2760_v42 = vmul.f32 1.442695, %v2742_v56 }
 0x565   : > { %v2715_v57 = vpop.xlane.xlu1 %2714 }
 0x566   : > { %3628 = vpow2.f32 %v2760_v42  ;;  %v2743_v51 = vsub.f32 %v5007_v52, %v2715_v57 }
 0x568   : > { %v5086_v24 = vpop.eup %3624  ;;  %v2762_v30 = vmul.f32 1.442695, %v2743_v51 }
 0x569   : > { %2788 = vadd.xlane.f32.xlu0 %v5086_v24  ;;  %v2717_v32 = vpop.xlane.xlu0 %2716 }
 0x56a   : > { %3630 = vpow2.f32 %v2762_v30  ;;  %v2744_v26 = vsub.f32 %v5013_v19, %v2717_v32 }
 0x56b   : > { %v2719_v47 = vpop.xlane.xlu1 %2718 }
 0x56c   : > { %v5090_v28 = vpop.eup %3626  ;;  %v2764_v61 = vmul.f32 1.442695, %v2744_v26  ;;  %v2745_v33 = vsub.f32 %v5019_v35, %v2719_v47 }
 0x56d   : > { %2790 = vadd.xlane.f32.xlu1 %v5090_v28 }
 0x56e   : > { %3632 = vpow2.f32 %v2764_v61  ;;  %v2766_v8 = vmul.f32 1.442695, %v2745_v33 }
 0x570   : > { %v5094_v52 = vpop.eup %3628  ;;  %3634 = vpow2.f32 %v2766_v8 }
 0x571   : > { %2792 = vadd.xlane.f32.xlu0 %v5094_v52  ;;  %v2721_v12 = vpop.xlane.xlu0 %2720 }
 0x572   : > { %v2746_v58 = vsub.f32 %v5025_v31, %v2721_v12 }
 0x573   : > { %v2723_v46 = vpop.xlane.xlu1 %2722 }
 0x574   : > { %v5098_v19 = vpop.eup %3630  ;;  %v2768_v17 = vmul.f32 1.442695, %v2746_v58  ;;  %v2747_v39 = vsub.f32 %v5031_v11, %v2723_v46 }
 0x575   : > { %2794 = vadd.xlane.f32.xlu1 %v5098_v19 }
 0x576   : > { %3636 = vpow2.f32 %v2768_v17  ;;  %v2770_v35 = vmul.f32 1.442695, %v2747_v39 }
 0x578   : > { %v5102_v14 = vpop.eup %3632  ;;  %3638 = vpow2.f32 %v2770_v35 }
 0x579   : > { %2796 = vadd.xlane.f32.xlu0 %v5102_v14  ;;  %v2725_v48 = vpop.xlane.xlu0 %2724 }
 0x57a   : > { %v5105_v49 = vpop.eup %3634  ;;  %v2748_v31 = vsub.f32 %v5037_v43, %v2725_v48 }
 0x57b   : > { %v2727_v62 = vpop.xlane.xlu1 %2726  ;;  %2798 = vadd.xlane.f32.xlu1 %v5105_v49 }
 0x57c   : > { %v2772_v5 = vmul.f32 1.442695, %v2748_v31  ;;  %v2749_v11 = vsub.f32 %v5043_v40, %v2727_v62 }
 0x57e   : > { %3640 = vpow2.f32 %v2772_v5  ;;  %v2774_v25 = vmul.f32 1.442695, %v2749_v11 }
 0x580   : > { %v5110_v21 = vpop.eup %3636  ;;  %3642 = vpow2.f32 %v2774_v25 }
 0x581   : > { %2800 = vadd.xlane.f32.xlu0 %v5110_v21  ;;  %v2729_v50 = vpop.xlane.xlu0 %2728 }
 0x582   : > { %v5113_v45 = vpop.eup %3638  ;;  %v2750_v15 = vsub.f32 %v5049_v13, %v2729_v50 }
 0x583   : > { %v2731_v37 = vpop.xlane.xlu1 %2730  ;;  %2802 = vadd.xlane.f32.xlu1 %v5113_v45 }
 0x584   : > { %v2776_v43 = vmul.f32 1.442695, %v2750_v15  ;;  %v2751_v1 = vsub.f32 %v5055_v55, %v2731_v37 }
 0x586   : > { %3644 = vpow2.f32 %v2776_v43  ;;  %v2778_v40 = vmul.f32 1.442695, %v2751_v1 }
 0x588   : > { %v5118_v59 = vpop.eup %3640  ;;  %3646 = vpow2.f32 %v2778_v40 }
 0x589   : > { %2804 = vadd.xlane.f32.xlu0 %v5118_v59  ;;  %v2733_v60 = vpop.xlane.xlu0 %2732 }
 0x58a   : > { %v5121_v6 = vpop.eup %3642  ;;  %v2752_v34 = vsub.f32 %v5061_v22, %v2733_v60 }
 0x58b   : > { %v2735_v10 = vpop.xlane.xlu1 %2734  ;;  %2806 = vadd.xlane.f32.xlu1 %v5121_v6 }
 0x58c   : > { %v2780_v13 = vmul.f32 1.442695, %v2752_v34  ;;  %v2753_v29 = vsub.f32 %v5067_v41, %v2735_v10 }
 0x58e   : > { %3648 = vpow2.f32 %v2780_v13  ;;  %v2782_v55 = vmul.f32 1.442695, %v2753_v29 }
 0x590   : > { %v5126_v38 = vpop.eup %3644  ;;  %3650 = vpow2.f32 %v2782_v55 }
 0x591   : > { %2808 = vadd.xlane.f32.xlu0 %v5126_v38  ;;  %v2737_v3 = vpop.xlane.xlu0 %2736 }
 0x592   : > { %v5129_v20 = vpop.eup %3646  ;;  %v2754_v53 = vsub.f32 %v5073_v54, %v2737_v3 }
 0x593   : > { %v2739_v0 = vpop.xlane.xlu1 %2738  ;;  %2810 = vadd.xlane.f32.xlu1 %v5129_v20 }
 0x594   : > { %v2784_v22 = vmul.f32 1.442695, %v2754_v53  ;;  %v2755_v27 = vsub.f32 %v5079_v16, %v2739_v0 }
 0x596   : > { %3652 = vpow2.f32 %v2784_v22  ;;  %v2786_v41 = vmul.f32 1.442695, %v2755_v27 }
 0x598   : > { %v5134_v18 = vpop.eup %3648  ;;  %3654 = vpow2.f32 %v2786_v41 }
 0x599   : > { %2812 = vadd.xlane.f32.xlu0 %v5134_v18 }
 0x59a   : > { %v5137_v4 = vpop.eup %3650 }
 0x59b   : > { %2814 = vadd.xlane.f32.xlu1 %v5137_v4 }
 0x5a0   : > { %v5140_v44 = vpop.eup %3652 }
 0x5a1   : > { %2816 = vadd.xlane.f32.xlu0 %v5140_v44 }
 0x5a2   : > { %v5143_v54 = vpop.eup %3654 }
 0x5a3   : > { %2818 = vadd.xlane.f32.xlu1 %v5143_v54 }
 0x5f6   : > { %v2789_v16 = vpop.xlane.xlu0 %2788 }
 0x5f7   : > { %3656 = vrcp.f32 %v2789_v16 }
 0x5fa   : > { %v2791_v7 = vpop.xlane.xlu1 %2790 }
 0x5fb   : > { %3658 = vrcp.f32 %v2791_v7 }
 0x5fe   : > { %v2793_v36 = vpop.xlane.xlu0 %2792 }
 0x5ff   : > { %3660 = vrcp.f32 %v2793_v36 }
 0x601   : > { %v3657_v2 = vpop.eup %3656 }
 0x602   : > { %v2836_v9 = vmul.f32 %v3657_v2, %v5086_v24  ;;  %v2795_v23 = vpop.xlane.xlu1 %2794 }
 0x603   : > { %3662 = vrcp.f32 %v2795_v23 }
 0x604   : > { %2852 = vst [vmem:[#allocation12] sm:$0xff] %v2836_v9 }
 0x605   : > { %v3659_v63 = vpop.eup %3658 }
 0x606   : > { %v2837_v56 = vmul.f32 %v3659_v63, %v5090_v28  ;;  %v2797_v42 = vpop.xlane.xlu0 %2796 }
 0x607   : > { %3664 = vrcp.f32 %v2797_v42 }
 0x608   : > { %2853 = vst [vmem:[#allocation12 + $0x8] sm:$0xff] %v2837_v56  ;;  %v2799_v57 = vpop.xlane.xlu1 %2798 }
 0x609   : > { %v3661_v51 = vpop.eup %3660  ;;  %3666 = vrcp.f32 %v2799_v57 }
 0x60a   : > { %v2838_v30 = vmul.f32 %v3661_v51, %v5094_v52 }
 0x60c   : > { %2854 = vst [vmem:[#allocation12 + $0x10] sm:$0xff] %v2838_v30 }
 0x60d   : > { %v3663_v32 = vpop.eup %3662 }
 0x60e   : > { %v2839_v26 = vmul.f32 %v3663_v32, %v5098_v19  ;;  %v2801_v47 = vpop.xlane.xlu0 %2800 }
 0x60f   : > { %3668 = vrcp.f32 %v2801_v47 }
 0x610   : > { %2855 = vst [vmem:[#allocation12 + $0x18] sm:$0xff] %v2839_v26  ;;  %v2803_v24 = vpop.xlane.xlu1 %2802 }
 0x611   : > { %v3665_v61 = vpop.eup %3664  ;;  %3670 = vrcp.f32 %v2803_v24 }
 0x612   : > { %v2840_v28 = vmul.f32 %v3665_v61, %v5102_v14 }
 0x613   : > { %v3667_v33 = vpop.eup %3666 }
 0x614   : > { %2856 = vst [vmem:[#allocation12 + $0x20] sm:$0xff] %v2840_v28  ;;  %v2841_v8 = vmul.f32 %v3667_v33, %v5105_v49 }
 0x616   : > { %2857 = vst [vmem:[#allocation12 + $0x28] sm:$0xff] %v2841_v8  ;;  %v2805_v12 = vpop.xlane.xlu0 %2804 }
 0x617   : > { %3672 = vrcp.f32 %v2805_v12 }
 0x618   : > { %v2807_v52 = vpop.xlane.xlu1 %2806 }
 0x619   : > { %v3669_v58 = vpop.eup %3668  ;;  %3674 = vrcp.f32 %v2807_v52 }
 0x61a   : > { %v2842_v46 = vmul.f32 %v3669_v58, %v5110_v21 }
 0x61b   : > { %v3671_v19 = vpop.eup %3670 }
 0x61c   : > { %2858 = vst [vmem:[#allocation12 + $0x30] sm:$0xff] %v2842_v46  ;;  %v2843_v17 = vmul.f32 %v3671_v19, %v5113_v45 }
 0x61e   : > { %2859 = vst [vmem:[#allocation12 + $0x38] sm:$0xff] %v2843_v17  ;;  %v2809_v39 = vpop.xlane.xlu0 %2808 }
 0x61f   : > { %3676 = vrcp.f32 %v2809_v39 }
 0x620   : > { %v2811_v35 = vpop.xlane.xlu1 %2810 }
 0x621   : > { %v3673_v14 = vpop.eup %3672  ;;  %3678 = vrcp.f32 %v2811_v35 }
 0x622   : > { %v2844_v48 = vmul.f32 %v3673_v14, %v5118_v59 }
 0x623   : > { %v3675_v49 = vpop.eup %3674 }
 0x624   : > { %2860 = vst [vmem:[#allocation12 + $0x40] sm:$0xff] %v2844_v48  ;;  %v2845_v31 = vmul.f32 %v3675_v49, %v5121_v6 }
 0x626   : > { %2861 = vst [vmem:[#allocation12 + $0x48] sm:$0xff] %v2845_v31  ;;  %v2813_v62 = vpop.xlane.xlu0 %2812 }
 0x627   : > { %3680 = vrcp.f32 %v2813_v62 }
 0x628   : > { %v2815_v5 = vpop.xlane.xlu1 %2814 }
 0x629   : > { %v3677_v11 = vpop.eup %3676  ;;  %3682 = vrcp.f32 %v2815_v5 }
 0x62a   : > { %v2846_v25 = vmul.f32 %v3677_v11, %v5126_v38 }
 0x62b   : > { %v3679_v21 = vpop.eup %3678 }
 0x62c   : > { %2862 = vst [vmem:[#allocation12 + $0x50] sm:$0xff] %v2846_v25  ;;  %v2847_v50 = vmul.f32 %v3679_v21, %v5129_v20 }
 0x62e   : > { %2863 = vst [vmem:[#allocation12 + $0x58] sm:$0xff] %v2847_v50  ;;  %v2817_v45 = vpop.xlane.xlu0 %2816 }
 0x62f   : > { %3684 = vrcp.f32 %v2817_v45 }
 0x630   : > { %v2819_v15 = vpop.xlane.xlu1 %2818 }
 0x631   : > { %v3681_v37 = vpop.eup %3680  ;;  %3686 = vrcp.f32 %v2819_v15 }
 0x632   : > { %v2848_v43 = vmul.f32 %v3681_v37, %v5134_v18 }
 0x633   : > { %v3683_v1 = vpop.eup %3682 }
 0x634   : > { %2864 = vst [vmem:[#allocation12 + $0x60] sm:$0xff] %v2848_v43  ;;  %v2849_v40 = vmul.f32 %v3683_v1, %v5137_v4 }
 0x636   : > { %2865 = vst [vmem:[#allocation12 + $0x68] sm:$0xff] %v2849_v40 }
 0x639   : > { %v3685_v59 = vpop.eup %3684 }
 0x63a   : > { %v2850_v60 = vmul.f32 %v3685_v59, %v5140_v44 }
 0x63b   : > { %v3687_v6 = vpop.eup %3686 }
 0x63c   : > { %2866 = vst [vmem:[#allocation12 + $0x70] sm:$0xff] %v2850_v60  ;;  %v2851_v34 = vmul.f32 %v3687_v6, %v5143_v54 }
 0x63e   : > { %2867 = vst [vmem:[#allocation12 + $0x78] sm:$0xff] %v2851_v34 }
 0x63f PF: > { %p3365_p2 = scmp.eq.s32.totalorder %s3993_s13, 1  ;;  %s3921_s1 = smov [#allocation12]  }
 0x640   : > { %s2874_s22 = sshll.u32 %s3921_s1, 4  ;;  %s2875_s22 = int_to_ptr.vmem [resolvable:$true] %s2874_s22 }
 0x641   : > { %s3834_s23 = scalar_lea.vmem %s2875_s22, 2048  ;;  %p3841_p1 = scmp.lt.s32.totalorder %s2875_s22, %s2875_s22 }
 0x642   : > { %p3835_p11 = scmp.ne.s32.totalorder %s2875_s22, %s3834_s23  ;;  %p3842_p4 = scmp.lt.s32.totalorder %s3834_s23, %s3834_s23 }
 0x644   : > { %p3836_p8 = pnand %p3835_p11, %p3365_p2  ;;  %p3843_p6 = por %p3842_p4, %p3841_p1 }
 0x646   : > { %p3837_p9 = pneg %p3836_p8 }
 0x648   : > { %p3844_p12 = pnand %p3843_p6, %p3837_p9 }
 0x64a   : > { %3847 = shalt.err (!%p3844_p12)
}
 0x64b   : > { %s3848_s21 = scalar_lea.hbm %s5207_s9, 2048 }
 0x64c   : > { %p3849_p13 = scmp.ne.s32.totalorder %s5207_s9, %s3848_s21  ;;  %p3854_p0 = scmp.lt.u32.totalorder %s3848_s21, %s5207_s9 }
 0x64e   : > { %p3850_p5 = pnand %p3849_p13, %p3365_p2 }
 0x650   : > { %p3851_p10 = pneg %p3850_p5 }
 0x652   : > { %p3856_p3 = pnand %p3854_p0, %p3851_p10 }
 0x654   : > { %3859 = shalt.err (!%p3856_p3)
}
 0x655   : > { %s3922_s20 = smov 128   ;;  %s3923_s15 = smov 8  }
 0x656   : > { %3340 = dma.vmem_to_hbm [thread:$0]  (%p3365_p2), %s2875_s22, 2048, %s5207_s9, [#allocation5], %s3922_s20, %s3922_s20, %s3923_s15  }
 0x657   : > { %3889 = dma.done.wait (%p3365_p2), [#allocation5], 2048  }
 0x658   : > { %3891 = vsyncadd (%p3365_p2), [#allocation5], 4294965248 }
 0x659 PF: > { %s5245_s12 = sld [smem:[#allocation18_spill]]  ;;  %s5246_s3 = sld [smem:[#allocation17_spill]] }
 0x65a   : > { %s5247_s11 = sld [smem:[#allocation19_spill]]  ;;  %s5248_s30 = smov %s3898_s10 }
 0x65f   : > { %p24_p7 = scmp.ge.s32.totalorder %s5245_s12, 4   ;;  %s5249_s10 = smov %s5246_s3 }
 0x661   :  { %26 = sbr.rel (!%p24_p7) target bundleno = 10 (0xa), region = 133 }
 0x668   :  { %2890 = vsyncpa [#allocation4], 1 }
 0x669   :  { %2892 = vsyncpa [#allocation4 + $0x1], 1 }
 0x66a   :  { %2893 = vsyncpa [#allocation7], 1 }
 0x66b   :  { %2895 = vsyncpa [#allocation7 + $0x1], 1 }
 0x66c   :  { %2896 = vsyncpa [#allocation10], 1 }
 0x66d   :  { %2897 = vsyncpa [#allocation5], 1 }
 0x66e   :  { %2899 = vsyncpa [#allocation5 + $0x1], 1 }

</bundles_post_ra>
